<compile_context>
chip_gen: v7x
topology: tpu7x:2x2x1
jax: 0.10.0
libtpu: 0.0.40
codegen_flags: <defaults>
</compile_context>

<pallas_src>
import functools
import numpy as np

import jax
import jax.numpy as jnp
from jax.experimental import pallas as pl
from jax.experimental.pallas import tpu as pltpu

# ----------------------------- model dimensions ------------------------------
B_SIZE = 2            # batch
IMG = 32              # image H = W
PATCH = 8             # patch size -> feature map GRID x GRID
GRID = IMG // PATCH   # 4
N_TOK = GRID * GRID   # tokens per image (16)
BN = B_SIZE * N_TOK   # total tokens (32)
D = 64                # encoder transformer dim   (ViT-B: 768)
HEADS = 2
DH = D // HEADS
DEPTH = 2             # encoder blocks            (ViT-B: 12)
MLP = 4 * D
NECK = 32             # neck channels             (SAM neck: 256)
PROJ = 64             # proj_dim (padded 48 -> 64 for lane-friendly layout; ref: 512)
NTOK = 64             # num_classes / ntokens     (ref: 1024)
NUM_MASK = 4          # masked tokens per image (~mask_ratio 0.3 of 16)
T_MASK = B_SIZE * NUM_MASK
LAMBDA = 20.0
LN_EPS = 1e-6         # SAM LayerNorm / LayerNorm2d eps


# ------------------------- parameter slab layouts (static) --------------------
def _build_layout(entries, align):
    layout, off = {}, 0
    for name, rows, cols in entries:
        layout[name] = (off, rows, cols)
        off += -(-rows // align) * align
    total = -(-off // align) * align
    return layout, total


_W_ENTRIES = [("patch_w", PATCH * PATCH * 3, D)]
for _d in range(DEPTH):
    _W_ENTRIES += [(f"qkv_w{_d}", D, 3 * D), (f"attn_proj_w{_d}", D, D),
                   (f"fc1_w{_d}", D, MLP), (f"fc2_w{_d}", MLP, D)]
_W_ENTRIES += [("neck1_w", D, NECK), ("neck2_w", 9 * NECK, NECK),
               ("proj1_w", NECK, PROJ), ("proj2_w", PROJ, NTOK)]
W_LAYOUT, W_ROWS = _build_layout(_W_ENTRIES, align=16)   # bf16 slab (16-sublane tiles)
W_COLS = 256

_V_ENTRIES = [("pos_pb", BN, D), ("mask_tok", 1, D)]
for _d in range(DEPTH):
    _V_ENTRIES += [(f"ln1_w{_d}", 1, D), (f"ln1_b{_d}", 1, D), (f"qkv_b{_d}", 1, 3 * D),
                   (f"attn_proj_b{_d}", 1, D), (f"ln2_w{_d}", 1, D), (f"ln2_b{_d}", 1, D),
                   (f"fc1_b{_d}", 1, MLP), (f"fc2_b{_d}", 1, D)]
_V_ENTRIES += [("neck_ln1_w", 1, NECK), ("neck_ln1_b", 1, NECK),
               ("neck_ln2_w", 1, NECK), ("neck_ln2_b", 1, NECK),
               ("proj1_b", 1, PROJ), ("proj_ln_w", 1, PROJ), ("proj_ln_b", 1, PROJ),
               ("proj2_b", 1, NTOK)]
V_LAYOUT, V_ROWS = _build_layout(_V_ENTRIES, align=8)     # f32 slab (8-sublane tiles)
V_COLS = 256


# ------------------------------ kernel A: encoder ------------------------------
def _encode_kernel(patches_ref, maskb_ref, bias_ref, ng_ref, w_ref, v_ref, out_ref):
    """One grid program per branch: 0 = teacher (unmasked), 1 = student (masked)."""
    is_student = (pl.program_id(0) == 1).astype(jnp.float32)

    def wld(name):                                  # bf16 matmul weight view
        r0, nr, nc = W_LAYOUT[name]
        return w_ref[0, r0:r0 + nr, 0:nc]

    def vld(name):                                  # f32 bias / LN param view
        r0, nr, nc = V_LAYOUT[name]
        return v_ref[0, r0:r0 + nr, 0:nc]

    def bdot(a, b):                                 # bf16 MXU matmul, f32 accumulation
        return jnp.dot(a.astype(jnp.bfloat16), b.astype(jnp.bfloat16),
                       preferred_element_type=jnp.float32)

    def ln(x, g, b):
        mu = jnp.mean(x, axis=-1, keepdims=True)
        xc = x - mu
        var = jnp.mean(xc * xc, axis=-1, keepdims=True)
        return xc * jax.lax.rsqrt(var + LN_EPS) * g + b

    def gelu(x):
        # TODO(synk): PyTorch nn.GELU defaults to exact erf; tanh approximation used here.
        return 0.5 * x * (1.0 + jnp.tanh(0.7978845608028654 * (x + 0.044715 * x * x * x)))

    attn_bias = bias_ref[...]                       # (BN, BN): 0 within image, -1e9 across
    eff_mask = maskb_ref[...] * is_student          # (BN, D): student only

    # patch embed (stride-PATCH conv as matmul) + mask-token swap + pos embed
    x = bdot(patches_ref[...], wld("patch_w"))                      # (BN, D) f32
    x = jnp.where(eff_mask > 0.5, vld("mask_tok"), x)               # mask_token - patch_b
    x = x + vld("pos_pb")                                           # pos_embed + patch_b

    # transformer blocks
    # TODO(synk): SAM ViT blocks use windowed attention + relative position embeddings;
    #             global per-image attention (block-diagonal additive bias) is used here.
    for d in range(DEPTH):
        shortcut = x
        xn = ln(x, vld(f"ln1_w{d}"), vld(f"ln1_b{d}"))
        qkv = bdot(xn, wld(f"qkv_w{d}")) + vld(f"qkv_b{d}")          # (BN, 3D), Q pre-scaled
        heads = []
        for h in range(HEADS):                                       # static head slices
            q = qkv[:, h * DH:(h + 1) * DH]
            k = qkv[:, D + h * DH:D + (h + 1) * DH]
            v = qkv[:, 2 * D + h * DH:2 * D + (h + 1) * DH]
            s = bdot(q, k.T) + attn_bias
            s = s - jnp.max(s, axis=-1, keepdims=True)
            p = jnp.exp(s)
            p = p * pl.reciprocal(jnp.sum(p, axis=-1, keepdims=True), approx=True)
            heads.append(bdot(p, v))                                 # (BN, DH)
        o = jnp.concatenate(heads, axis=-1)                          # merged heads (BN, D)
        x = shortcut + bdot(o, wld(f"attn_proj_w{d}")) + vld(f"attn_proj_b{d}")

        xn = ln(x, vld(f"ln2_w{d}"), vld(f"ln2_b{d}"))
        hdn = gelu(bdot(xn, wld(f"fc1_w{d}")) + vld(f"fc1_b{d}"))
        x = x + bdot(hdn, wld(f"fc2_w{d}")) + vld(f"fc2_b{d}")

    # SAM neck: 1x1 conv -> LayerNorm2d -> 3x3 conv -> LayerNorm2d,
    # evaluated only at the T masked token positions.
    y = ln(bdot(x, wld("neck1_w")), vld("neck_ln1_w"), vld("neck_ln1_b"))      # (BN, NECK)
    gathered = bdot(ng_ref[...], y)                                  # (9*T, NECK) neighbourhoods
    conv_in = jnp.concatenate(
        [gathered[t * T_MASK:(t + 1) * T_MASK, :] for t in range(9)], axis=-1)  # (T, 9*NECK)
    y = ln(bdot(conv_in, wld("neck2_w")), vld("neck_ln2_w"), vld("neck_ln2_b"))  # (T, NECK)

    # projection head on the T masked rows only
    z = bdot(y, wld("proj1_w")) + vld("proj1_b")
    z = ln(z, vld("proj_ln_w"), vld("proj_ln_b"))
    z = bdot(z, wld("proj2_w")) + vld("proj2_b")                     # (T, NTOK)
    out_ref[0] = z


# --------------------------- kernel B: Sinkhorn + loss -------------------------
def _loss_kernel(scores_ref, out_ref, *, lam, n_sink_iters):
    t_scores = scores_ref[0]                       # (T, NTOK) teacher (no_grad branch)
    s_scores = scores_ref[1]                       # (T, NTOK) student
    t_cnt, n_cls = t_scores.shape

    # Sinkhorn-Knopp on teacher scores. The per-row max shift is exactly absorbed by
    # diag(u) and prevents exp(lambda*score) overflow. exp >= 0, so the reference's
    # K.relu() is a no-op and is omitted.
    K = jnp.exp(lam * (t_scores - jnp.max(t_scores, axis=-1, keepdims=True)))
    ratio = float(t_cnt) / float(n_cls)            # target row sum = 1, col sum = T/C
    v = jnp.ones((1, n_cls), jnp.float32)
    for _ in range(n_sink_iters):
        u = 1.0 / (jnp.sum(K * v, axis=1, keepdims=True) + 1e-30)
        v = ratio / (jnp.sum(K * u, axis=0, keepdims=True) + 1e-30)
    target = u * K * v                             # diag(u) K diag(v)

    # iBOT loss: mean over masked tokens of sum_c -target * log_softmax(student)
    m = jnp.max(s_scores, axis=-1, keepdims=True)
    lse = m + jnp.log(jnp.sum(jnp.exp(s_scores - m), axis=-1, keepdims=True))
    per_tok = jnp.sum(-target * (s_scores - lse), axis=-1, keepdims=True)      # (T, 1)
    out_ref[...] = jnp.sum(per_tok, axis=0, keepdims=True) * (1.0 / float(t_cnt))


# ------------------------------ parameters (random) ---------------------------
def init_model_params(key):
    ks = iter(jax.random.split(key, 64))

    def nrm(shape, scale=0.02):
        return scale * jax.random.normal(next(ks), shape, dtype=jnp.float32)

    p = {
        "patch_w": nrm((PATCH * PATCH * 3, D)),
        "patch_b": jnp.zeros((D,), jnp.float32),
        "pos_embed": nrm((1, GRID, GRID, D)),
        "mask_token": jax.random.normal(next(ks), (D,), dtype=jnp.float32),
        "blocks": [],
        "neck1_w": nrm((D, NECK)),
        "neck_ln1_w": jnp.ones((NECK,), jnp.float32),
        "neck_ln1_b": jnp.zeros((NECK,), jnp.float32),
        "neck2_w": nrm((9 * NECK, NECK)),
        "neck_ln2_w": jnp.ones((NECK,), jnp.float32),
        "neck_ln2_b": jnp.zeros((NECK,), jnp.float32),
        "proj1_w": nrm((NECK, PROJ)),
        "proj1_b": jnp.zeros((PROJ,), jnp.float32),
        "proj_ln_w": jnp.ones((PROJ,), jnp.float32),
        "proj_ln_b": jnp.zeros((PROJ,), jnp.float32),
        "proj2_w": nrm((PROJ, NTOK)),
        "proj2_b": jnp.zeros((NTOK,), jnp.float32),
    }
    for _ in range(DEPTH):
        p["blocks"].append({
            "ln1_w": jnp.ones((D,), jnp.float32), "ln1_b": jnp.zeros((D,), jnp.float32),
            "qkv_w": nrm((D, 3 * D)), "qkv_b": jnp.zeros((3 * D,), jnp.float32),
            "proj_w": nrm((D, D)), "proj_b": jnp.zeros((D,), jnp.float32),
            "ln2_w": jnp.ones((D,), jnp.float32), "ln2_b": jnp.zeros((D,), jnp.float32),
            "fc1_w": nrm((D, MLP)), "fc1_b": jnp.zeros((MLP,), jnp.float32),
            "fc2_w": nrm((MLP, D)), "fc2_b": jnp.zeros((D,), jnp.float32),
        })
    return p


def _pack_branch(p):
    """Pack one branch's params into (bf16 matmul-weight slab, f32 bias/LN slab)."""
    scale = float(DH) ** -0.5
    w = {"patch_w": p["patch_w"],
         "neck1_w": p["neck1_w"], "neck2_w": p["neck2_w"],
         "proj1_w": p["proj1_w"], "proj2_w": p["proj2_w"]}
    v = {
        # patch_b folded into pos_embed; mask_token pre-adjusted so masked path is identical
        "pos_pb": jnp.tile(p["pos_embed"].reshape(N_TOK, D), (B_SIZE, 1))
                  + p["patch_b"].reshape(1, D),
        "mask_tok": (p["mask_token"] - p["patch_b"]).reshape(1, D),
        "neck_ln1_w": p["neck_ln1_w"].reshape(1, NECK), "neck_ln1_b": p["neck_ln1_b"].reshape(1, NECK),
        "neck_ln2_w": p["neck_ln2_w"].reshape(1, NECK), "neck_ln2_b": p["neck_ln2_b"].reshape(1, NECK),
        "proj1_b": p["proj1_b"].reshape(1, PROJ),
        "proj_ln_w": p["proj_ln_w"].reshape(1, PROJ), "proj_ln_b": p["proj_ln_b"].reshape(1, PROJ),
        "proj2_b": p["proj2_b"].reshape(1, NTOK),
    }
    for d, blk in enumerate(p["blocks"]):
        # fold the attention scale (DH**-0.5) into the Q columns of qkv_w / qkv_b
        w[f"qkv_w{d}"] = blk["qkv_w"].at[:, :D].multiply(scale)
        w[f"attn_proj_w{d}"] = blk["proj_w"]
        w[f"fc1_w{d}"] = blk["fc1_w"]
        w[f"fc2_w{d}"] = blk["fc2_w"]
        v[f"qkv_b{d}"] = blk["qkv_b"].at[:D].multiply(scale).reshape(1, 3 * D)
        v[f"ln1_w{d}"] = blk["ln1_w"].reshape(1, D)
        v[f"ln1_b{d}"] = blk["ln1_b"].reshape(1, D)
        v[f"attn_proj_b{d}"] = blk["proj_b"].reshape(1, D)
        v[f"ln2_w{d}"] = blk["ln2_w"].reshape(1, D)
        v[f"ln2_b{d}"] = blk["ln2_b"].reshape(1, D)
        v[f"fc1_b{d}"] = blk["fc1_b"].reshape(1, MLP)
        v[f"fc2_b{d}"] = blk["fc2_b"].reshape(1, D)

    w_slab = jnp.zeros((W_ROWS, W_COLS), jnp.bfloat16)
    for name, (r0, nr, nc) in W_LAYOUT.items():
        w_slab = w_slab.at[r0:r0 + nr, 0:nc].set(w[name].astype(jnp.bfloat16))
    v_slab = jnp.zeros((V_ROWS, V_COLS), jnp.float32)
    for name, (r0, nr, nc) in V_LAYOUT.items():
        v_slab = v_slab.at[r0:r0 + nr, 0:nc].set(v[name].astype(jnp.float32))
    return w_slab, v_slab


# ------------------------------ host-side constants ----------------------------
def _patchify(image_nchw):
    b = image_nchw.shape[0]
    x = jnp.transpose(image_nchw, (0, 2, 3, 1))                        # NCHW -> NHWC
    x = x.reshape(b, GRID, PATCH, GRID, PATCH, 3)
    x = jnp.transpose(x, (0, 1, 3, 2, 4, 5))
    return x.reshape(b * GRID * GRID, PATCH * PATCH * 3)


def _build_attn_bias():
    """Block-diagonal additive bias: 0 within an image, -1e9 across images."""
    bias = np.full((BN, BN), -1e9, dtype=np.float32)
    for b in range(B_SIZE):
        bias[b * N_TOK:(b + 1) * N_TOK, b * N_TOK:(b + 1) * N_TOK] = 0.0
    return bias


def _build_neighbor_gather(mask_np):
    """(9*T, B*N) one-hot gather: row tap*T + t selects the (dy,dx) zero-padded 3x3
    neighbour of the t-th masked token (PyTorch boolean-index order)."""
    b_idx, y_idx, x_idx = np.nonzero(mask_np)
    t_cnt = len(b_idx)
    ng = np.zeros((9 * t_cnt, BN), dtype=np.float32)
    for tap in range(9):
        dy, dx = tap // 3 - 1, tap % 3 - 1
        for t, (b, y, x) in enumerate(zip(b_idx, y_idx, x_idx)):
            ys, xs = y + dy, x + dx
            if 0 <= ys < GRID and 0 <= xs < GRID:
                ng[tap * t_cnt + t, b * N_TOK + ys * GRID + xs] = 1.0
    return ng


def build_constants(mask_np):
    """Mask-dependent constants; build once and reuse across forward calls."""
    # TODO(synk): these dense one-hot operators are O(N^2) in tokens; at real MedSAM/ViT-B
    #             sizes replace with per-image batched attention, pltpu.roll-based 3x3 shifts
    #             and scalar-prefetched masked-token indices.
    assert int(mask_np.sum()) == T_MASK
    maskb = np.repeat(mask_np.reshape(-1, 1).astype(np.float32), D, axis=1)   # (BN, D)
    return {
        "maskb": jnp.asarray(maskb),
        "attn_bias": jnp.asarray(_build_attn_bias()),
        "ng": jnp.asarray(_build_neighbor_gather(mask_np)),
    }


def generate_masks(batch, grid, num_mask, seed=0):
    # TODO(synk): reference uses block-wise MaskingGenerator; deterministic random
    # per-token masks with a fixed count are used here.
    rng = np.random.RandomState(seed)
    masks = np.zeros((batch, grid, grid), dtype=bool)
    for b in range(batch):
        flat = np.zeros(grid * grid, dtype=bool)
        flat[rng.choice(grid * grid, size=num_mask, replace=False)] = True
        masks[b] = flat.reshape(grid, grid)
    return masks


# ----------------------------------- forward -----------------------------------
@functools.partial(jax.jit, static_argnames=("lambda_",))
def _ibot_call(teacher_params, student_params, image, maskb, attn_bias, ng, *, lambda_):
    patches = _patchify(image).astype(jnp.bfloat16)
    w_t, v_t = _pack_branch(teacher_params)
    w_s, v_s = _pack_branch(student_params)
    w_stack = jnp.stack([w_t, w_s])                # (2, W_ROWS, W_COLS) bf16
    v_stack = jnp.stack([v_t, v_s])                # (2, V_ROWS, V_COLS) f32

    scores = pl.pallas_call(
        _encode_kernel,
        grid=(2,),
        out_shape=jax.ShapeDtypeStruct((2, T_MASK, NTOK), jnp.float32),
        in_specs=[
            pl.BlockSpec((BN, PATCH * PATCH * 3), lambda i: (0, 0)),
            pl.BlockSpec((BN, D), lambda i: (0, 0)),
            pl.BlockSpec((BN, BN), lambda i: (0, 0)),
            pl.BlockSpec((9 * T_MASK, BN), lambda i: (0, 0)),
            pl.BlockSpec((1, W_ROWS, W_COLS), lambda i: (i, 0, 0)),
            pl.BlockSpec((1, V_ROWS, V_COLS), lambda i: (i, 0, 0)),
        ],
        out_specs=pl.BlockSpec((1, T_MASK, NTOK), lambda i: (i, 0, 0)),
        compiler_params=pltpu.CompilerParams(dimension_semantics=("parallel",)),
    )(patches, maskb, attn_bias, ng, w_stack, v_stack)

    loss = pl.pallas_call(
        functools.partial(_loss_kernel, lam=lambda_, n_sink_iters=3),
        out_shape=jax.ShapeDtypeStruct((1, 1), jnp.float32),
        in_specs=[pl.BlockSpec(memory_space=pltpu.MemorySpace.VMEM)],
        out_specs=pl.BlockSpec(memory_space=pltpu.MemorySpace.VMEM),
    )(scores)
    return loss[0, 0]


def ibot_forward(student_params, teacher_params, image, mask_np, lambda_=LAMBDA, constants=None):
    """IBotStyleModel.forward -> scalar loss."""
    if constants is None:
        constants = build_constants(mask_np)
    return _ibot_call(teacher_params, student_params, image,
                      constants["maskb"], constants["attn_bias"], constants["ng"],
                      lambda_=float(lambda_))


if __name__ == "__main__":
    key = jax.random.PRNGKey(0)
    pkey, ikey = jax.random.split(key)

    student_params = init_model_params(pkey)
    teacher_params = student_params               # teacher = deepcopy(student) at init

    image = jax.random.normal(ikey, (B_SIZE, 3, IMG, IMG), dtype=jnp.float32)
    mask_np = generate_masks(B_SIZE, GRID, NUM_MASK, seed=0)
    constants = build_constants(mask_np)          # built once, reused across steps

    loss = ibot_forward(student_params, teacher_params, image, mask_np, constants=constants)
    loss = jax.block_until_ready(loss)
    assert loss.shape == () and not bool(jnp.isnan(loss))
    print("KERNEL_OK")
</pallas_src>

<mosaic_0001>
module attributes {stable_mosaic.version = 11 : i64} {
  func.func @_encode_kernel(%arg0: i32, %arg1: memref<32x192xbf16, #tpu.memory_space<vmem>>, %arg2: memref<32x64xf32, #tpu.memory_space<vmem>>, %arg3: memref<32x32xf32, #tpu.memory_space<vmem>>, %arg4: memref<72x32xf32, #tpu.memory_space<vmem>>, %arg5: memref<1x1536x256xbf16, #tpu.memory_space<vmem>>, %arg6: memref<1x232x256xf32, #tpu.memory_space<vmem>>, %arg7: memref<1x8x64xf32, #tpu.memory_space<vmem>>) attributes {dimension_semantics = [#tpu.dimension_semantics<parallel>], iteration_bounds = array<i64: 2>, scalar_prefetch = 0 : i64, scratch_operands = 0 : i64, tpu.core_type = #tpu.core_type<tc>, window_params = [{pipeline_mode = #tpu.pipeline_mode<synchronous>, transform_indices = @transform_0, window_bounds = array<i64: 32, 192>}, {pipeline_mode = #tpu.pipeline_mode<synchronous>, transform_indices = @transform_1, window_bounds = array<i64: 32, 64>}, {pipeline_mode = #tpu.pipeline_mode<synchronous>, transform_indices = @transform_2, window_bounds = array<i64: 32, 32>}, {pipeline_mode = #tpu.pipeline_mode<synchronous>, transform_indices = @transform_3, window_bounds = array<i64: 72, 32>}, {transform_indices = @transform_4, window_bounds = array<i64: 1, 1536, 256>}, {transform_indices = @transform_5, window_bounds = array<i64: 1, 232, 256>}, {transform_indices = @transform_6, window_bounds = array<i64: 1, 8, 64>}]} {
    %c1_i32 = arith.constant 1 : i32
    %0 = arith.cmpi eq, %arg0, %c1_i32 : i32
    %1 = arith.extui %0 : i1 to i32
    %2 = arith.sitofp %1 : i32 to f32
    %c0 = arith.constant 0 : index
    %c0_0 = arith.constant 0 : index
    %3 = vector.load %arg3[%c0, %c0_0] : memref<32x32xf32, #tpu.memory_space<vmem>>, vector<32x32xf32>
    %c0_1 = arith.constant 0 : index
    %c0_2 = arith.constant 0 : index
    %4 = vector.load %arg2[%c0_1, %c0_2] : memref<32x64xf32, #tpu.memory_space<vmem>>, vector<32x64xf32>
    %5 = vector.broadcast %2 : f32 to vector<32x64xf32>
    %6 = arith.mulf %4, %5 : vector<32x64xf32>
    %c0_3 = arith.constant 0 : index
    %c0_4 = arith.constant 0 : index
    %7 = vector.load %arg1[%c0_3, %c0_4] : memref<32x192xbf16, #tpu.memory_space<vmem>>, vector<32x192xbf16>
    %c0_5 = arith.constant 0 : index
    %c0_6 = arith.constant 0 : index
    %c0_7 = arith.constant 0 : index
    %8 = vector.load %arg5[%c0_5, %c0_6, %c0_7] : memref<1x1536x256xbf16, #tpu.memory_space<vmem>>, vector<1x192x64xbf16>
    %9 = vector.shape_cast %8 : vector<1x192x64xbf16> to vector<192x64xbf16>
    %cst = arith.constant dense<0.000000e+00> : vector<32x64xf32>
    %10 = tpu.matmul %7, %9, %cst {dimension_numbers = #tpu.dot_dimension_numbers<[1], [0], [0], [1], [0, 0, 1, 1], [], []>} : vector<32x192xbf16>, vector<192x64xbf16>, vector<32x64xf32> -> vector<32x64xf32>
    %cst_8 = arith.constant 5.000000e-01 : f32
    %11 = vector.broadcast %cst_8 : f32 to vector<32x64xf32>
    %12 = arith.cmpf ogt, %6, %11 : vector<32x64xf32>
    %c0_9 = arith.constant 0 : index
    %c32 = arith.constant 32 : index
    %c0_10 = arith.constant 0 : index
    %13 = vector.load %arg6[%c0_9, %c32, %c0_10] : memref<1x232x256xf32, #tpu.memory_space<vmem>>, vector<1x1x64xf32>
    %14 = vector.shape_cast %13 : vector<1x1x64xf32> to vector<1x64xf32>
    %15 = vector.shape_cast %14 : vector<1x64xf32> to vector<1x64xf32>
    %16 = vector.broadcast %15 : vector<1x64xf32> to vector<32x64xf32>
    %17 = arith.select %12, %16, %10 : vector<32x64xi1>, vector<32x64xf32>
    %c0_11 = arith.constant 0 : index
    %c0_12 = arith.constant 0 : index
    %c0_13 = arith.constant 0 : index
    %18 = vector.load %arg6[%c0_11, %c0_12, %c0_13] : memref<1x232x256xf32, #tpu.memory_space<vmem>>, vector<1x32x64xf32>
    %19 = vector.shape_cast %18 : vector<1x32x64xf32> to vector<32x64xf32>
    %20 = arith.addf %17, %19 : vector<32x64xf32>
    %c0_14 = arith.constant 0 : index
    %c40 = arith.constant 40 : index
    %c0_15 = arith.constant 0 : index
    %21 = vector.load %arg6[%c0_14, %c40, %c0_15] : memref<1x232x256xf32, #tpu.memory_space<vmem>>, vector<1x1x64xf32>
    %22 = vector.shape_cast %21 : vector<1x1x64xf32> to vector<1x64xf32>
    %c0_16 = arith.constant 0 : index
    %c48 = arith.constant 48 : index
    %c0_17 = arith.constant 0 : index
    %23 = vector.load %arg6[%c0_16, %c48, %c0_17] : memref<1x232x256xf32, #tpu.memory_space<vmem>>, vector<1x1x64xf32>
    %24 = vector.shape_cast %23 : vector<1x1x64xf32> to vector<1x64xf32>
    %cst_18 = arith.constant dense<0.000000e+00> : vector<32xf32>
    %25 = vector.multi_reduction <add>, %20, %cst_18 [1] : vector<32x64xf32> to vector<32xf32>
    %26 = vector.shape_cast %25 : vector<32xf32> to vector<32x1xf32>
    %cst_19 = arith.constant 6.400000e+01 : f32
    %27 = vector.broadcast %cst_19 : f32 to vector<32x1xf32>
    %28 = arith.divf %26, %27 : vector<32x1xf32>
    %29 = vector.broadcast %28 : vector<32x1xf32> to vector<32x64xf32>
    %30 = arith.subf %20, %29 : vector<32x64xf32>
    %31 = arith.mulf %30, %30 : vector<32x64xf32>
    %cst_20 = arith.constant dense<0.000000e+00> : vector<32xf32>
    %32 = vector.multi_reduction <add>, %31, %cst_20 [1] : vector<32x64xf32> to vector<32xf32>
    %33 = vector.shape_cast %32 : vector<32xf32> to vector<32x1xf32>
    %cst_21 = arith.constant 6.400000e+01 : f32
    %34 = vector.broadcast %cst_21 : f32 to vector<32x1xf32>
    %35 = arith.divf %33, %34 : vector<32x1xf32>
    %cst_22 = arith.constant 9.99999997E-7 : f32
    %36 = vector.broadcast %cst_22 : f32 to vector<32x1xf32>
    %37 = arith.addf %35, %36 : vector<32x1xf32>
    %38 = math.rsqrt %37 : vector<32x1xf32>
    %39 = vector.broadcast %38 : vector<32x1xf32> to vector<32x64xf32>
    %40 = arith.mulf %30, %39 : vector<32x64xf32>
    %41 = vector.broadcast %22 : vector<1x64xf32> to vector<32x64xf32>
    %42 = arith.mulf %40, %41 : vector<32x64xf32>
    %43 = vector.broadcast %24 : vector<1x64xf32> to vector<32x64xf32>
    %44 = arith.addf %42, %43 : vector<32x64xf32>
    %c0_23 = arith.constant 0 : index
    %c192 = arith.constant 192 : index
    %c0_24 = arith.constant 0 : index
    %45 = vector.load %arg5[%c0_23, %c192, %c0_24] : memref<1x1536x256xbf16, #tpu.memory_space<vmem>>, vector<1x64x192xbf16>
    %46 = vector.shape_cast %45 : vector<1x64x192xbf16> to vector<64x192xbf16>
    %47 = arith.truncf %44 : vector<32x64xf32> to vector<32x64xbf16>
    %cst_25 = arith.constant dense<0.000000e+00> : vector<32x192xf32>
    %48 = tpu.matmul %47, %46, %cst_25 {dimension_numbers = #tpu.dot_dimension_numbers<[1], [0], [0], [1], [0, 0, 1, 1], [], []>} : vector<32x64xbf16>, vector<64x192xbf16>, vector<32x192xf32> -> vector<32x192xf32>
    %c0_26 = arith.constant 0 : index
    %c56 = arith.constant 56 : index
    %c0_27 = arith.constant 0 : index
    %49 = vector.load %arg6[%c0_26, %c56, %c0_27] : memref<1x232x256xf32, #tpu.memory_space<vmem>>, vector<1x1x192xf32>
    %50 = vector.shape_cast %49 : vector<1x1x192xf32> to vector<1x192xf32>
    %51 = vector.broadcast %50 : vector<1x192xf32> to vector<32x192xf32>
    %52 = arith.addf %48, %51 : vector<32x192xf32>
    %53 = vector.extract_strided_slice %52 {offsets = [0, 0], sizes = [32, 32], strides = [1, 1]} : vector<32x192xf32> to vector<32x32xf32>
    %54 = vector.extract_strided_slice %52 {offsets = [0, 64], sizes = [32, 32], strides = [1, 1]} : vector<32x192xf32> to vector<32x32xf32>
    %55 = vector.extract_strided_slice %52 {offsets = [0, 128], sizes = [32, 32], strides = [1, 1]} : vector<32x192xf32> to vector<32x32xf32>
    %56 = tpu.transpose %54, [1, 0] : vector<32x32xf32> -> vector<32x32xf32>
    %57 = arith.truncf %53 : vector<32x32xf32> to vector<32x32xbf16>
    %58 = arith.truncf %56 : vector<32x32xf32> to vector<32x32xbf16>
    %cst_28 = arith.constant dense<0.000000e+00> : vector<32x32xf32>
    %59 = tpu.matmul %57, %58, %cst_28 {dimension_numbers = #tpu.dot_dimension_numbers<[1], [0], [0], [1], [0, 0, 1, 1], [], []>} : vector<32x32xbf16>, vector<32x32xbf16>, vector<32x32xf32> -> vector<32x32xf32>
    %60 = arith.addf %59, %3 : vector<32x32xf32>
    %cst_29 = arith.constant dense<0xFF800000> : vector<32xf32>
    %61 = vector.multi_reduction <maximumf>, %60, %cst_29 [1] : vector<32x32xf32> to vector<32xf32>
    %62 = vector.shape_cast %61 : vector<32xf32> to vector<32x1xf32>
    %63 = vector.broadcast %62 : vector<32x1xf32> to vector<32x32xf32>
    %64 = arith.subf %60, %63 : vector<32x32xf32>
    %65 = math.exp %64 : vector<32x32xf32>
    %cst_30 = arith.constant dense<0.000000e+00> : vector<32xf32>
    %66 = vector.multi_reduction <add>, %65, %cst_30 [1] : vector<32x32xf32> to vector<32xf32>
    %67 = vector.shape_cast %66 : vector<32xf32> to vector<32x1xf32>
    %68 = tpu.reciprocal %67 {approx = true} : vector<32x1xf32> -> vector<32x1xf32>
    %69 = vector.broadcast %68 : vector<32x1xf32> to vector<32x32xf32>
    %70 = arith.mulf %65, %69 : vector<32x32xf32>
    %71 = arith.truncf %70 : vector<32x32xf32> to vector<32x32xbf16>
    %72 = arith.truncf %55 : vector<32x32xf32> to vector<32x32xbf16>
    %cst_31 = arith.constant dense<0.000000e+00> : vector<32x32xf32>
    %73 = tpu.matmul %71, %72, %cst_31 {dimension_numbers = #tpu.dot_dimension_numbers<[1], [0], [0], [1], [0, 0, 1, 1], [], []>} : vector<32x32xbf16>, vector<32x32xbf16>, vector<32x32xf32> -> vector<32x32xf32>
    %74 = vector.extract_strided_slice %52 {offsets = [0, 32], sizes = [32, 32], strides = [1, 1]} : vector<32x192xf32> to vector<32x32xf32>
    %75 = vector.extract_strided_slice %52 {offsets = [0, 96], sizes = [32, 32], strides = [1, 1]} : vector<32x192xf32> to vector<32x32xf32>
    %76 = vector.extract_strided_slice %52 {offsets = [0, 160], sizes = [32, 32], strides = [1, 1]} : vector<32x192xf32> to vector<32x32xf32>
    %77 = tpu.transpose %75, [1, 0] : vector<32x32xf32> -> vector<32x32xf32>
    %78 = arith.truncf %74 : vector<32x32xf32> to vector<32x32xbf16>
    %79 = arith.truncf %77 : vector<32x32xf32> to vector<32x32xbf16>
    %cst_32 = arith.constant dense<0.000000e+00> : vector<32x32xf32>
    %80 = tpu.matmul %78, %79, %cst_32 {dimension_numbers = #tpu.dot_dimension_numbers<[1], [0], [0], [1], [0, 0, 1, 1], [], []>} : vector<32x32xbf16>, vector<32x32xbf16>, vector<32x32xf32> -> vector<32x32xf32>
    %81 = arith.addf %80, %3 : vector<32x32xf32>
    %cst_33 = arith.constant dense<0xFF800000> : vector<32xf32>
    %82 = vector.multi_reduction <maximumf>, %81, %cst_33 [1] : vector<32x32xf32> to vector<32xf32>
    %83 = vector.shape_cast %82 : vector<32xf32> to vector<32x1xf32>
    %84 = vector.broadcast %83 : vector<32x1xf32> to vector<32x32xf32>
    %85 = arith.subf %81, %84 : vector<32x32xf32>
    %86 = math.exp %85 : vector<32x32xf32>
    %cst_34 = arith.constant dense<0.000000e+00> : vector<32xf32>
    %87 = vector.multi_reduction <add>, %86, %cst_34 [1] : vector<32x32xf32> to vector<32xf32>
    %88 = vector.shape_cast %87 : vector<32xf32> to vector<32x1xf32>
    %89 = tpu.reciprocal %88 {approx = true} : vector<32x1xf32> -> vector<32x1xf32>
    %90 = vector.broadcast %89 : vector<32x1xf32> to vector<32x32xf32>
    %91 = arith.mulf %86, %90 : vector<32x32xf32>
    %92 = arith.truncf %91 : vector<32x32xf32> to vector<32x32xbf16>
    %93 = arith.truncf %76 : vector<32x32xf32> to vector<32x32xbf16>
    %cst_35 = arith.constant dense<0.000000e+00> : vector<32x32xf32>
    %94 = tpu.matmul %92, %93, %cst_35 {dimension_numbers = #tpu.dot_dimension_numbers<[1], [0], [0], [1], [0, 0, 1, 1], [], []>} : vector<32x32xbf16>, vector<32x32xbf16>, vector<32x32xf32> -> vector<32x32xf32>
    %95 = tpu.concatenate %73, %94 in 1 : vector<32x32xf32>, vector<32x32xf32> -> vector<32x64xf32>
    %c0_36 = arith.constant 0 : index
    %c256 = arith.constant 256 : index
    %c0_37 = arith.constant 0 : index
    %96 = vector.load %arg5[%c0_36, %c256, %c0_37] : memref<1x1536x256xbf16, #tpu.memory_space<vmem>>, vector<1x64x64xbf16>
    %97 = vector.shape_cast %96 : vector<1x64x64xbf16> to vector<64x64xbf16>
    %98 = arith.truncf %95 : vector<32x64xf32> to vector<32x64xbf16>
    %cst_38 = arith.constant dense<0.000000e+00> : vector<32x64xf32>
    %99 = tpu.matmul %98, %97, %cst_38 {dimension_numbers = #tpu.dot_dimension_numbers<[1], [0], [0], [1], [0, 0, 1, 1], [], []>} : vector<32x64xbf16>, vector<64x64xbf16>, vector<32x64xf32> -> vector<32x64xf32>
    %100 = arith.addf %20, %99 : vector<32x64xf32>
    %c0_39 = arith.constant 0 : index
    %c64 = arith.constant 64 : index
    %c0_40 = arith.constant 0 : index
    %101 = vector.load %arg6[%c0_39, %c64, %c0_40] : memref<1x232x256xf32, #tpu.memory_space<vmem>>, vector<1x1x64xf32>
    %102 = vector.shape_cast %101 : vector<1x1x64xf32> to vector<1x64xf32>
    %103 = vector.broadcast %102 : vector<1x64xf32> to vector<32x64xf32>
    %104 = arith.addf %100, %103 : vector<32x64xf32>
    %c0_41 = arith.constant 0 : index
    %c72 = arith.constant 72 : index
    %c0_42 = arith.constant 0 : index
    %105 = vector.load %arg6[%c0_41, %c72, %c0_42] : memref<1x232x256xf32, #tpu.memory_space<vmem>>, vector<1x1x64xf32>
    %106 = vector.shape_cast %105 : vector<1x1x64xf32> to vector<1x64xf32>
    %c0_43 = arith.constant 0 : index
    %c80 = arith.constant 80 : index
    %c0_44 = arith.constant 0 : index
    %107 = vector.load %arg6[%c0_43, %c80, %c0_44] : memref<1x232x256xf32, #tpu.memory_space<vmem>>, vector<1x1x64xf32>
    %108 = vector.shape_cast %107 : vector<1x1x64xf32> to vector<1x64xf32>
    %cst_45 = arith.constant dense<0.000000e+00> : vector<32xf32>
    %109 = vector.multi_reduction <add>, %104, %cst_45 [1] : vector<32x64xf32> to vector<32xf32>
    %110 = vector.shape_cast %109 : vector<32xf32> to vector<32x1xf32>
    %cst_46 = arith.constant 6.400000e+01 : f32
    %111 = vector.broadcast %cst_46 : f32 to vector<32x1xf32>
    %112 = arith.divf %110, %111 : vector<32x1xf32>
    %113 = vector.broadcast %112 : vector<32x1xf32> to vector<32x64xf32>
    %114 = arith.subf %104, %113 : vector<32x64xf32>
    %115 = arith.mulf %114, %114 : vector<32x64xf32>
    %cst_47 = arith.constant dense<0.000000e+00> : vector<32xf32>
    %116 = vector.multi_reduction <add>, %115, %cst_47 [1] : vector<32x64xf32> to vector<32xf32>
    %117 = vector.shape_cast %116 : vector<32xf32> to vector<32x1xf32>
    %cst_48 = arith.constant 6.400000e+01 : f32
    %118 = vector.broadcast %cst_48 : f32 to vector<32x1xf32>
    %119 = arith.divf %117, %118 : vector<32x1xf32>
    %cst_49 = arith.constant 9.99999997E-7 : f32
    %120 = vector.broadcast %cst_49 : f32 to vector<32x1xf32>
    %121 = arith.addf %119, %120 : vector<32x1xf32>
    %122 = math.rsqrt %121 : vector<32x1xf32>
    %123 = vector.broadcast %122 : vector<32x1xf32> to vector<32x64xf32>
    %124 = arith.mulf %114, %123 : vector<32x64xf32>
    %125 = vector.broadcast %106 : vector<1x64xf32> to vector<32x64xf32>
    %126 = arith.mulf %124, %125 : vector<32x64xf32>
    %127 = vector.broadcast %108 : vector<1x64xf32> to vector<32x64xf32>
    %128 = arith.addf %126, %127 : vector<32x64xf32>
    %c0_50 = arith.constant 0 : index
    %c320 = arith.constant 320 : index
    %c0_51 = arith.constant 0 : index
    %129 = vector.load %arg5[%c0_50, %c320, %c0_51] : memref<1x1536x256xbf16, #tpu.memory_space<vmem>>, vector<1x64x256xbf16>
    %130 = vector.shape_cast %129 : vector<1x64x256xbf16> to vector<64x256xbf16>
    %131 = arith.truncf %128 : vector<32x64xf32> to vector<32x64xbf16>
    %cst_52 = arith.constant dense<0.000000e+00> : vector<32x256xf32>
    %132 = tpu.matmul %131, %130, %cst_52 {dimension_numbers = #tpu.dot_dimension_numbers<[1], [0], [0], [1], [0, 0, 1, 1], [], []>} : vector<32x64xbf16>, vector<64x256xbf16>, vector<32x256xf32> -> vector<32x256xf32>
    %c0_53 = arith.constant 0 : index
    %c88 = arith.constant 88 : index
    %c0_54 = arith.constant 0 : index
    %133 = vector.load %arg6[%c0_53, %c88, %c0_54] : memref<1x232x256xf32, #tpu.memory_space<vmem>>, vector<1x1x256xf32>
    %134 = vector.shape_cast %133 : vector<1x1x256xf32> to vector<1x256xf32>
    %135 = vector.broadcast %134 : vector<1x256xf32> to vector<32x256xf32>
    %136 = arith.addf %132, %135 : vector<32x256xf32>
    %cst_55 = arith.constant 5.000000e-01 : f32
    %137 = vector.broadcast %cst_55 : f32 to vector<32x256xf32>
    %138 = arith.mulf %137, %136 : vector<32x256xf32>
    %cst_56 = arith.constant 4.471500e-02 : f32
    %139 = vector.broadcast %cst_56 : f32 to vector<32x256xf32>
    %140 = arith.mulf %139, %136 : vector<32x256xf32>
    %141 = arith.mulf %140, %136 : vector<32x256xf32>
    %142 = arith.mulf %141, %136 : vector<32x256xf32>
    %143 = arith.addf %136, %142 : vector<32x256xf32>
    %cst_57 = arith.constant 0.797884583 : f32
    %144 = vector.broadcast %cst_57 : f32 to vector<32x256xf32>
    %145 = arith.mulf %144, %143 : vector<32x256xf32>
    %146 = math.tanh %145 : vector<32x256xf32>
    %cst_58 = arith.constant 1.000000e+00 : f32
    %147 = vector.broadcast %cst_58 : f32 to vector<32x256xf32>
    %148 = arith.addf %147, %146 : vector<32x256xf32>
    %149 = arith.mulf %138, %148 : vector<32x256xf32>
    %c0_59 = arith.constant 0 : index
    %c384 = arith.constant 384 : index
    %c0_60 = arith.constant 0 : index
    %150 = vector.load %arg5[%c0_59, %c384, %c0_60] : memref<1x1536x256xbf16, #tpu.memory_space<vmem>>, vector<1x256x64xbf16>
    %151 = vector.shape_cast %150 : vector<1x256x64xbf16> to vector<256x64xbf16>
    %152 = arith.truncf %149 : vector<32x256xf32> to vector<32x256xbf16>
    %cst_61 = arith.constant dense<0.000000e+00> : vector<32x64xf32>
    %153 = tpu.matmul %152, %151, %cst_61 {dimension_numbers = #tpu.dot_dimension_numbers<[1], [0], [0], [1], [0, 0, 1, 1], [], []>} : vector<32x256xbf16>, vector<256x64xbf16>, vector<32x64xf32> -> vector<32x64xf32>
    %154 = arith.addf %104, %153 : vector<32x64xf32>
    %c0_62 = arith.constant 0 : index
    %c96 = arith.constant 96 : index
    %c0_63 = arith.constant 0 : index
    %155 = vector.load %arg6[%c0_62, %c96, %c0_63] : memref<1x232x256xf32, #tpu.memory_space<vmem>>, vector<1x1x64xf32>
    %156 = vector.shape_cast %155 : vector<1x1x64xf32> to vector<1x64xf32>
    %157 = vector.broadcast %156 : vector<1x64xf32> to vector<32x64xf32>
    %158 = arith.addf %154, %157 : vector<32x64xf32>
    %c0_64 = arith.constant 0 : index
    %c104 = arith.constant 104 : index
    %c0_65 = arith.constant 0 : index
    %159 = vector.load %arg6[%c0_64, %c104, %c0_65] : memref<1x232x256xf32, #tpu.memory_space<vmem>>, vector<1x1x64xf32>
    %160 = vector.shape_cast %159 : vector<1x1x64xf32> to vector<1x64xf32>
    %c0_66 = arith.constant 0 : index
    %c112 = arith.constant 112 : index
    %c0_67 = arith.constant 0 : index
    %161 = vector.load %arg6[%c0_66, %c112, %c0_67] : memref<1x232x256xf32, #tpu.memory_space<vmem>>, vector<1x1x64xf32>
    %162 = vector.shape_cast %161 : vector<1x1x64xf32> to vector<1x64xf32>
    %cst_68 = arith.constant dense<0.000000e+00> : vector<32xf32>
    %163 = vector.multi_reduction <add>, %158, %cst_68 [1] : vector<32x64xf32> to vector<32xf32>
    %164 = vector.shape_cast %163 : vector<32xf32> to vector<32x1xf32>
    %cst_69 = arith.constant 6.400000e+01 : f32
    %165 = vector.broadcast %cst_69 : f32 to vector<32x1xf32>
    %166 = arith.divf %164, %165 : vector<32x1xf32>
    %167 = vector.broadcast %166 : vector<32x1xf32> to vector<32x64xf32>
    %168 = arith.subf %158, %167 : vector<32x64xf32>
    %169 = arith.mulf %168, %168 : vector<32x64xf32>
    %cst_70 = arith.constant dense<0.000000e+00> : vector<32xf32>
    %170 = vector.multi_reduction <add>, %169, %cst_70 [1] : vector<32x64xf32> to vector<32xf32>
    %171 = vector.shape_cast %170 : vector<32xf32> to vector<32x1xf32>
    %cst_71 = arith.constant 6.400000e+01 : f32
    %172 = vector.broadcast %cst_71 : f32 to vector<32x1xf32>
    %173 = arith.divf %171, %172 : vector<32x1xf32>
    %cst_72 = arith.constant 9.99999997E-7 : f32
    %174 = vector.broadcast %cst_72 : f32 to vector<32x1xf32>
    %175 = arith.addf %173, %174 : vector<32x1xf32>
    %176 = math.rsqrt %175 : vector<32x1xf32>
    %177 = vector.broadcast %176 : vector<32x1xf32> to vector<32x64xf32>
    %178 = arith.mulf %168, %177 : vector<32x64xf32>
    %179 = vector.broadcast %160 : vector<1x64xf32> to vector<32x64xf32>
    %180 = arith.mulf %178, %179 : vector<32x64xf32>
    %181 = vector.broadcast %162 : vector<1x64xf32> to vector<32x64xf32>
    %182 = arith.addf %180, %181 : vector<32x64xf32>
    %c0_73 = arith.constant 0 : index
    %c640 = arith.constant 640 : index
    %c0_74 = arith.constant 0 : index
    %183 = vector.load %arg5[%c0_73, %c640, %c0_74] : memref<1x1536x256xbf16, #tpu.memory_space<vmem>>, vector<1x64x192xbf16>
    %184 = vector.shape_cast %183 : vector<1x64x192xbf16> to vector<64x192xbf16>
    %185 = arith.truncf %182 : vector<32x64xf32> to vector<32x64xbf16>
    %cst_75 = arith.constant dense<0.000000e+00> : vector<32x192xf32>
    %186 = tpu.matmul %185, %184, %cst_75 {dimension_numbers = #tpu.dot_dimension_numbers<[1], [0], [0], [1], [0, 0, 1, 1], [], []>} : vector<32x64xbf16>, vector<64x192xbf16>, vector<32x192xf32> -> vector<32x192xf32>
    %c0_76 = arith.constant 0 : index
    %c120 = arith.constant 120 : index
    %c0_77 = arith.constant 0 : index
    %187 = vector.load %arg6[%c0_76, %c120, %c0_77] : memref<1x232x256xf32, #tpu.memory_space<vmem>>, vector<1x1x192xf32>
    %188 = vector.shape_cast %187 : vector<1x1x192xf32> to vector<1x192xf32>
    %189 = vector.broadcast %188 : vector<1x192xf32> to vector<32x192xf32>
    %190 = arith.addf %186, %189 : vector<32x192xf32>
    %191 = vector.extract_strided_slice %190 {offsets = [0, 0], sizes = [32, 32], strides = [1, 1]} : vector<32x192xf32> to vector<32x32xf32>
    %192 = vector.extract_strided_slice %190 {offsets = [0, 64], sizes = [32, 32], strides = [1, 1]} : vector<32x192xf32> to vector<32x32xf32>
    %193 = vector.extract_strided_slice %190 {offsets = [0, 128], sizes = [32, 32], strides = [1, 1]} : vector<32x192xf32> to vector<32x32xf32>
    %194 = tpu.transpose %192, [1, 0] : vector<32x32xf32> -> vector<32x32xf32>
    %195 = arith.truncf %191 : vector<32x32xf32> to vector<32x32xbf16>
    %196 = arith.truncf %194 : vector<32x32xf32> to vector<32x32xbf16>
    %cst_78 = arith.constant dense<0.000000e+00> : vector<32x32xf32>
    %197 = tpu.matmul %195, %196, %cst_78 {dimension_numbers = #tpu.dot_dimension_numbers<[1], [0], [0], [1], [0, 0, 1, 1], [], []>} : vector<32x32xbf16>, vector<32x32xbf16>, vector<32x32xf32> -> vector<32x32xf32>
    %198 = arith.addf %197, %3 : vector<32x32xf32>
    %cst_79 = arith.constant dense<0xFF800000> : vector<32xf32>
    %199 = vector.multi_reduction <maximumf>, %198, %cst_79 [1] : vector<32x32xf32> to vector<32xf32>
    %200 = vector.shape_cast %199 : vector<32xf32> to vector<32x1xf32>
    %201 = vector.broadcast %200 : vector<32x1xf32> to vector<32x32xf32>
    %202 = arith.subf %198, %201 : vector<32x32xf32>
    %203 = math.exp %202 : vector<32x32xf32>
    %cst_80 = arith.constant dense<0.000000e+00> : vector<32xf32>
    %204 = vector.multi_reduction <add>, %203, %cst_80 [1] : vector<32x32xf32> to vector<32xf32>
    %205 = vector.shape_cast %204 : vector<32xf32> to vector<32x1xf32>
    %206 = tpu.reciprocal %205 {approx = true} : vector<32x1xf32> -> vector<32x1xf32>
    %207 = vector.broadcast %206 : vector<32x1xf32> to vector<32x32xf32>
    %208 = arith.mulf %203, %207 : vector<32x32xf32>
    %209 = arith.truncf %208 : vector<32x32xf32> to vector<32x32xbf16>
    %210 = arith.truncf %193 : vector<32x32xf32> to vector<32x32xbf16>
    %cst_81 = arith.constant dense<0.000000e+00> : vector<32x32xf32>
    %211 = tpu.matmul %209, %210, %cst_81 {dimension_numbers = #tpu.dot_dimension_numbers<[1], [0], [0], [1], [0, 0, 1, 1], [], []>} : vector<32x32xbf16>, vector<32x32xbf16>, vector<32x32xf32> -> vector<32x32xf32>
    %212 = vector.extract_strided_slice %190 {offsets = [0, 32], sizes = [32, 32], strides = [1, 1]} : vector<32x192xf32> to vector<32x32xf32>
    %213 = vector.extract_strided_slice %190 {offsets = [0, 96], sizes = [32, 32], strides = [1, 1]} : vector<32x192xf32> to vector<32x32xf32>
    %214 = vector.extract_strided_slice %190 {offsets = [0, 160], sizes = [32, 32], strides = [1, 1]} : vector<32x192xf32> to vector<32x32xf32>
    %215 = tpu.transpose %213, [1, 0] : vector<32x32xf32> -> vector<32x32xf32>
    %216 = arith.truncf %212 : vector<32x32xf32> to vector<32x32xbf16>
    %217 = arith.truncf %215 : vector<32x32xf32> to vector<32x32xbf16>
    %cst_82 = arith.constant dense<0.000000e+00> : vector<32x32xf32>
    %218 = tpu.matmul %216, %217, %cst_82 {dimension_numbers = #tpu.dot_dimension_numbers<[1], [0], [0], [1], [0, 0, 1, 1], [], []>} : vector<32x32xbf16>, vector<32x32xbf16>, vector<32x32xf32> -> vector<32x32xf32>
    %219 = arith.addf %218, %3 : vector<32x32xf32>
    %cst_83 = arith.constant dense<0xFF800000> : vector<32xf32>
    %220 = vector.multi_reduction <maximumf>, %219, %cst_83 [1] : vector<32x32xf32> to vector<32xf32>
    %221 = vector.shape_cast %220 : vector<32xf32> to vector<32x1xf32>
    %222 = vector.broadcast %221 : vector<32x1xf32> to vector<32x32xf32>
    %223 = arith.subf %219, %222 : vector<32x32xf32>
    %224 = math.exp %223 : vector<32x32xf32>
    %cst_84 = arith.constant dense<0.000000e+00> : vector<32xf32>
    %225 = vector.multi_reduction <add>, %224, %cst_84 [1] : vector<32x32xf32> to vector<32xf32>
    %226 = vector.shape_cast %225 : vector<32xf32> to vector<32x1xf32>
    %227 = tpu.reciprocal %226 {approx = true} : vector<32x1xf32> -> vector<32x1xf32>
    %228 = vector.broadcast %227 : vector<32x1xf32> to vector<32x32xf32>
    %229 = arith.mulf %224, %228 : vector<32x32xf32>
    %230 = arith.truncf %229 : vector<32x32xf32> to vector<32x32xbf16>
    %231 = arith.truncf %214 : vector<32x32xf32> to vector<32x32xbf16>
    %cst_85 = arith.constant dense<0.000000e+00> : vector<32x32xf32>
    %232 = tpu.matmul %230, %231, %cst_85 {dimension_numbers = #tpu.dot_dimension_numbers<[1], [0], [0], [1], [0, 0, 1, 1], [], []>} : vector<32x32xbf16>, vector<32x32xbf16>, vector<32x32xf32> -> vector<32x32xf32>
    %233 = tpu.concatenate %211, %232 in 1 : vector<32x32xf32>, vector<32x32xf32> -> vector<32x64xf32>
    %c0_86 = arith.constant 0 : index
    %c704 = arith.constant 704 : index
    %c0_87 = arith.constant 0 : index
    %234 = vector.load %arg5[%c0_86, %c704, %c0_87] : memref<1x1536x256xbf16, #tpu.memory_space<vmem>>, vector<1x64x64xbf16>
    %235 = vector.shape_cast %234 : vector<1x64x64xbf16> to vector<64x64xbf16>
    %236 = arith.truncf %233 : vector<32x64xf32> to vector<32x64xbf16>
    %cst_88 = arith.constant dense<0.000000e+00> : vector<32x64xf32>
    %237 = tpu.matmul %236, %235, %cst_88 {dimension_numbers = #tpu.dot_dimension_numbers<[1], [0], [0], [1], [0, 0, 1, 1], [], []>} : vector<32x64xbf16>, vector<64x64xbf16>, vector<32x64xf32> -> vector<32x64xf32>
    %238 = arith.addf %158, %237 : vector<32x64xf32>
    %c0_89 = arith.constant 0 : index
    %c128 = arith.constant 128 : index
    %c0_90 = arith.constant 0 : index
    %239 = vector.load %arg6[%c0_89, %c128, %c0_90] : memref<1x232x256xf32, #tpu.memory_space<vmem>>, vector<1x1x64xf32>
    %240 = vector.shape_cast %239 : vector<1x1x64xf32> to vector<1x64xf32>
    %241 = vector.broadcast %240 : vector<1x64xf32> to vector<32x64xf32>
    %242 = arith.addf %238, %241 : vector<32x64xf32>
    %c0_91 = arith.constant 0 : index
    %c136 = arith.constant 136 : index
    %c0_92 = arith.constant 0 : index
    %243 = vector.load %arg6[%c0_91, %c136, %c0_92] : memref<1x232x256xf32, #tpu.memory_space<vmem>>, vector<1x1x64xf32>
    %244 = vector.shape_cast %243 : vector<1x1x64xf32> to vector<1x64xf32>
    %c0_93 = arith.constant 0 : index
    %c144 = arith.constant 144 : index
    %c0_94 = arith.constant 0 : index
    %245 = vector.load %arg6[%c0_93, %c144, %c0_94] : memref<1x232x256xf32, #tpu.memory_space<vmem>>, vector<1x1x64xf32>
    %246 = vector.shape_cast %245 : vector<1x1x64xf32> to vector<1x64xf32>
    %cst_95 = arith.constant dense<0.000000e+00> : vector<32xf32>
    %247 = vector.multi_reduction <add>, %242, %cst_95 [1] : vector<32x64xf32> to vector<32xf32>
    %248 = vector.shape_cast %247 : vector<32xf32> to vector<32x1xf32>
    %cst_96 = arith.constant 6.400000e+01 : f32
    %249 = vector.broadcast %cst_96 : f32 to vector<32x1xf32>
    %250 = arith.divf %248, %249 : vector<32x1xf32>
    %251 = vector.broadcast %250 : vector<32x1xf32> to vector<32x64xf32>
    %252 = arith.subf %242, %251 : vector<32x64xf32>
    %253 = arith.mulf %252, %252 : vector<32x64xf32>
    %cst_97 = arith.constant dense<0.000000e+00> : vector<32xf32>
    %254 = vector.multi_reduction <add>, %253, %cst_97 [1] : vector<32x64xf32> to vector<32xf32>
    %255 = vector.shape_cast %254 : vector<32xf32> to vector<32x1xf32>
    %cst_98 = arith.constant 6.400000e+01 : f32
    %256 = vector.broadcast %cst_98 : f32 to vector<32x1xf32>
    %257 = arith.divf %255, %256 : vector<32x1xf32>
    %cst_99 = arith.constant 9.99999997E-7 : f32
    %258 = vector.broadcast %cst_99 : f32 to vector<32x1xf32>
    %259 = arith.addf %257, %258 : vector<32x1xf32>
    %260 = math.rsqrt %259 : vector<32x1xf32>
    %261 = vector.broadcast %260 : vector<32x1xf32> to vector<32x64xf32>
    %262 = arith.mulf %252, %261 : vector<32x64xf32>
    %263 = vector.broadcast %244 : vector<1x64xf32> to vector<32x64xf32>
    %264 = arith.mulf %262, %263 : vector<32x64xf32>
    %265 = vector.broadcast %246 : vector<1x64xf32> to vector<32x64xf32>
    %266 = arith.addf %264, %265 : vector<32x64xf32>
    %c0_100 = arith.constant 0 : index
    %c768 = arith.constant 768 : index
    %c0_101 = arith.constant 0 : index
    %267 = vector.load %arg5[%c0_100, %c768, %c0_101] : memref<1x1536x256xbf16, #tpu.memory_space<vmem>>, vector<1x64x256xbf16>
    %268 = vector.shape_cast %267 : vector<1x64x256xbf16> to vector<64x256xbf16>
    %269 = arith.truncf %266 : vector<32x64xf32> to vector<32x64xbf16>
    %cst_102 = arith.constant dense<0.000000e+00> : vector<32x256xf32>
    %270 = tpu.matmul %269, %268, %cst_102 {dimension_numbers = #tpu.dot_dimension_numbers<[1], [0], [0], [1], [0, 0, 1, 1], [], []>} : vector<32x64xbf16>, vector<64x256xbf16>, vector<32x256xf32> -> vector<32x256xf32>
    %c0_103 = arith.constant 0 : index
    %c152 = arith.constant 152 : index
    %c0_104 = arith.constant 0 : index
    %271 = vector.load %arg6[%c0_103, %c152, %c0_104] : memref<1x232x256xf32, #tpu.memory_space<vmem>>, vector<1x1x256xf32>
    %272 = vector.shape_cast %271 : vector<1x1x256xf32> to vector<1x256xf32>
    %273 = vector.broadcast %272 : vector<1x256xf32> to vector<32x256xf32>
    %274 = arith.addf %270, %273 : vector<32x256xf32>
    %cst_105 = arith.constant 5.000000e-01 : f32
    %275 = vector.broadcast %cst_105 : f32 to vector<32x256xf32>
    %276 = arith.mulf %275, %274 : vector<32x256xf32>
    %cst_106 = arith.constant 4.471500e-02 : f32
    %277 = vector.broadcast %cst_106 : f32 to vector<32x256xf32>
    %278 = arith.mulf %277, %274 : vector<32x256xf32>
    %279 = arith.mulf %278, %274 : vector<32x256xf32>
    %280 = arith.mulf %279, %274 : vector<32x256xf32>
    %281 = arith.addf %274, %280 : vector<32x256xf32>
    %cst_107 = arith.constant 0.797884583 : f32
    %282 = vector.broadcast %cst_107 : f32 to vector<32x256xf32>
    %283 = arith.mulf %282, %281 : vector<32x256xf32>
    %284 = math.tanh %283 : vector<32x256xf32>
    %cst_108 = arith.constant 1.000000e+00 : f32
    %285 = vector.broadcast %cst_108 : f32 to vector<32x256xf32>
    %286 = arith.addf %285, %284 : vector<32x256xf32>
    %287 = arith.mulf %276, %286 : vector<32x256xf32>
    %c0_109 = arith.constant 0 : index
    %c832 = arith.constant 832 : index
    %c0_110 = arith.constant 0 : index
    %288 = vector.load %arg5[%c0_109, %c832, %c0_110] : memref<1x1536x256xbf16, #tpu.memory_space<vmem>>, vector<1x256x64xbf16>
    %289 = vector.shape_cast %288 : vector<1x256x64xbf16> to vector<256x64xbf16>
    %290 = arith.truncf %287 : vector<32x256xf32> to vector<32x256xbf16>
    %cst_111 = arith.constant dense<0.000000e+00> : vector<32x64xf32>
    %291 = tpu.matmul %290, %289, %cst_111 {dimension_numbers = #tpu.dot_dimension_numbers<[1], [0], [0], [1], [0, 0, 1, 1], [], []>} : vector<32x256xbf16>, vector<256x64xbf16>, vector<32x64xf32> -> vector<32x64xf32>
    %292 = arith.addf %242, %291 : vector<32x64xf32>
    %c0_112 = arith.constant 0 : index
    %c160 = arith.constant 160 : index
    %c0_113 = arith.constant 0 : index
    %293 = vector.load %arg6[%c0_112, %c160, %c0_113] : memref<1x232x256xf32, #tpu.memory_space<vmem>>, vector<1x1x64xf32>
    %294 = vector.shape_cast %293 : vector<1x1x64xf32> to vector<1x64xf32>
    %295 = vector.broadcast %294 : vector<1x64xf32> to vector<32x64xf32>
    %296 = arith.addf %292, %295 : vector<32x64xf32>
    %c0_114 = arith.constant 0 : index
    %c1088 = arith.constant 1088 : index
    %c0_115 = arith.constant 0 : index
    %297 = vector.load %arg5[%c0_114, %c1088, %c0_115] : memref<1x1536x256xbf16, #tpu.memory_space<vmem>>, vector<1x64x32xbf16>
    %298 = vector.shape_cast %297 : vector<1x64x32xbf16> to vector<64x32xbf16>
    %299 = arith.truncf %296 : vector<32x64xf32> to vector<32x64xbf16>
    %cst_116 = arith.constant dense<0.000000e+00> : vector<32x32xf32>
    %300 = tpu.matmul %299, %298, %cst_116 {dimension_numbers = #tpu.dot_dimension_numbers<[1], [0], [0], [1], [0, 0, 1, 1], [], []>} : vector<32x64xbf16>, vector<64x32xbf16>, vector<32x32xf32> -> vector<32x32xf32>
    %c0_117 = arith.constant 0 : index
    %c168 = arith.constant 168 : index
    %c0_118 = arith.constant 0 : index
    %301 = vector.load %arg6[%c0_117, %c168, %c0_118] : memref<1x232x256xf32, #tpu.memory_space<vmem>>, vector<1x1x32xf32>
    %302 = vector.shape_cast %301 : vector<1x1x32xf32> to vector<1x32xf32>
    %c0_119 = arith.constant 0 : index
    %c176 = arith.constant 176 : index
    %c0_120 = arith.constant 0 : index
    %303 = vector.load %arg6[%c0_119, %c176, %c0_120] : memref<1x232x256xf32, #tpu.memory_space<vmem>>, vector<1x1x32xf32>
    %304 = vector.shape_cast %303 : vector<1x1x32xf32> to vector<1x32xf32>
    %cst_121 = arith.constant dense<0.000000e+00> : vector<32xf32>
    %305 = vector.multi_reduction <add>, %300, %cst_121 [1] : vector<32x32xf32> to vector<32xf32>
    %306 = vector.shape_cast %305 : vector<32xf32> to vector<32x1xf32>
    %cst_122 = arith.constant 3.200000e+01 : f32
    %307 = vector.broadcast %cst_122 : f32 to vector<32x1xf32>
    %308 = arith.divf %306, %307 : vector<32x1xf32>
    %309 = vector.broadcast %308 : vector<32x1xf32> to vector<32x32xf32>
    %310 = arith.subf %300, %309 : vector<32x32xf32>
    %311 = arith.mulf %310, %310 : vector<32x32xf32>
    %cst_123 = arith.constant dense<0.000000e+00> : vector<32xf32>
    %312 = vector.multi_reduction <add>, %311, %cst_123 [1] : vector<32x32xf32> to vector<32xf32>
    %313 = vector.shape_cast %312 : vector<32xf32> to vector<32x1xf32>
    %cst_124 = arith.constant 3.200000e+01 : f32
    %314 = vector.broadcast %cst_124 : f32 to vector<32x1xf32>
    %315 = arith.divf %313, %314 : vector<32x1xf32>
    %cst_125 = arith.constant 9.99999997E-7 : f32
    %316 = vector.broadcast %cst_125 : f32 to vector<32x1xf32>
    %317 = arith.addf %315, %316 : vector<32x1xf32>
    %318 = math.rsqrt %317 : vector<32x1xf32>
    %319 = vector.broadcast %318 : vector<32x1xf32> to vector<32x32xf32>
    %320 = arith.mulf %310, %319 : vector<32x32xf32>
    %321 = vector.broadcast %302 : vector<1x32xf32> to vector<32x32xf32>
    %322 = arith.mulf %320, %321 : vector<32x32xf32>
    %323 = vector.broadcast %304 : vector<1x32xf32> to vector<32x32xf32>
    %324 = arith.addf %322, %323 : vector<32x32xf32>
    %c0_126 = arith.constant 0 : index
    %c0_127 = arith.constant 0 : index
    %325 = vector.load %arg4[%c0_126, %c0_127] : memref<72x32xf32, #tpu.memory_space<vmem>>, vector<72x32xf32>
    %326 = arith.truncf %325 : vector<72x32xf32> to vector<72x32xbf16>
    %327 = arith.truncf %324 : vector<32x32xf32> to vector<32x32xbf16>
    %cst_128 = arith.constant dense<0.000000e+00> : vector<72x32xf32>
    %328 = tpu.matmul %326, %327, %cst_128 {dimension_numbers = #tpu.dot_dimension_numbers<[1], [0], [0], [1], [0, 0, 1, 1], [], []>} : vector<72x32xbf16>, vector<32x32xbf16>, vector<72x32xf32> -> vector<72x32xf32>
    %329 = vector.extract_strided_slice %328 {offsets = [0, 0], sizes = [8, 32], strides = [1, 1]} : vector<72x32xf32> to vector<8x32xf32>
    %330 = vector.extract_strided_slice %328 {offsets = [8, 0], sizes = [8, 32], strides = [1, 1]} : vector<72x32xf32> to vector<8x32xf32>
    %331 = vector.extract_strided_slice %328 {offsets = [16, 0], sizes = [8, 32], strides = [1, 1]} : vector<72x32xf32> to vector<8x32xf32>
    %332 = vector.extract_strided_slice %328 {offsets = [24, 0], sizes = [8, 32], strides = [1, 1]} : vector<72x32xf32> to vector<8x32xf32>
    %333 = vector.extract_strided_slice %328 {offsets = [32, 0], sizes = [8, 32], strides = [1, 1]} : vector<72x32xf32> to vector<8x32xf32>
    %334 = vector.extract_strided_slice %328 {offsets = [40, 0], sizes = [8, 32], strides = [1, 1]} : vector<72x32xf32> to vector<8x32xf32>
    %335 = vector.extract_strided_slice %328 {offsets = [48, 0], sizes = [8, 32], strides = [1, 1]} : vector<72x32xf32> to vector<8x32xf32>
    %336 = vector.extract_strided_slice %328 {offsets = [56, 0], sizes = [8, 32], strides = [1, 1]} : vector<72x32xf32> to vector<8x32xf32>
    %337 = vector.extract_strided_slice %328 {offsets = [64, 0], sizes = [8, 32], strides = [1, 1]} : vector<72x32xf32> to vector<8x32xf32>
    %338 = tpu.concatenate %329, %330, %331, %332, %333, %334, %335, %336, %337 in 1 : vector<8x32xf32>, vector<8x32xf32>, vector<8x32xf32>, vector<8x32xf32>, vector<8x32xf32>, vector<8x32xf32>, vector<8x32xf32>, vector<8x32xf32>, vector<8x32xf32> -> vector<8x288xf32>
    %c0_129 = arith.constant 0 : index
    %c1152 = arith.constant 1152 : index
    %c0_130 = arith.constant 0 : index
    %339 = vector.load %arg5[%c0_129, %c1152, %c0_130] : memref<1x1536x256xbf16, #tpu.memory_space<vmem>>, vector<1x288x32xbf16>
    %340 = vector.shape_cast %339 : vector<1x288x32xbf16> to vector<288x32xbf16>
    %341 = arith.truncf %338 : vector<8x288xf32> to vector<8x288xbf16>
    %cst_131 = arith.constant dense<0.000000e+00> : vector<8x32xf32>
    %342 = tpu.matmul %341, %340, %cst_131 {dimension_numbers = #tpu.dot_dimension_numbers<[1], [0], [0], [1], [0, 0, 1, 1], [], []>} : vector<8x288xbf16>, vector<288x32xbf16>, vector<8x32xf32> -> vector<8x32xf32>
    %c0_132 = arith.constant 0 : index
    %c184 = arith.constant 184 : index
    %c0_133 = arith.constant 0 : index
    %343 = vector.load %arg6[%c0_132, %c184, %c0_133] : memref<1x232x256xf32, #tpu.memory_space<vmem>>, vector<1x1x32xf32>
    %344 = vector.shape_cast %343 : vector<1x1x32xf32> to vector<1x32xf32>
    %c0_134 = arith.constant 0 : index
    %c192_135 = arith.constant 192 : index
    %c0_136 = arith.constant 0 : index
    %345 = vector.load %arg6[%c0_134, %c192_135, %c0_136] : memref<1x232x256xf32, #tpu.memory_space<vmem>>, vector<1x1x32xf32>
    %346 = vector.shape_cast %345 : vector<1x1x32xf32> to vector<1x32xf32>
    %cst_137 = arith.constant dense<0.000000e+00> : vector<8xf32>
    %347 = vector.multi_reduction <add>, %342, %cst_137 [1] : vector<8x32xf32> to vector<8xf32>
    %348 = vector.shape_cast %347 : vector<8xf32> to vector<8x1xf32>
    %cst_138 = arith.constant 3.200000e+01 : f32
    %349 = vector.broadcast %cst_138 : f32 to vector<8x1xf32>
    %350 = arith.divf %348, %349 : vector<8x1xf32>
    %351 = vector.broadcast %350 : vector<8x1xf32> to vector<8x32xf32>
    %352 = arith.subf %342, %351 : vector<8x32xf32>
    %353 = arith.mulf %352, %352 : vector<8x32xf32>
    %cst_139 = arith.constant dense<0.000000e+00> : vector<8xf32>
    %354 = vector.multi_reduction <add>, %353, %cst_139 [1] : vector<8x32xf32> to vector<8xf32>
    %355 = vector.shape_cast %354 : vector<8xf32> to vector<8x1xf32>
    %cst_140 = arith.constant 3.200000e+01 : f32
    %356 = vector.broadcast %cst_140 : f32 to vector<8x1xf32>
    %357 = arith.divf %355, %356 : vector<8x1xf32>
    %cst_141 = arith.constant 9.99999997E-7 : f32
    %358 = vector.broadcast %cst_141 : f32 to vector<8x1xf32>
    %359 = arith.addf %357, %358 : vector<8x1xf32>
    %360 = math.rsqrt %359 : vector<8x1xf32>
    %361 = vector.broadcast %360 : vector<8x1xf32> to vector<8x32xf32>
    %362 = arith.mulf %352, %361 : vector<8x32xf32>
    %363 = vector.broadcast %344 : vector<1x32xf32> to vector<8x32xf32>
    %364 = arith.mulf %362, %363 : vector<8x32xf32>
    %365 = vector.broadcast %346 : vector<1x32xf32> to vector<8x32xf32>
    %366 = arith.addf %364, %365 : vector<8x32xf32>
    %c0_142 = arith.constant 0 : index
    %c1440 = arith.constant 1440 : index
    %c0_143 = arith.constant 0 : index
    %367 = vector.load %arg5[%c0_142, %c1440, %c0_143] : memref<1x1536x256xbf16, #tpu.memory_space<vmem>>, vector<1x32x64xbf16>
    %368 = vector.shape_cast %367 : vector<1x32x64xbf16> to vector<32x64xbf16>
    %369 = arith.truncf %366 : vector<8x32xf32> to vector<8x32xbf16>
    %cst_144 = arith.constant dense<0.000000e+00> : vector<8x64xf32>
    %370 = tpu.matmul %369, %368, %cst_144 {dimension_numbers = #tpu.dot_dimension_numbers<[1], [0], [0], [1], [0, 0, 1, 1], [], []>} : vector<8x32xbf16>, vector<32x64xbf16>, vector<8x64xf32> -> vector<8x64xf32>
    %c0_145 = arith.constant 0 : index
    %c200 = arith.constant 200 : index
    %c0_146 = arith.constant 0 : index
    %371 = vector.load %arg6[%c0_145, %c200, %c0_146] : memref<1x232x256xf32, #tpu.memory_space<vmem>>, vector<1x1x64xf32>
    %372 = vector.shape_cast %371 : vector<1x1x64xf32> to vector<1x64xf32>
    %373 = vector.broadcast %372 : vector<1x64xf32> to vector<8x64xf32>
    %374 = arith.addf %370, %373 : vector<8x64xf32>
    %c0_147 = arith.constant 0 : index
    %c208 = arith.constant 208 : index
    %c0_148 = arith.constant 0 : index
    %375 = vector.load %arg6[%c0_147, %c208, %c0_148] : memref<1x232x256xf32, #tpu.memory_space<vmem>>, vector<1x1x64xf32>
    %376 = vector.shape_cast %375 : vector<1x1x64xf32> to vector<1x64xf32>
    %c0_149 = arith.constant 0 : index
    %c216 = arith.constant 216 : index
    %c0_150 = arith.constant 0 : index
    %377 = vector.load %arg6[%c0_149, %c216, %c0_150] : memref<1x232x256xf32, #tpu.memory_space<vmem>>, vector<1x1x64xf32>
    %378 = vector.shape_cast %377 : vector<1x1x64xf32> to vector<1x64xf32>
    %cst_151 = arith.constant dense<0.000000e+00> : vector<8xf32>
    %379 = vector.multi_reduction <add>, %374, %cst_151 [1] : vector<8x64xf32> to vector<8xf32>
    %380 = vector.shape_cast %379 : vector<8xf32> to vector<8x1xf32>
    %cst_152 = arith.constant 6.400000e+01 : f32
    %381 = vector.broadcast %cst_152 : f32 to vector<8x1xf32>
    %382 = arith.divf %380, %381 : vector<8x1xf32>
    %383 = vector.broadcast %382 : vector<8x1xf32> to vector<8x64xf32>
    %384 = arith.subf %374, %383 : vector<8x64xf32>
    %385 = arith.mulf %384, %384 : vector<8x64xf32>
    %cst_153 = arith.constant dense<0.000000e+00> : vector<8xf32>
    %386 = vector.multi_reduction <add>, %385, %cst_153 [1] : vector<8x64xf32> to vector<8xf32>
    %387 = vector.shape_cast %386 : vector<8xf32> to vector<8x1xf32>
    %cst_154 = arith.constant 6.400000e+01 : f32
    %388 = vector.broadcast %cst_154 : f32 to vector<8x1xf32>
    %389 = arith.divf %387, %388 : vector<8x1xf32>
    %cst_155 = arith.constant 9.99999997E-7 : f32
    %390 = vector.broadcast %cst_155 : f32 to vector<8x1xf32>
    %391 = arith.addf %389, %390 : vector<8x1xf32>
    %392 = math.rsqrt %391 : vector<8x1xf32>
    %393 = vector.broadcast %392 : vector<8x1xf32> to vector<8x64xf32>
    %394 = arith.mulf %384, %393 : vector<8x64xf32>
    %395 = vector.broadcast %376 : vector<1x64xf32> to vector<8x64xf32>
    %396 = arith.mulf %394, %395 : vector<8x64xf32>
    %397 = vector.broadcast %378 : vector<1x64xf32> to vector<8x64xf32>
    %398 = arith.addf %396, %397 : vector<8x64xf32>
    %c0_156 = arith.constant 0 : index
    %c1472 = arith.constant 1472 : index
    %c0_157 = arith.constant 0 : index
    %399 = vector.load %arg5[%c0_156, %c1472, %c0_157] : memref<1x1536x256xbf16, #tpu.memory_space<vmem>>, vector<1x64x64xbf16>
    %400 = vector.shape_cast %399 : vector<1x64x64xbf16> to vector<64x64xbf16>
    %401 = arith.truncf %398 : vector<8x64xf32> to vector<8x64xbf16>
    %cst_158 = arith.constant dense<0.000000e+00> : vector<8x64xf32>
    %402 = tpu.matmul %401, %400, %cst_158 {dimension_numbers = #tpu.dot_dimension_numbers<[1], [0], [0], [1], [0, 0, 1, 1], [], []>} : vector<8x64xbf16>, vector<64x64xbf16>, vector<8x64xf32> -> vector<8x64xf32>
    %c0_159 = arith.constant 0 : index
    %c224 = arith.constant 224 : index
    %c0_160 = arith.constant 0 : index
    %403 = vector.load %arg6[%c0_159, %c224, %c0_160] : memref<1x232x256xf32, #tpu.memory_space<vmem>>, vector<1x1x64xf32>
    %404 = vector.shape_cast %403 : vector<1x1x64xf32> to vector<1x64xf32>
    %405 = vector.broadcast %404 : vector<1x64xf32> to vector<8x64xf32>
    %406 = arith.addf %402, %405 : vector<8x64xf32>
    %c0_161 = arith.constant 0 : index
    %c0_162 = arith.constant 0 : index
    %c0_163 = arith.constant 0 : index
    %407 = vector.load %arg7[%c0_161, %c0_162, %c0_163] : memref<1x8x64xf32, #tpu.memory_space<vmem>>, vector<1x8x64xf32>
    %408 = vector.shape_cast %407 : vector<1x8x64xf32> to vector<8x64xf32>
    %409 = vector.shape_cast %406 : vector<8x64xf32> to vector<1x8x64xf32>
    tpu.vector_store %arg7[%c0_161, %c0_162, %c0_163], %409 {strides = array<i32>} : memref<1x8x64xf32, #tpu.memory_space<vmem>>, vector<1x8x64xf32>,
    return
  }
  func.func @transform_0(%arg0: i32) -> (i32, i32) {
    %c0_i32 = arith.constant 0 : i32
    %c0_i32_0 = arith.constant 0 : i32
    %c0_i32_1 = arith.constant 0 : i32
    return %c0_i32, %c0_i32_0 : i32, i32
  }
  func.func @transform_1(%arg0: i32) -> (i32, i32) {
    %c0_i32 = arith.constant 0 : i32
    %c0_i32_0 = arith.constant 0 : i32
    %c0_i32_1 = arith.constant 0 : i32
    return %c0_i32, %c0_i32_0 : i32, i32
  }
  func.func @transform_2(%arg0: i32) -> (i32, i32) {
    %c0_i32 = arith.constant 0 : i32
    %c0_i32_0 = arith.constant 0 : i32
    %c0_i32_1 = arith.constant 0 : i32
    return %c0_i32, %c0_i32_0 : i32, i32
  }
  func.func @transform_3(%arg0: i32) -> (i32, i32) {
    %c0_i32 = arith.constant 0 : i32
    %c0_i32_0 = arith.constant 0 : i32
    %c0_i32_1 = arith.constant 0 : i32
    return %c0_i32, %c0_i32_0 : i32, i32
  }
  func.func @transform_4(%arg0: i32) -> (i32, i32, i32) {
    %c0_i32 = arith.constant 0 : i32
    %c0_i32_0 = arith.constant 0 : i32
    %c0_i32_1 = arith.constant 0 : i32
    return %arg0, %c0_i32, %c0_i32_0 : i32, i32, i32
  }
  func.func @transform_5(%arg0: i32) -> (i32, i32, i32) {
    %c0_i32 = arith.constant 0 : i32
    %c0_i32_0 = arith.constant 0 : i32
    %c0_i32_1 = arith.constant 0 : i32
    return %arg0, %c0_i32, %c0_i32_0 : i32, i32, i32
  }
  func.func @transform_6(%arg0: i32) -> (i32, i32, i32) {
    %c0_i32 = arith.constant 0 : i32
    %c0_i32_0 = arith.constant 0 : i32
    %c0_i32_1 = arith.constant 0 : i32
    return %arg0, %c0_i32, %c0_i32_0 : i32, i32, i32
  }
}

module attributes {stable_mosaic.version = 11 : i64} {
  func.func @_loss_kernel(%arg0: memref<2x8x64xf32, #tpu.memory_space<vmem>>, %arg1: memref<1x1xf32, #tpu.memory_space<vmem>>) attributes {dimension_semantics = [], scalar_prefetch = 0 : i64, scratch_operands = 0 : i64, tpu.core_type = #tpu.core_type<tc>} {
    %c0 = arith.constant 0 : index
    %c0_0 = arith.constant 0 : index
    %c0_1 = arith.constant 0 : index
    %0 = vector.load %arg0[%c0, %c0_0, %c0_1] : memref<2x8x64xf32, #tpu.memory_space<vmem>>, vector<1x8x64xf32>
    %1 = vector.shape_cast %0 : vector<1x8x64xf32> to vector<8x64xf32>
    %c1 = arith.constant 1 : index
    %c0_2 = arith.constant 0 : index
    %c0_3 = arith.constant 0 : index
    %2 = vector.load %arg0[%c1, %c0_2, %c0_3] : memref<2x8x64xf32, #tpu.memory_space<vmem>>, vector<1x8x64xf32>
    %3 = vector.shape_cast %2 : vector<1x8x64xf32> to vector<8x64xf32>
    %cst = arith.constant dense<0xFF800000> : vector<8xf32>
    %4 = vector.multi_reduction <maximumf>, %1, %cst [1] : vector<8x64xf32> to vector<8xf32>
    %5 = vector.shape_cast %4 : vector<8xf32> to vector<8x1xf32>
    %6 = vector.broadcast %5 : vector<8x1xf32> to vector<8x64xf32>
    %7 = arith.subf %1, %6 : vector<8x64xf32>
    %cst_4 = arith.constant 2.000000e+01 : f32
    %8 = vector.broadcast %cst_4 : f32 to vector<8x64xf32>
    %9 = arith.mulf %8, %7 : vector<8x64xf32>
    %10 = math.exp %9 : vector<8x64xf32>
    %cst_5 = arith.constant 1.000000e+00 : f32
    %11 = vector.broadcast %cst_5 : f32 to vector<1x64xf32>
    %12 = vector.broadcast %11 : vector<1x64xf32> to vector<8x64xf32>
    %13 = arith.mulf %10, %12 : vector<8x64xf32>
    %cst_6 = arith.constant dense<0.000000e+00> : vector<8xf32>
    %14 = vector.multi_reduction <add>, %13, %cst_6 [1] : vector<8x64xf32> to vector<8xf32>
    %15 = vector.shape_cast %14 : vector<8xf32> to vector<8x1xf32>
    %cst_7 = arith.constant 1.000000e-30 : f32
    %16 = vector.broadcast %cst_7 : f32 to vector<8x1xf32>
    %17 = arith.addf %15, %16 : vector<8x1xf32>
    %cst_8 = arith.constant 1.000000e+00 : f32
    %18 = vector.broadcast %cst_8 : f32 to vector<8x1xf32>
    %19 = arith.divf %18, %17 : vector<8x1xf32>
    %20 = vector.broadcast %19 : vector<8x1xf32> to vector<8x64xf32>
    %21 = arith.mulf %10, %20 : vector<8x64xf32>
    %cst_9 = arith.constant dense<0.000000e+00> : vector<64xf32>
    %22 = vector.multi_reduction <add>, %21, %cst_9 [0] : vector<8x64xf32> to vector<64xf32>
    %23 = vector.shape_cast %22 : vector<64xf32> to vector<1x64xf32>
    %cst_10 = arith.constant 1.000000e-30 : f32
    %24 = vector.broadcast %cst_10 : f32 to vector<1x64xf32>
    %25 = arith.addf %23, %24 : vector<1x64xf32>
    %cst_11 = arith.constant 1.250000e-01 : f32
    %26 = vector.broadcast %cst_11 : f32 to vector<1x64xf32>
    %27 = arith.divf %26, %25 : vector<1x64xf32>
    %28 = vector.broadcast %27 : vector<1x64xf32> to vector<8x64xf32>
    %29 = arith.mulf %10, %28 : vector<8x64xf32>
    %cst_12 = arith.constant dense<0.000000e+00> : vector<8xf32>
    %30 = vector.multi_reduction <add>, %29, %cst_12 [1] : vector<8x64xf32> to vector<8xf32>
    %31 = vector.shape_cast %30 : vector<8xf32> to vector<8x1xf32>
    %cst_13 = arith.constant 1.000000e-30 : f32
    %32 = vector.broadcast %cst_13 : f32 to vector<8x1xf32>
    %33 = arith.addf %31, %32 : vector<8x1xf32>
    %cst_14 = arith.constant 1.000000e+00 : f32
    %34 = vector.broadcast %cst_14 : f32 to vector<8x1xf32>
    %35 = arith.divf %34, %33 : vector<8x1xf32>
    %36 = vector.broadcast %35 : vector<8x1xf32> to vector<8x64xf32>
    %37 = arith.mulf %10, %36 : vector<8x64xf32>
    %cst_15 = arith.constant dense<0.000000e+00> : vector<64xf32>
    %38 = vector.multi_reduction <add>, %37, %cst_15 [0] : vector<8x64xf32> to vector<64xf32>
    %39 = vector.shape_cast %38 : vector<64xf32> to vector<1x64xf32>
    %cst_16 = arith.constant 1.000000e-30 : f32
    %40 = vector.broadcast %cst_16 : f32 to vector<1x64xf32>
    %41 = arith.addf %39, %40 : vector<1x64xf32>
    %cst_17 = arith.constant 1.250000e-01 : f32
    %42 = vector.broadcast %cst_17 : f32 to vector<1x64xf32>
    %43 = arith.divf %42, %41 : vector<1x64xf32>
    %44 = vector.broadcast %43 : vector<1x64xf32> to vector<8x64xf32>
    %45 = arith.mulf %10, %44 : vector<8x64xf32>
    %cst_18 = arith.constant dense<0.000000e+00> : vector<8xf32>
    %46 = vector.multi_reduction <add>, %45, %cst_18 [1] : vector<8x64xf32> to vector<8xf32>
    %47 = vector.shape_cast %46 : vector<8xf32> to vector<8x1xf32>
    %cst_19 = arith.constant 1.000000e-30 : f32
    %48 = vector.broadcast %cst_19 : f32 to vector<8x1xf32>
    %49 = arith.addf %47, %48 : vector<8x1xf32>
    %cst_20 = arith.constant 1.000000e+00 : f32
    %50 = vector.broadcast %cst_20 : f32 to vector<8x1xf32>
    %51 = arith.divf %50, %49 : vector<8x1xf32>
    %52 = vector.broadcast %51 : vector<8x1xf32> to vector<8x64xf32>
    %53 = arith.mulf %10, %52 : vector<8x64xf32>
    %cst_21 = arith.constant dense<0.000000e+00> : vector<64xf32>
    %54 = vector.multi_reduction <add>, %53, %cst_21 [0] : vector<8x64xf32> to vector<64xf32>
    %55 = vector.shape_cast %54 : vector<64xf32> to vector<1x64xf32>
    %cst_22 = arith.constant 1.000000e-30 : f32
    %56 = vector.broadcast %cst_22 : f32 to vector<1x64xf32>
    %57 = arith.addf %55, %56 : vector<1x64xf32>
    %cst_23 = arith.constant 1.250000e-01 : f32
    %58 = vector.broadcast %cst_23 : f32 to vector<1x64xf32>
    %59 = arith.divf %58, %57 : vector<1x64xf32>
    %60 = vector.broadcast %51 : vector<8x1xf32> to vector<8x64xf32>
    %61 = arith.mulf %60, %10 : vector<8x64xf32>
    %62 = vector.broadcast %59 : vector<1x64xf32> to vector<8x64xf32>
    %63 = arith.mulf %61, %62 : vector<8x64xf32>
    %cst_24 = arith.constant dense<0xFF800000> : vector<8xf32>
    %64 = vector.multi_reduction <maximumf>, %3, %cst_24 [1] : vector<8x64xf32> to vector<8xf32>
    %65 = vector.shape_cast %64 : vector<8xf32> to vector<8x1xf32>
    %66 = vector.broadcast %65 : vector<8x1xf32> to vector<8x64xf32>
    %67 = arith.subf %3, %66 : vector<8x64xf32>
    %68 = math.exp %67 : vector<8x64xf32>
    %cst_25 = arith.constant dense<0.000000e+00> : vector<8xf32>
    %69 = vector.multi_reduction <add>, %68, %cst_25 [1] : vector<8x64xf32> to vector<8xf32>
    %70 = vector.shape_cast %69 : vector<8xf32> to vector<8x1xf32>
    %71 = math.log %70 : vector<8x1xf32>
    %72 = arith.addf %65, %71 : vector<8x1xf32>
    %cst_26 = arith.constant 0.000000e+00 : f32
    %73 = vector.broadcast %cst_26 : f32 to vector<8x64xf32>
    %74 = arith.subf %73, %63 : vector<8x64xf32>
    %75 = vector.broadcast %72 : vector<8x1xf32> to vector<8x64xf32>
    %76 = arith.subf %3, %75 : vector<8x64xf32>
    %77 = arith.mulf %74, %76 : vector<8x64xf32>
    %cst_27 = arith.constant dense<0.000000e+00> : vector<8xf32>
    %78 = vector.multi_reduction <add>, %77, %cst_27 [1] : vector<8x64xf32> to vector<8xf32>
    %79 = vector.shape_cast %78 : vector<8xf32> to vector<8x1xf32>
    %cst_28 = arith.constant dense<0.000000e+00> : vector<1xf32>
    %80 = vector.multi_reduction <add>, %79, %cst_28 [0] : vector<8x1xf32> to vector<1xf32>
    %81 = vector.shape_cast %80 : vector<1xf32> to vector<1x1xf32>
    %cst_29 = arith.constant 1.250000e-01 : f32
    %82 = vector.broadcast %cst_29 : f32 to vector<1x1xf32>
    %83 = arith.mulf %81, %82 : vector<1x1xf32>
    %c0_30 = arith.constant 0 : index
    %c0_31 = arith.constant 0 : index
    %84 = vector.load %arg1[%c0_30, %c0_31] : memref<1x1xf32, #tpu.memory_space<vmem>>, vector<1x1xf32>
    tpu.vector_store %arg1[%c0_30, %c0_31], %83 {strides = array<i32>} : memref<1x1xf32, #tpu.memory_space<vmem>>, vector<1x1xf32>,
    return
  }
}

</mosaic_0001>

<bundles_post_ra>
// kernel: _ibot_call.3
= control target key start
LH: loop header
LB: loop body
LE: loop exit
PB: predicated region body
PF: predicated region fallthrough
CT: control target
= control target key end

     0   :  { %vm12_vm0 = vcmask 523264   ;;  %s198_s0 = inlined_call_operand.vmem [shape: f32[2,8,64], index: 0, kind: input, shape index: {}]   ;;  %s199_s1 = inlined_call_operand.hbm [shape: f32[1,1], index: 1, kind: output, shape index: {}]  }
   0x1   :  { %v9_v0 = vld [vmem:[%s198_s0] sm:$0xff] }
   0x2   :  { %6 = vsyncpa [#allocation3], 0  ;;  %v13_v1 = vsel %vm12_vm0, %v9_v0, -inf  ;;  %v115_v23 = vld [vmem:[%s198_s0 + $0x8] sm:$0xff]  ;;  %s159_s0 = smov [#allocation2]   ;;  %vm99_vm1 = vcmask 0  }
   0x3   :  { %14 = vmax.xlane.f32.xlu0 %v13_v1  ;;  %v74_v25 = vsel %vm12_vm0, %v115_v23, -inf  ;;  %s107_s10 = sshll.u32 %s159_s0, 4  ;;  %s108_s10 = int_to_ptr.vmem [resolvable:$true] %s107_s10 }
   0x4   :  { %s135_s11 = scalar_lea.vmem %s108_s10, 16  ;;  %s139_s12 = scalar_lea.vmem %s108_s10, 32 }
   0x5   :  { %p136_p0 = scmp.ne.s32.totalorder %s108_s10, %s135_s11  ;;  %p140_p1 = scmp.lt.s32.totalorder %s108_s10, %s108_s10 }
   0x6   :  { %p141_p2 = scmp.lt.s32.totalorder %s139_s12, %s135_s11 }
   0x8   :  { %p142_p3 = por %p141_p2, %p140_p1 }
   0xa   :  { %p143_p4 = pnand %p142_p3, %p136_p0 }
  0x90   :  { %v15_v2 = vpop.xlane.xlu0 %14 }
  0x91   :  { %v16_v3 = vsub.f32 %v9_v0, %v15_v2 }
  0x93   :  { %v17_v4 = vmul.f32 20.0, %v16_v3 }
  0x95   :  { %v18_v5 = vmul.f32 1.442695, %v17_v4 }
  0x97   :  { %117 = vpow2.f32 %v18_v5 }
  0xa1   :  { %v118_v6 = vpop.eup %117 }
  0xa2   :  { %v20_v7 = vsel %vm12_vm0, %v118_v6, 0.0 }
  0xa3   :  { %21 = vadd.xlane.f32.xlu0 %v20_v7 }
 0x130   :  { %v22_v8 = vpop.xlane.xlu0 %21 }
 0x131   :  { %v23_v9 = vadd.f32 1e-30, %v22_v8 }
 0x133   :  { %119 = vrcp.f32 %v23_v9 }
 0x13d   :  { %v120_v10 = vpop.eup %119 }
 0x13e   :  { %v26_v11 = vmul.f32 %v120_v10, %v118_v6 }
 0x140   :  { %v27_v12 = vsel %vm12_vm0, %v26_v11, 0.0 }
 0x141   :  { %v28_v13 = vrot.slane %v27_v12, 4 }
 0x143   :  { %v29_v14 = vadd.f32 %v28_v13, %v27_v12 }
 0x145   :  { %v30_v15 = vrot.slane %v29_v14, 2 }
 0x147   :  { %v31_v16 = vadd.f32 %v30_v15, %v29_v14 }
 0x149   :  { %v32_v17 = vrot.slane %v31_v16, 1 }
 0x14b   :  { %v33_v18 = vadd.f32 %v32_v17, %v31_v16 }
 0x14d   :  { %v34_v19 = vadd.f32 1e-30, %v33_v18 }
 0x14f   :  { %121 = vrcp.f32 %v34_v19 }
 0x159   :  { %v122_v20 = vpop.eup %121 }
 0x15a   :  { %v36_v21 = vmul.f32 0.125, %v122_v20 }
 0x15c   :  { %v37_v22 = vmul.f32 %v118_v6, %v36_v21 }
 0x15e   :  { %v38_v24 = vsel %vm12_vm0, %v37_v22, 0.0 }
 0x15f   :  { %39 = vadd.xlane.f32.xlu1 %v38_v24 }
 0x163   :  { %75 = vmax.xlane.f32.xlu1 %v74_v25 }
 0x1ec   :  { %v40_v26 = vpop.xlane.xlu1 %39 }
 0x1ed   :  { %v41_v27 = vadd.f32 1e-30, %v40_v26 }
 0x1ef   :  { %123 = vrcp.f32 %v41_v27 }
 0x1f0   :  { %v76_v28 = vpop.xlane.xlu1 %75 }
 0x1f1   :  { %v77_v29 = vsub.f32 %v115_v23, %v76_v28 }
 0x1f3   :  { %v78_v30 = vmul.f32 1.442695, %v77_v29 }
 0x1f5   :  { %125 = vpow2.f32 %v78_v30 }
 0x1f9   :  { %v124_v31 = vpop.eup %123 }
 0x1fa   :  { %v44_v32 = vmul.f32 %v124_v31, %v118_v6 }
 0x1fc   :  { %v45_v33 = vsel %vm12_vm0, %v44_v32, 0.0 }
 0x1fd   :  { %v46_v34 = vrot.slane %v45_v33, 4 }
 0x1ff   :  { %v126_v35 = vpop.eup %125  ;;  %v47_v36 = vadd.f32 %v46_v34, %v45_v33 }
 0x200   :  { %v80_v37 = vsel %vm12_vm0, %v126_v35, 0.0 }
 0x201   :  { %81 = vadd.xlane.f32.xlu1 %v80_v37  ;;  %v48_v38 = vrot.slane %v47_v36, 2 }
 0x203   :  { %v49_v39 = vadd.f32 %v48_v38, %v47_v36 }
 0x205   :  { %v50_v40 = vrot.slane %v49_v39, 1 }
 0x207   :  { %v51_v41 = vadd.f32 %v50_v40, %v49_v39 }
 0x209   :  { %v52_v42 = vadd.f32 1e-30, %v51_v41 }
 0x20b   :  { %127 = vrcp.f32 %v52_v42 }
 0x215   :  { %v128_v43 = vpop.eup %127 }
 0x216   :  { %v54_v44 = vmul.f32 0.125, %v128_v43 }
 0x218   :  { %v55_v45 = vmul.f32 %v118_v6, %v54_v44 }
 0x21a   :  { %v56_v46 = vsel %vm12_vm0, %v55_v45, 0.0 }
 0x21b   :  { %57 = vadd.xlane.f32.xlu0 %v56_v46 }
 0x28e   :  { %v82_v55 = vpop.xlane.xlu1 %81 }
 0x2a8   :  { %v58_v47 = vpop.xlane.xlu0 %57 }
 0x2a9   :  { %v59_v48 = vadd.f32 1e-30, %v58_v47 }
 0x2ab   :  { %129 = vrcp.f32 %v59_v48 }
 0x2ac   :  { %131 = vlog2.f32 %v82_v55 }
 0x2b5   :  { %v130_v49 = vpop.eup %129 }
 0x2b6   :  { %v62_v50 = vmul.f32 %v130_v49, %v118_v6  ;;  %v132_v60 = vpop.eup %131 }
 0x2b7   :  { %v84_v61 = vmul.f32 0.6931472, %v132_v60 }
 0x2b8   :  { %v63_v51 = vsel %vm12_vm0, %v62_v50, 0.0 }
 0x2b9   :  { %v64_v52 = vrot.slane %v63_v51, 4  ;;  %v85_v63 = vadd.f32 %v84_v61, %v76_v28 }
 0x2bb   :  { %v65_v53 = vadd.f32 %v64_v52, %v63_v51  ;;  %v87_v3 = vsub.f32 %v115_v23, %v85_v63 }
 0x2bd   :  { %v66_v54 = vrot.slane %v65_v53, 2 }
 0x2bf   :  { %v67_v56 = vadd.f32 %v66_v54, %v65_v53 }
 0x2c1   :  { %v68_v57 = vrot.slane %v67_v56, 1 }
 0x2c3   :  { %v69_v58 = vadd.f32 %v68_v57, %v67_v56 }
 0x2c5   :  { %v70_v59 = vadd.f32 1e-30, %v69_v58 }
 0x2c7   :  { %133 = vrcp.f32 %v70_v59 }
 0x2d1   :  { %v134_v62 = vpop.eup %133 }
 0x2d2   :  { %v72_v0 = vmul.f32 0.125, %v134_v62 }
 0x2d4   :  { %v73_v1 = vmul.f32 %v72_v0, %v62_v50 }
 0x2d6   :  { %v86_v2 = vsub.f32 0.0, %v73_v1 }
 0x2d8   :  { %v88_v4 = vmul.f32 %v87_v3, %v86_v2 }
 0x2da   :  { %v89_v5 = vsel %vm12_vm0, %v88_v4, 0.0 }
 0x2db   :  { %90 = vadd.xlane.f32.xlu0 %v89_v5 }
 0x368   :  { %v91_v6 = vpop.xlane.xlu0 %90 }
 0x369   :  { %v92_v7 = vrot.slane %v91_v6, 4 }
 0x36b   :  { %v93_v8 = vadd.f32 %v92_v7, %v91_v6 }
 0x36d   :  { %v94_v9 = vrot.slane %v93_v8, 2 }
 0x36f   :  { %v95_v10 = vadd.f32 %v94_v9, %v93_v8 }
 0x371   :  { %v96_v11 = vrot.slane %v95_v10, 1 }
 0x373   :  { %v97_v12 = vadd.f32 %v96_v11, %v95_v10 }
 0x375   :  { %v98_v13 = vmul.f32 0.125, %v97_v12 }
 0x377   :  { %100 = vst.msk [vmem:[#allocation2] sm:$0x1] %vm99_vm1, %v98_v13 }
 0x378   :  { %146 = shalt.err (!%p143_p4)
}
 0x379   :  { %s147_s15 = scalar_lea.hbm %s199_s1, 16 }
 0x37a   :  { %p148_p5 = scmp.ne.s32.totalorder %s199_s1, %s147_s15  ;;  %p151_p6 = scmp.lt.u32.totalorder %s147_s15, %s199_s1 }
 0x37c   :  { %p153_p7 = pnand %p151_p6, %p148_p5 }
 0x37e   :  { %156 = shalt.err (!%p153_p7)
}
 0x37f   :  { %110 = dma.vmem_to_hbm [thread:$0]  %s108_s10, 16, %s199_s1, [#allocation3]  }
 0x380   :  { %157 = dma.done.wait [#allocation3], 16  }
 0x381   :  { %158 = vsyncadd [#allocation3], 4294967280 }
 0x382   :  { %114 = vsyncpa [#allocation3], 1 }

// kernel: _ibot_call.2
= control target key start
LH: loop header
LB: loop body
LE: loop exit
PB: predicated region body
PF: predicated region fallthrough
CT: control target
= control target key end

     0   :  { %s4448_s21 = smov 0   ;;  %s5188_s0 = inlined_call_operand.vmem [shape: bf16[32,192], index: 0, kind: input, shape index: {}]   ;;  %s5189_s1 = inlined_call_operand.vmem [shape: f32[32,64], index: 1, kind: input, shape index: {}]   ;;  %s5190_s2 = inlined_call_operand.vmem [shape: f32[32,32], index: 2, kind: input, shape index: {}]   ;;  %s5191_s3 = inlined_call_operand.vmem [shape: f32[72,32], index: 3, kind: input, shape index: {}]   ;;  %s5192_s4 = inlined_call_operand.vmem [shape: bf16[2,1536,256], index: 4, kind: input, shape index: {}]   ;;  %s5193_s5 = inlined_call_operand.vmem [shape: f32[2,232,256], index: 5, kind: input, shape index: {}]   ;;  %s5194_s6 = inlined_call_operand.vmem [shape: f32[2,8,64], index: 6, kind: output, shape index: {}]  }
   0x1 LB: > { %s4454_s22 = sadd.s32 4294967295, %s4405_s21   ;;  %p3586_p0 = scmp.ge.s32.totalorder %s4405_s21, 1  ;;  %s4405_s21 = sphi %s4448_s21, %s16_s21  }
   0x2   : > { %p222_p1 = scmp.lt.s32.totalorder %s4405_s21, 3 }
   0x4   : > { %p223_p2 = pnand %p3586_p0, %p222_p1 }
   0x5   : > { %p256_p3 = scmp.lt.s32.totalorder (!%p223_p2), %s4454_s22, 1  ;;  %v4407_v0 = vmov (!%p223_p2), 0   ;;  %v4135_v1 = vld [vmem:[%s5188_s0 + $0x4] ss:$8 sps:$4 sm:$0xff] (!%p223_p2)   ;;  %vm405_vm0 = vcmask (!%p223_p2), 523264   ;;  %p271_p4 = scmp.eq.s32.totalorder (!%p223_p2), %s4454_s22, 1 }
   0x6   : > { %226 = sbr.rel (%p223_p2) target bundleno = 9040 (0x2350), region = 44  ;;  %412 = vmatprep.subr.bf16.mxu0 (!%p223_p2), %v4407_v0  ;;  %642 = vmatprep.mubr.bf16.mxu1 (!%p223_p2), %v4407_v0  ;;  %v4133_v14 = vld [vmem:[%s5188_s0] ss:$8 sps:$4 sm:$0xff] (!%p223_p2)   ;;  %v4136_v15 = vld [vmem:[%s5188_s0 + $0x14] ss:$8 sps:$4 sm:$0xff] (!%p223_p2)   ;;  %s4408_s28 = smov (!%p223_p2), 64  }
   0x7   : > { %3606 = vmatprep.mubr.msk.bf16.mxu0 (!%p223_p2), %vm405_vm0, %v4135_v1  ;;  %v4138_v16 = vld [vmem:[%s5188_s0 + $0x10] ss:$8 sps:$4 sm:$0xff] (!%p223_p2)   ;;  %v278_v17 = vld [vmem:[%s5189_s1] sm:$0xff] (!%p223_p2)  ;;  %v279_v19 = vld [vmem:[%s5189_s1 + $0x8] sm:$0xff] (!%p223_p2)  ;;  %vm715_vm5 = vcmask (!%p223_p2), 261120   ;;  %s4410_s15 = smov (!%p223_p2), 96  }
   0x8   : > { %v280_v24 = vld [vmem:[%s5189_s1 + $0x10] sm:$0xff] (!%p223_p2)  ;;  %v281_v29 = vld [vmem:[%s5189_s1 + $0x18] sm:$0xff] (!%p223_p2)  ;;  %vm4412_vm6 = vmmov (!%p223_p2), 0   ;;  %vm3109_vm7 = vcmask (!%p223_p2), 785408  }
   0xd   : > { %s4465_s25 = scalar_select %p256_p3, %s4454_s22, 1 }
   0xe   : > { %s272_s12 = scalar_select %p271_p4, 1, 0 }
   0xf   : > { %s4050_s26 = smul.u32 1536, %s4465_s25 }
  0x10   : > { %s273_s13 = scvt.s32.f32 %s272_s12  ;;  %s4051_s14 = smul.u32 464, %s4465_s25 }
  0x11   : > { %s4472_s29 = scalar_lea.vmem %s5192_s4, %s4050_s26 }
  0x12   : > { %v4121_v2 = vld [vmem:[%s4472_s29] ss:$8 sps:$4 sm:$0xff]   ;;  %v4122_v3 = vld [vmem:[%s4472_s29 + $0x10] ss:$8 sps:$4 sm:$0xff]   ;;  %v282_v18 = vstv %s273_s13  ;;  %s4518_s23 = scalar_lea.vmem %s5193_s5, %s4051_s14  ;;  %s4409_s14 = smov 32  }
  0x13   : > { %413 = vmatpush1.bf16.msra.mxu0 %v4121_v2  ;;  %v4123_v4 = vld [vmem:[%s4472_s29 + $0x20] ss:$8 sps:$4 sm:$0xff]   ;;  %v4124_v5 = vld [vmem:[%s4472_s29 + $0x30] ss:$8 sps:$4 sm:$0xff]   ;;  %v283_v20 = vmul.f32 %v282_v18, %v278_v17  ;;  %v284_v21 = vmul.f32 %v282_v18, %v279_v19  ;;  %v285_v32 = vmul.f32 %v282_v18, %v280_v24  ;;  %v286_v37 = vmul.f32 %v282_v18, %v281_v29 }
  0x14   : > { %414 = vmatprep.subr.bf16.mxu0 %v4407_v0  ;;  %v4125_v6 = vld [vmem:[%s4472_s29 + $0x40] ss:$8 sps:$4 sm:$0xff]   ;;  %v4126_v7 = vld [vmem:[%s4472_s29 + $0x50] ss:$8 sps:$4 sm:$0xff]  }
  0x15   : > { %v4127_v8 = vld [vmem:[%s4472_s29 + $0x60] ss:$8 sps:$4 sm:$0xff]   ;;  %v4128_v9 = vld [vmem:[%s4472_s29 + $0x70] ss:$8 sps:$4 sm:$0xff]   ;;  %vm461_vm1 = vcmp.gt.f32.partialorder %v283_v20, 0.5  ;;  %vm462_vm2 = vcmp.gt.f32.partialorder %v284_v21, 0.5 }
  0x16   : > { %v4129_v10 = vld [vmem:[%s4472_s29 + $0x80] ss:$8 sps:$4 sm:$0xff]   ;;  %v4130_v11 = vld [vmem:[%s4472_s29 + $0x90] ss:$8 sps:$4 sm:$0xff]   ;;  %vm463_vm3 = vcmp.gt.f32.partialorder %v285_v32, 0.5  ;;  %vm464_vm4 = vcmp.gt.f32.partialorder %v286_v37, 0.5 }
  0x17   : > { %415 = vmatpush1.bf16.msra.mxu0 %v4122_v3  ;;  %v4131_v12 = vld [vmem:[%s4472_s29 + $0xa0] ss:$8 sps:$4 sm:$0xff]   ;;  %v4132_v13 = vld [vmem:[%s4472_s29 + $0xb0] ss:$8 sps:$4 sm:$0xff]  }
  0x18   : > { %416 = vmatprep.subr.bf16.mxu0 %v4407_v0  ;;  %v465_v22 = vld [vmem:[%s4518_s23 + $0x40] ss:$0 sm:$0xff]  ;;  %v471_v28 = vld [vmem:[%s4518_s23 + $0x10] sm:$0xff] }
  0x19   : > { %v470_v23 = vld [vmem:[%s4518_s23] sm:$0xff]  ;;  %v473_v43 = vld [vmem:[%s4518_s23 + $0x30] sm:$0xff] }
  0x1a   : > { %v472_v38 = vld [vmem:[%s4518_s23 + $0x20] sm:$0xff] }
  0x1b   : > { %417 = vmatpush1.bf16.msra.mxu0 %v4123_v4 }
  0x1c   : > { %418 = vmatprep.subr.bf16.mxu0 %v4407_v0 }
  0x1f   : > { %419 = vmatpush1.bf16.msra.mxu0 %v4124_v5 }
  0x20   : > { %420 = vmatprep.subr.bf16.mxu0 %v4407_v0 }
  0x23   : > { %421 = vmatpush1.bf16.msra.mxu0 %v4125_v6 }
  0x24   : > { %422 = vmatprep.subr.bf16.mxu0 %v4407_v0 }
  0x27   : > { %423 = vmatpush1.bf16.msra.mxu0 %v4126_v7 }
  0x28   : > { %424 = vmatprep.subr.bf16.mxu0 %v4407_v0 }
  0x2b   : > { %425 = vmatpush1.bf16.msra.mxu0 %v4127_v8  ;;  %v4139_v8 = vld [vmem:[%s4472_s29 + $0xc4] ss:$8 sps:$4 sm:$0xff]  }
  0x2c   : > { %426 = vmatprep.subr.bf16.mxu0 %v4407_v0  ;;  %610 = vmatprep.subr.bf16.mxu1 %v4139_v8 }
  0x2f   : > { %427 = vmatpush1.bf16.msra.mxu0 %v4128_v9  ;;  %v4141_v9 = vld [vmem:[%s4472_s29 + $0xc0] ss:$8 sps:$4 sm:$0xff]  }
  0x30   : > { %428 = vmatprep.subr.bf16.mxu0 %v4407_v0  ;;  %611 = vmatpush1.bf16.msra.mxu1 %v4141_v9 }
  0x33   : > { %429 = vmatpush1.bf16.msra.mxu0 %v4129_v10  ;;  %v4142_v10 = vld [vmem:[%s4472_s29 + $0xd4] ss:$8 sps:$4 sm:$0xff]  }
  0x34   : > { %430 = vmatprep.subr.bf16.mxu0 %v4407_v0  ;;  %612 = vmatprep.subr.bf16.mxu1 %v4142_v10 }
  0x37   : > { %431 = vmatpush1.bf16.msra.mxu0 %v4130_v11  ;;  %v4144_v11 = vld [vmem:[%s4472_s29 + $0xd0] ss:$8 sps:$4 sm:$0xff]  }
  0x38   : > { %432 = vmatprep.subr.bf16.mxu0 %v4407_v0  ;;  %613 = vmatpush1.bf16.msra.mxu1 %v4144_v11 }
  0x3b   : > { %433 = vmatpush1.bf16.msra.mxu0 %v4131_v12  ;;  %v4145_v12 = vld [vmem:[%s4472_s29 + $0xe4] ss:$8 sps:$4 sm:$0xff]  }
  0x3c   : > { %434 = vmatprep.subr.bf16.mxu0 %v4407_v0  ;;  %614 = vmatprep.subr.bf16.mxu1 %v4145_v12 }
  0x3f   : > { %435 = vmatpush1.bf16.msra.mxu0 %v4132_v13  ;;  %v4147_v13 = vld [vmem:[%s4472_s29 + $0xe0] ss:$8 sps:$4 sm:$0xff]  }
  0x40   : > { %615 = vmatpush1.bf16.msra.mxu1 %v4147_v13 }
  0x42   : > { %445 = vmatmul.mubr.bf16.vlgmr.msra.gmra.mrb[0].mxu0 %v4133_v14  ;;  %v4148_v14 = vld [vmem:[%s4472_s29 + $0xf4] ss:$8 sps:$4 sm:$0xff]  }
  0x43   : > { %3607 = vmatprep.mubr.msk.bf16.mxu0 %vm405_vm0, %v4136_v15  ;;  %v4150_v15 = vld [vmem:[%s4472_s29 + $0xf0] ss:$8 sps:$4 sm:$0xff]   ;;  %616 = vmatprep.subr.bf16.mxu1 %v4148_v14 }
  0x44   : > { %617 = vmatpush1.bf16.msra.mxu1 %v4150_v15 }
  0x4a   : > { %453 = vmatmul.mubr.bf16.gmra.mrb[4].mxu0 %v4138_v16 }
 0x115   : > { %v446_v25 = vpop.f32.mrb[0].mxu0 }
 0x116   : > { %v466_v26 = vsel %vm461_vm1, %v465_v22, %v446_v25  ;;  %v448_v27 = vpop.f32.mrb[1].mxu0 }
 0x117   : > { %v4529_v30 = vadd.f32 %v470_v23, %v466_v26  ;;  %v449_v31 = vpop.f32.mrb[2].mxu0 }
 0x118   : > { %v467_v33 = vsel %vm462_vm2, %v465_v22, %v449_v31  ;;  %v451_v34 = vpop.f32.mrb[3].mxu0  ;;  %v478_v31 = vld [vmem:[%s4518_s23 + $0x50] ss:$0 sm:$0xff] }
 0x119   : > { %v4531_v35 = vadd.f32 %v471_v28, %v467_v33  ;;  %v480_v36 = vsel %vm405_vm0, %v4529_v30, 0.0 }
 0x11a   : > { %481 = vadd.xlane.f32.xlu0 %v480_v36  ;;  %v479_v36 = vld [vmem:[%s4518_s23 + $0x60] ss:$0 sm:$0xff] }
 0x11b   : > { %v483_v40 = vsel %vm405_vm0, %v4531_v35, 0.0 }
 0x11d   : > { %v454_v39 = vpop.f32.mrb[4].mxu0 }
 0x11e   : > { %v468_v41 = vsel %vm463_vm3, %v465_v22, %v454_v39  ;;  %484 = vadd.xlane.f32.xlu0 %v483_v40  ;;  %v456_v42 = vpop.f32.mrb[5].mxu0 }
 0x11f   : > { %v4539_v44 = vadd.f32 %v472_v38, %v468_v41  ;;  %v457_v45 = vpop.f32.mrb[6].mxu0 }
 0x120   : > { %v469_v46 = vsel %vm464_vm4, %v465_v22, %v457_v45  ;;  %v459_v47 = vpop.f32.mrb[7].mxu0 }
 0x121   : > { %v4541_v48 = vadd.f32 %v473_v43, %v469_v46  ;;  %v486_v49 = vsel %vm405_vm0, %v4539_v44, 0.0 }
 0x122   : > { %487 = vadd.xlane.f32.xlu1 %v486_v49 }
 0x123   : > { %v489_v50 = vsel %vm405_vm0, %v4541_v48, 0.0 }
 0x126   : > { %490 = vadd.xlane.f32.xlu1 %v489_v50 }
 0x1a7   : > { %v482_v51 = vpop.xlane.xlu0 %481 }
 0x1a8   : > { %v493_v52 = vmul.f32 0.015625, %v482_v51 }
 0x1aa   : > { %v497_v53 = vsub.f32 %v4529_v30, %v493_v52  ;;  %v554_v52 = vlaneseq }
 0x1ab   : > { %v485_v54 = vpop.xlane.xlu0 %484 }
 0x1ac   : > { %v494_v55 = vmul.f32 0.015625, %v485_v54  ;;  %v501_v56 = vmul.f32 %v497_v53, %v497_v53 }
 0x1ae   : > { %v498_v57 = vsub.f32 %v4531_v35, %v494_v55  ;;  %v505_v58 = vsel %vm405_vm0, %v501_v56, 0.0  ;;  %v3608_v55 = vld [vmem:[%s4518_s23 + $0x70] ss:$8 sm:$0x3] }
 0x1af   : > { %506 = vadd.xlane.f32.xlu0 %v505_v58  ;;  %v488_v59 = vpop.xlane.xlu1 %487 }
 0x1b0   : > { %v495_v60 = vmul.f32 0.015625, %v488_v59  ;;  %v502_v61 = vmul.f32 %v498_v57, %v498_v57 }
 0x1b2   : > { %v499_v62 = vsub.f32 %v4539_v44, %v495_v60  ;;  %v508_v63 = vsel %vm405_vm0, %v502_v61, 0.0 }
 0x1b3   : > { %509 = vadd.xlane.f32.xlu1 %v508_v63  ;;  %v491_v1 = vpop.xlane.xlu1 %490 }
 0x1b4   : > { %v496_v2 = vmul.f32 0.015625, %v491_v1  ;;  %v503_v3 = vmul.f32 %v499_v62, %v499_v62 }
 0x1b6   : > { %v500_v4 = vsub.f32 %v4541_v48, %v496_v2  ;;  %v511_v5 = vsel %vm405_vm0, %v503_v3, 0.0 }
 0x1b7   : > { %512 = vadd.xlane.f32.xlu0 %v511_v5 }
 0x1b8   : > { %v504_v6 = vmul.f32 %v500_v4, %v500_v4 }
 0x1ba   : > { %v514_v7 = vsel %vm405_vm0, %v504_v6, 0.0 }
 0x1bb   : > { %515 = vadd.xlane.f32.xlu1 %v514_v7 }
 0x23c   : > { %v507_v16 = vpop.xlane.xlu0 %506 }
 0x23d   : > { %v517_v17 = vmul.f32 0.015625, %v507_v16 }
 0x23f   : > { %v521_v18 = vadd.f32 1e-06, %v517_v17 }
 0x240   : > { %v510_v19 = vpop.xlane.xlu1 %509 }
 0x241   : > { %4255 = vrsqrt.f32 %v521_v18  ;;  %v518_v20 = vmul.f32 0.015625, %v510_v19 }
 0x243   : > { %v522_v21 = vadd.f32 1e-06, %v518_v20 }
 0x244   : > { %v513_v22 = vpop.xlane.xlu0 %512 }
 0x245   : > { %4257 = vrsqrt.f32 %v522_v21  ;;  %v519_v23 = vmul.f32 0.015625, %v513_v22 }
 0x247   : > { %v523_v24 = vadd.f32 1e-06, %v519_v23 }
 0x248   : > { %v516_v25 = vpop.xlane.xlu1 %515 }
 0x249   : > { %4259 = vrsqrt.f32 %v523_v24  ;;  %v520_v26 = vmul.f32 0.015625, %v516_v25 }
 0x24b   : > { %v4256_v27 = vpop.eup %4255  ;;  %v524_v28 = vadd.f32 1e-06, %v520_v26 }
 0x24c   : > { %v529_v29 = vmul.f32 %v4256_v27, %v497_v53  ;;  %v555_v53 = vshrl.u32 %v554_v52, 7 }
 0x24d   : > { %4261 = vrsqrt.f32 %v524_v28  ;;  %v4608_v28 = vld [vmem:[%s5190_s2 + $0x10] sm:$0xff] }
 0x24e   : > { %v533_v34 = vmul.f32 %v529_v29, %v478_v31  ;;  %v4568_v54 = vsub.s32 0, %v555_v53  ;;  %v4571_v56 = vsub.s32 1, %v555_v53  ;;  %v4613_v29 = vld [vmem:[%s5190_s2] sm:$0xff] }
 0x24f   : > { %v4258_v32 = vpop.eup %4257 }
 0x250   : > { %v530_v33 = vmul.f32 %v4258_v32, %v498_v57  ;;  %v537_v39 = vadd.f32 %v533_v34, %v479_v36  ;;  %v557_v57 = vrot.slane %v3608_v55, %v4568_v54  ;;  %v561_v59 = vrot.slane %v3608_v55, %v4571_v56  ;;  %v4619_v34 = vld [vmem:[%s5190_s2 + $0x8] sm:$0xff] }
 0x252   : > { %v534_v37 = vmul.f32 %v530_v33, %v478_v31 }
 0x253   : > { %v4260_v38 = vpop.eup %4259 }
 0x254   : > { %v538_v40 = vadd.f32 %v534_v37, %v479_v36  ;;  %v531_v41 = vmul.f32 %v4260_v38, %v499_v62 }
 0x256   : > { %v549_v42 = vpack.c.bf16 %v538_v40, %v537_v39  ;;  %v535_v46 = vmul.f32 %v531_v41, %v478_v31 }
 0x257   : > { %v4262_v43 = vpop.eup %4261 }
 0x258   : > { %3617 = vmatmul.mubr.msk.bf16.vlgmr.msra.gmra.mrb[0].mxu1 %vm405_vm0, %v549_v42  ;;  %v532_v45 = vmul.f32 %v4262_v43, %v500_v4  ;;  %v539_v49 = vadd.f32 %v535_v46, %v479_v36  ;;  %v4628_v42 = vld [vmem:[%s5190_s2 + $0x18] sm:$0xff] }
 0x259   : > { %652 = vmatprep.mubr.bf16.mxu1 %v4407_v0 }
 0x25a   : > { %v536_v47 = vmul.f32 %v532_v45, %v478_v31 }
 0x25c   : > { %v540_v50 = vadd.f32 %v536_v47, %v479_v36 }
 0x25e   : > { %v550_v51 = vpack.c.bf16 %v540_v50, %v539_v49 }
 0x260   : > { %3618 = vmatmul.mubr.msk.bf16.gmra.mrb[4].mxu1 %vm405_vm0, %v550_v51 }
 0x32b   : > { %v644_v58 = vpop.f32.mrb[0].mxu1 }
 0x32c   : > { %v4575_v60 = vadd.f32 %v644_v58, %v557_v57  ;;  %v646_v61 = vpop.f32.mrb[1].mxu1 }
 0x32d   : > { %v648_v62 = vpop.f32.mrb[2].mxu1  ;;  %v647_v2 = vadd.f32 %v646_v61, %v561_v59 }
 0x32e   : > { %v4577_v63 = vadd.f32 %v648_v62, %v557_v57  ;;  %v650_v1 = vpop.f32.mrb[3].mxu1  ;;  %667 = vrot.lane.b32.xlu0 %v4575_v60, %s4408_s28 }
 0x32f   : > { %v651_v3 = vadd.f32 %v650_v1, %v561_v59 }
 0x330   : > { %v4583_v4 = vpack.c.bf16 %v4577_v63, %v4575_v60  ;;  %669 = vrot.lane.b32.xlu1 %v4577_v63, %s4408_s28  ;;  %v4066_v5 = vpack.i.bf16 %v4577_v63, %v4575_v60 }
 0x331   : > { %v4589_v6 = vpack.c.bf16 %v651_v3, %v647_v2 }
 0x332   : > { %3902 = vmatprep.mubr.msk.bf16.mxu1 %vm715_vm5, %v4583_v4 }
 0x333   : > { %v654_v7 = vpop.f32.mrb[4].mxu1 }
 0x334   : > { %v655_v8 = vadd.f32 %v654_v7, %v557_v57  ;;  %v656_v9 = vpop.f32.mrb[5].mxu1 }
 0x335   : > { %v658_v10 = vpop.f32.mrb[6].mxu1  ;;  %v657_v13 = vadd.f32 %v656_v9, %v561_v59 }
 0x336   : > { %v659_v11 = vadd.f32 %v658_v10, %v557_v57  ;;  %v660_v12 = vpop.f32.mrb[7].mxu1  ;;  %671 = vrot.lane.b32.xlu1 %v655_v8, %s4408_s28 }
 0x337   : > { %v661_v14 = vadd.f32 %v660_v12, %v561_v59 }
 0x338   : > { %v4594_v15 = vpack.c.bf16 %v659_v11, %v655_v8  ;;  %v4071_v16 = vpack.i.bf16 %v659_v11, %v655_v8 }
 0x339   : > { %v4596_v17 = vpack.c.bf16 %v661_v14, %v657_v13 }
 0x33a   : > { %673 = vrot.lane.b32.xlu1 %v659_v11, %s4408_s28 }
 0x3a0   : > { %v668_v18 = vpop.permute.xlu0 %667 }
 0x3a1   : > { %679 = vxpose.xlu0.b32.start [1/4] (short) (narrow) %v668_v18, 32 }
 0x3a2   : > { %v670_v19 = vpop.permute.xlu1 %669 }
 0x3a5   : > { %680 = vxpose.xlu0.b32.cont [2/4] (short) (narrow) %v670_v19, 32 }
 0x3a8   : > { %v672_v20 = vpop.permute.xlu1 %671 }
 0x3a9   : > { %681 = vxpose.xlu0.b32.cont [3/4] (short) (narrow) %v672_v20, 32 }
 0x3ac   : > { %v674_v21 = vpop.permute.xlu1 %673 }
 0x3ad   : > { %682 = vxpose.xlu0.b32.end [4/4] (short) (narrow) %v674_v21, 32 }
 0x421   : > { %v695_v22 = vpop.trf.xlu0 }
 0x425   : > { %v696_v23 = vpop.trf.xlu0 }
 0x426   : > { %v713_v24 = vpack.c.bf16 %v696_v23, %v695_v22 }
 0x428   : > { %3898 = vmatprep.subr.bf16.mxu1 %v713_v24 }
 0x429   : > { %3899 = vmatpush3.bf16.msra.mxu1 %v713_v24  ;;  %v697_v25 = vpop.trf.xlu0 }
 0x42d   : > { %v698_v26 = vpop.trf.xlu0 }
 0x42e   : > { %v714_v27 = vpack.c.bf16 %v698_v26, %v697_v25 }
 0x430   : > { %3900 = vmatprep.subr.bf16.mxu1 %v714_v27 }
 0x431   : > { %3901 = vmatpush3.bf16.msra.mxu1 %v714_v27 }
 0x432   : > { %3906 = vmatprep.subr.bf16.mxu1 %v4589_v6 }
 0x434   : > { %3903 = vmatmul.mubr.msk.bf16.vlgmr.msra.gmra.mrb[8].mxu1 %vm715_vm5, %v4594_v15 }
 0x435   : > { %3907 = vmatpush3.bf16.msra.mxu1 %v4589_v6 }
 0x436   : > { %3908 = vmatprep.subr.bf16.mxu1 %v4596_v17 }
 0x439   : > { %3909 = vmatpush3.bf16.msra.mxu1 %v4596_v17 }
 0x507   : > { %v3904_v31 = vpop.f32.mrb[8].mxu1 }
 0x508   : > { %v765_v32 = vadd.f32 %v3904_v31, %v4608_v28  ;;  %v756_v33 = vpop.f32.mrb[9].mxu1 }
 0x509   : > { %v757_v36 = vadd.f32 %v756_v33, %v4613_v29  ;;  %v3905_v37 = vpop.f32.mrb[10].mxu1 }
 0x50a   : > { %v759_v38 = vpop.f32.mrb[11].mxu1  ;;  %v777_v39 = vsel %vm715_vm5, %v765_v32, -inf  ;;  %v768_v43 = vadd.f32 %v3905_v37, %v4628_v42 }
 0x50b   : > { %v760_v40 = vadd.f32 %v759_v38, %v4619_v34  ;;  %778 = vmax.xlane.f32.xlu0 %v777_v39  ;;  %v771_v41 = vsel %vm715_vm5, %v757_v36, -inf }
 0x50c   : > { %772 = vmax.xlane.f32.xlu1 %v771_v41  ;;  %v780_v46 = vsel %vm715_vm5, %v768_v43, -inf }
 0x50d   : > { %v774_v45 = vsel %vm715_vm5, %v760_v40, -inf }
 0x510   : > { %775 = vmax.xlane.f32.xlu1 %v774_v45 }
 0x514   : > { %781 = vmax.xlane.f32.xlu1 %v780_v46 }
 0x525   : > { %4067 = vrot.lane.b32.xlu1 %v4066_v5, %s4409_s14 }
 0x529   : > { %4072 = vrot.lane.b32.xlu1 %v4071_v16, %s4409_s14 }
 0x598   : > { %v779_v47 = vpop.xlane.xlu0 %778 }
 0x599   : > { %v785_v49 = vsub.f32 %v765_v32, %v779_v47  ;;  %v773_v50 = vpop.xlane.xlu1 %772 }
 0x59a   : > { %v783_v51 = vsub.f32 %v757_v36, %v773_v50 }
 0x59b   : > { %v791_v52 = vmul.f32 1.442695, %v785_v49 }
 0x59c   : > { %v787_v53 = vmul.f32 1.442695, %v783_v51 }
 0x59d   : > { %4263 = vpow2.f32 %v791_v52  ;;  %v776_v60 = vpop.xlane.xlu1 %775 }
 0x59e   : > { %4265 = vpow2.f32 %v787_v53  ;;  %v784_v63 = vsub.f32 %v760_v40, %v776_v60 }
 0x5a0   : > { %v789_v2 = vmul.f32 1.442695, %v784_v63 }
 0x5a1   : > { %v782_v61 = vpop.xlane.xlu1 %781 }
 0x5a2   : > { %v786_v62 = vsub.f32 %v768_v43, %v782_v61 }
 0x5a4   : > { %v793_v1 = vmul.f32 1.442695, %v786_v62 }
 0x5a5   : > { %v4068_v9 = vpop.permute.xlu1 %4067 }
 0x5a6   : > { %4267 = vpow2.f32 %v793_v1  ;;  %v4069_v10 = vunpack.i.l.bf16 %v4068_v9  ;;  %v4070_v11 = vunpack.i.h.bf16 %v4068_v9 }
 0x5a7   : > { %v4264_v55 = vpop.eup %4263  ;;  %4269 = vpow2.f32 %v789_v2 }
 0x5a8   : > { %v4266_v57 = vpop.eup %4265  ;;  %v801_v58 = vsel %vm715_vm5, %v4264_v55, 0.0 }
 0x5a9   : > { %802 = vadd.xlane.f32.xlu0 %v801_v58  ;;  %v795_v59 = vsel %vm715_vm5, %v4266_v57, 0.0 }
 0x5aa   : > { %796 = vadd.xlane.f32.xlu1 %v795_v59 }
 0x5b0   : > { %v4268_v3 = vpop.eup %4267 }
 0x5b1   : > { %v804_v5 = vsel %vm715_vm5, %v4268_v3, 0.0  ;;  %v4270_v7 = vpop.eup %4269 }
 0x5b2   : > { %v798_v8 = vsel %vm715_vm5, %v4270_v7, 0.0 }
 0x5bb   : > { %924 = vrot.lane.b32.xlu1 %v4594_v15, %s4410_s15 }
 0x5bf   : > { %922 = vrot.lane.b32.xlu0 %v4583_v4, %s4410_s15  ;;  %v4073_v4 = vpop.permute.xlu1 %4072 }
 0x5c0   : > { %v4074_v12 = vunpack.i.l.bf16 %v4073_v4  ;;  %v4075_v13 = vunpack.i.h.bf16 %v4073_v4 }
 0x5de   : > { %805 = vadd.xlane.f32.xlu0 %v804_v5 }
 0x5e2   : > { %799 = vadd.xlane.f32.xlu0 %v798_v8 }
 0x60f   : > { %886 = vxpose.xlu0.b32.start [1/4] (short) (narrow) %v4069_v10, 32 }
 0x613   : > { %887 = vxpose.xlu0.b32.cont [2/4] (short) (narrow) %v4070_v11, 32 }
 0x617   : > { %888 = vxpose.xlu0.b32.cont [3/4] (short) (narrow) %v4074_v12, 32 }
 0x61b   : > { %889 = vxpose.xlu0.b32.end [4/4] (short) (narrow) %v4075_v13, 32 }
 0x636   : > { %v803_v14 = vpop.xlane.xlu0 %802 }
 0x637   : > { %v797_v16 = vpop.xlane.xlu1 %796 }
 0x63a   : > { %v923_v15 = vpop.permute.xlu0 %922 }
 0x63b   : > { %v925_v41 = vpop.permute.xlu1 %924 }
 0x66b   : > { %v806_v18 = vpop.xlane.xlu0 %805 }
 0x66c   : > { %4271 = vrcp.f32 %v806_v18 }
 0x66d   : > { %4273 = vrcp.f32 %v797_v16 }
 0x66e   : > { %4275 = vrcp.f32 %v803_v14 }
 0x66f   : > { %v800_v19 = vpop.xlane.xlu0 %799 }
 0x670   : > { %4277 = vrcp.f32 %v800_v19 }
 0x676   : > { %v4272_v20 = vpop.eup %4271 }
 0x677   : > { %v4274_v21 = vpop.eup %4273  ;;  %v814_v24 = vmul.f32 %v4272_v20, %v4268_v3 }
 0x678   : > { %v4276_v22 = vpop.eup %4275  ;;  %v811_v25 = vmul.f32 %v4274_v21, %v4266_v57 }
 0x679   : > { %v813_v27 = vmul.f32 %v4276_v22, %v4264_v55 }
 0x67a   : > { %v4278_v23 = vpop.eup %4277 }
 0x67b   : > { %v812_v26 = vmul.f32 %v4278_v23, %v4270_v7  ;;  %v816_v32 = vpack.c.bf16 %v814_v24, %v813_v27 }
 0x67d   : > { %v815_v31 = vpack.c.bf16 %v812_v26, %v811_v25 }
 0x67f   : > { %3910 = vmatprep.mubr.msk.bf16.mxu1 %vm715_vm5, %v815_v31 }
 0x680   : > { %3911 = vmatmul.mubr.msk.bf16.vlgmr.msra.gmra.mrb[12].mxu1 %vm715_vm5, %v816_v32 }
 0x681   : > { %3918 = vmatprep.mubr.msk.bf16.mxu1 %vm715_vm5, %v923_v15 }
 0x68f   : > { %v902_v33 = vpop.trf.xlu0 }
 0x693   : > { %v903_v36 = vpop.trf.xlu0 }
 0x694   : > { %v918_v37 = vpack.c.bf16 %v903_v36, %v902_v33 }
 0x696   : > { %3914 = vmatprep.subr.bf16.mxu1 %v918_v37 }
 0x697   : > { %3915 = vmatpush3.bf16.msra.mxu1 %v918_v37  ;;  %v904_v38 = vpop.trf.xlu0  ;;  %v4151_v37 = vld [vmem:[%s4472_s29 + $0x100] ss:$8 sps:$4 sm:$0xff]  }
 0x698   : > { %3930 = vmatprep.subr.bf16.mxu0 %v4151_v37 }
 0x699   : > { %3931 = vmatpush3.bf16.msra.mxu0 %v4151_v37  ;;  %v4160_v37 = vld [vmem:[%s4472_s29 + $0x154] ss:$8 sps:$4 sm:$0xff]  }
 0x69b   : > { %v905_v39 = vpop.trf.xlu0 }
 0x69c   : > { %v919_v40 = vpack.c.bf16 %v905_v39, %v904_v38  ;;  %v4152_v38 = vld [vmem:[%s4472_s29 + $0x110] ss:$8 sps:$4 sm:$0xff]   ;;  %v4153_v39 = vld [vmem:[%s4472_s29 + $0x120] ss:$8 sps:$4 sm:$0xff]  }
 0x69d   : > { %3932 = vmatprep.subr.bf16.mxu0 %v4152_v38 }
 0x69e   : > { %3916 = vmatprep.subr.bf16.mxu1 %v919_v40  ;;  %3933 = vmatpush3.bf16.msra.mxu0 %v4152_v38  ;;  %v4158_v38 = vld [vmem:[%s4472_s29 + $0x150] ss:$8 sps:$4 sm:$0xff]  }
 0x69f   : > { %3917 = vmatpush3.bf16.msra.mxu1 %v919_v40  ;;  %3934 = vmatprep.subr.bf16.mxu0 %v4153_v39  ;;  %v4154_v40 = vld [vmem:[%s4472_s29 + $0x130] ss:$8 sps:$4 sm:$0xff]  }
 0x6a2   : > { %3919 = vmatmul.mubr.msk.bf16.vlgmr.msra.gmra.mrb[16].mxu1 %vm715_vm5, %v925_v41  ;;  %3935 = vmatpush3.bf16.msra.mxu0 %v4153_v39  ;;  %v4163_v39 = vld [vmem:[%s4472_s29 + $0x164] ss:$8 sps:$4 sm:$0xff]  }
 0x6a3   : > { %3936 = vmatprep.subr.bf16.mxu0 %v4154_v40 }
 0x6a6   : > { %3937 = vmatpush3.bf16.msra.mxu0 %v4154_v40  ;;  %v4161_v40 = vld [vmem:[%s4472_s29 + $0x160] ss:$8 sps:$4 sm:$0xff]  }
 0x753   : > { %v4647_v43 = vpop.f32.mrb[12].mxu1 }
 0x754   : > { %v4649_v45 = vpop.f32.mrb[13].mxu1 }
 0x755   : > { %v4651_v46 = vpop.f32.mrb[14].mxu1 }
 0x756   : > { %v4653_v47 = vpop.f32.mrb[15].mxu1 }
 0x775   : > { %v3920_v49 = vpop.f32.mrb[16].mxu1 }
 0x776   : > { %v966_v50 = vpop.f32.mrb[17].mxu1  ;;  %v975_v60 = vadd.f32 %v3920_v49, %v4608_v28 }
 0x777   : > { %v967_v51 = vadd.f32 %v966_v50, %v4613_v29  ;;  %v3921_v52 = vpop.f32.mrb[18].mxu1 }
 0x778   : > { %v978_v53 = vadd.f32 %v3921_v52, %v4628_v42  ;;  %v969_v55 = vpop.f32.mrb[19].mxu1  ;;  %v987_v62 = vsel %vm715_vm5, %v975_v60, -inf }
 0x779   : > { %v970_v57 = vadd.f32 %v969_v55, %v4619_v34  ;;  %v981_v58 = vsel %vm715_vm5, %v967_v51, -inf }
 0x77a   : > { %982 = vmax.xlane.f32.xlu1 %v981_v58  ;;  %v990_v59 = vsel %vm715_vm5, %v978_v53, -inf }
 0x77b   : > { %991 = vmax.xlane.f32.xlu0 %v990_v59  ;;  %v984_v61 = vsel %vm715_vm5, %v970_v57, -inf }
 0x77e   : > { %985 = vmax.xlane.f32.xlu1 %v984_v61 }
 0x782   : > { %988 = vmax.xlane.f32.xlu1 %v987_v62 }
 0x793   : > { %1029 = vrot.lane.b32.xlu1 %v4589_v6, %s4410_s15 }
 0x807   : > { %v983_v29 = vpop.xlane.xlu1 %982 }
 0x808   : > { %v993_v34 = vsub.f32 %v967_v51, %v983_v29  ;;  %v992_v63 = vpop.xlane.xlu0 %991 }
 0x809   : > { %v996_v5 = vsub.f32 %v978_v53, %v992_v63 }
 0x80a   : > { %v997_v3 = vmul.f32 1.442695, %v993_v34 }
 0x80b   : > { %v986_v42 = vpop.xlane.xlu1 %985  ;;  %v1003_v28 = vmul.f32 1.442695, %v996_v5 }
 0x80c   : > { %v994_v9 = vsub.f32 %v970_v57, %v986_v42 }
 0x80e   : > { %v999_v10 = vmul.f32 1.442695, %v994_v9 }
 0x80f   : > { %v989_v1 = vpop.xlane.xlu1 %988 }
 0x810   : > { %v995_v2 = vsub.f32 %v975_v60, %v989_v1 }
 0x812   : > { %v1001_v7 = vmul.f32 1.442695, %v995_v2 }
 0x813   : > { %v1030_v8 = vpop.permute.xlu1 %1029 }
 0x814   : > { %4279 = vpow2.f32 %v1001_v7  ;;  %3922 = vmatprep.subr.bf16.mxu1 %v1030_v8 }
 0x815   : > { %3923 = vmatpush3.bf16.msra.mxu1 %v1030_v8  ;;  %4281 = vpow2.f32 %v997_v3 }
 0x816   : > { %4283 = vpow2.f32 %v1003_v28 }
 0x817   : > { %4285 = vpow2.f32 %v999_v10 }
 0x81e   : > { %v4280_v11 = vpop.eup %4279 }
 0x81f   : > { %v1011_v6 = vsel %vm715_vm5, %v4280_v11, 0.0  ;;  %v4282_v4 = vpop.eup %4281 }
 0x820   : > { %1012 = vadd.xlane.f32.xlu1 %v1011_v6  ;;  %v1005_v12 = vsel %vm715_vm5, %v4282_v4, 0.0  ;;  %v4284_v13 = vpop.eup %4283 }
 0x821   : > { %v1014_v14 = vsel %vm715_vm5, %v4284_v13, 0.0  ;;  %v4286_v15 = vpop.eup %4285 }
 0x822   : > { %v1008_v16 = vsel %vm715_vm5, %v4286_v15, 0.0 }
 0x824   : > { %1006 = vadd.xlane.f32.xlu1 %v1005_v12 }
 0x828   : > { %1015 = vadd.xlane.f32.xlu1 %v1014_v14 }
 0x82c   : > { %1009 = vadd.xlane.f32.xlu1 %v1008_v16 }
 0x83d   : > { %1031 = vrot.lane.b32.xlu1 %v4596_v17, %s4410_s15 }
 0x8ad   : > { %v1013_v18 = vpop.xlane.xlu1 %1012 }
 0x8b1   : > { %v1007_v19 = vpop.xlane.xlu1 %1006 }
 0x8b5   : > { %v1016_v20 = vpop.xlane.xlu1 %1015 }
 0x8b6   : > { %4287 = vrcp.f32 %v1016_v20 }
 0x8b7   : > { %4289 = vrcp.f32 %v1007_v19 }
 0x8b8   : > { %4291 = vrcp.f32 %v1013_v18 }
 0x8b9   : > { %v1010_v21 = vpop.xlane.xlu1 %1009 }
 0x8ba   : > { %4293 = vrcp.f32 %v1010_v21 }
 0x8bd   : > { %v1032_v22 = vpop.permute.xlu1 %1031 }
 0x8be   : > { %3924 = vmatprep.subr.bf16.mxu1 %v1032_v22 }
 0x8bf   : > { %3925 = vmatpush3.bf16.msra.mxu1 %v1032_v22 }
 0x8c0   : > { %v4288_v23 = vpop.eup %4287 }
 0x8c1   : > { %v4290_v24 = vpop.eup %4289  ;;  %v1024_v27 = vmul.f32 %v4288_v23, %v4284_v13 }
 0x8c2   : > { %v4292_v25 = vpop.eup %4291  ;;  %v1021_v17 = vmul.f32 %v4290_v24, %v4282_v4 }
 0x8c3   : > { %v1023_v32 = vmul.f32 %v4292_v25, %v4280_v11 }
 0x8c4   : > { %v4294_v26 = vpop.eup %4293 }
 0x8c5   : > { %v1022_v31 = vmul.f32 %v4294_v26, %v4286_v15  ;;  %v1026_v36 = vpack.c.bf16 %v1024_v27, %v1023_v32 }
 0x8c7   : > { %v1025_v33 = vpack.c.bf16 %v1022_v31, %v1021_v17 }
 0x8c9   : > { %3926 = vmatprep.mubr.msk.bf16.mxu1 %vm715_vm5, %v1025_v33  ;;  %v4157_v33 = vld [vmem:[%s4472_s29 + $0x144] ss:$8 sps:$4 sm:$0xff]  }
 0x8ca   : > { %3927 = vmatmul.mubr.msk.bf16.vlgmr.msra.gmra.mrb[20].mxu1 %vm715_vm5, %v1026_v36  ;;  %v4155_v36 = vld [vmem:[%s4472_s29 + $0x140] ss:$8 sps:$4 sm:$0xff]   ;;  %1339 = vmatprep.subr.bf16.mxu1 %v4157_v33 }
 0x8cb   : > { %1371 = vmatprep.mubr.bf16.mxu1 %v4407_v0  ;;  %1340 = vmatpush1.bf16.msra.mxu1 %v4155_v36 }
 0x8cc   : > { %1341 = vmatprep.subr.bf16.mxu1 %v4160_v37 }
 0x8cf   : > { %1342 = vmatpush1.bf16.msra.mxu1 %v4158_v38 }
 0x8d0   : > { %1343 = vmatprep.subr.bf16.mxu1 %v4163_v39 }
 0x8d3   : > { %1344 = vmatpush1.bf16.msra.mxu1 %v4161_v40 }
 0x99d   : > { %v3928_v41 = vpop.f32.mrb[20].mxu1 }
 0x99e   : > { %v1075_v49 = vpop.f32.mrb[21].mxu1 }
 0x99f   : > { %v3929_v50 = vpop.f32.mrb[22].mxu1 }
 0x9a0   : > { %v4081_v51 = vpack.i.bf16 %v3929_v50, %v3928_v41  ;;  %v1078_v52 = vpop.f32.mrb[23].mxu1  ;;  %v4166_v41 = vld [vmem:[%s4472_s29 + $0x174] ss:$8 sps:$4 sm:$0xff]  }
 0x9a1   : > { %v4076_v53 = vpack.i.bf16 %v1078_v52, %v1075_v49  ;;  %v4164_v49 = vld [vmem:[%s4472_s29 + $0x170] ss:$8 sps:$4 sm:$0xff]   ;;  %1345 = vmatprep.subr.bf16.mxu1 %v4166_v41 }
 0x9a2   : > { %1346 = vmatpush1.bf16.msra.mxu1 %v4164_v49 }
 0x9a3   : > { %4077 = vrot.lane.b32.xlu1 %v4076_v53, %s4409_s14 }
 0x9a7   : > { %4082 = vrot.lane.b32.xlu1 %v4081_v51, %s4409_s14 }
 0xa15   : > { %v4078_v55 = vpop.permute.xlu1 %4077 }
 0xa16   : > { %v4080_v57 = vunpack.i.h.bf16 %v4078_v55  ;;  %v4079_v58 = vunpack.i.l.bf16 %v4078_v55 }
 0xa18   : > { %v1107_v59 = vsel %vm715_vm5, %v4653_v47, %v4080_v57  ;;  %v1106_v60 = vsel %vm715_vm5, %v4649_v45, %v4079_v58  ;;  %v1203_v47 = vld [vmem:[%s4518_s23 + $0x80] ss:$0 sm:$0xff] }
 0xa19   : > { %v1118_v61 = vpack.c.bf16 %v1107_v59, %v1106_v60  ;;  %v4083_v62 = vpop.permute.xlu1 %4082 }
 0xa1a   : > { %v4085_v29 = vunpack.i.h.bf16 %v4083_v62  ;;  %v4084_v42 = vunpack.i.l.bf16 %v4083_v62 }
 0xa1b   : > { %3938 = vmatprep.mubr.msk.bf16.mxu0 %vm405_vm0, %v1118_v61 }
 0xa1c   : > { %v1109_v34 = vsel %vm715_vm5, %v4651_v46, %v4085_v29  ;;  %v1108_v63 = vsel %vm715_vm5, %v4647_v43, %v4084_v42 }
 0xa1d   : > { %v1119_v1 = vpack.c.bf16 %v1109_v34, %v1108_v63  ;;  %v1208_v63 = vld [vmem:[%s4518_s23 + $0x90] ss:$0 sm:$0xff] }
 0xa1f   : > { %3939 = vmatmul.mubr.msk.bf16.vlgmr.msra.gmra.mrb[8].mxu0 %vm405_vm0, %v1119_v1 }
 0xaf2   : > { %v3940_v2 = vpop.f32.mrb[8].mxu0 }
 0xaf3   : > { %v1184_v3 = vpop.f32.mrb[9].mxu0  ;;  %v1201_v45 = vadd.f32 %v3940_v2, %v4539_v44 }
 0xaf4   : > { %v1199_v5 = vadd.f32 %v1184_v3, %v4529_v30  ;;  %v3941_v7 = vpop.f32.mrb[10].mxu0  ;;  %v1209_v3 = vld [vmem:[%s4518_s23 + $0xa0] ss:$0 sm:$0xff] }
 0xaf5   : > { %v1187_v8 = vpop.f32.mrb[11].mxu0  ;;  %v4696_v46 = vadd.f32 %v1203_v47, %v1201_v45  ;;  %v1202_v43 = vadd.f32 %v3941_v7, %v4541_v48 }
 0xaf6   : > { %v4693_v28 = vadd.f32 %v1203_v47, %v1199_v5  ;;  %v1200_v9 = vadd.f32 %v1187_v8, %v4531_v35 }
 0xaf7   : > { %v4705_v30 = vadd.f32 %v1203_v47, %v1202_v43  ;;  %v1216_v6 = vsel %vm405_vm0, %v4696_v46, 0.0 }
 0xaf8   : > { %v4699_v10 = vadd.f32 %v1203_v47, %v1200_v9  ;;  %v1210_v11 = vsel %vm405_vm0, %v4693_v28, 0.0 }
 0xaf9   : > { %1211 = vadd.xlane.f32.xlu0 %v1210_v11  ;;  %v1219_v35 = vsel %vm405_vm0, %v4705_v30, 0.0 }
 0xafa   : > { %v1213_v44 = vsel %vm405_vm0, %v4699_v10, 0.0 }
 0xafb   : > { %1214 = vadd.xlane.f32.xlu1 %v1213_v44 }
 0xafd   : > { %1217 = vadd.xlane.f32.xlu0 %v1216_v6 }
 0xb01   : > { %1220 = vadd.xlane.f32.xlu0 %v1219_v35 }
 0xb86   : > { %v1212_v48 = vpop.xlane.xlu0 %1211 }
 0xb87   : > { %v1222_v4 = vmul.f32 0.015625, %v1212_v48 }
 0xb88   : > { %v1215_v12 = vpop.xlane.xlu1 %1214 }
 0xb89   : > { %v1226_v13 = vsub.f32 %v4693_v28, %v1222_v4  ;;  %v1223_v14 = vmul.f32 0.015625, %v1215_v12 }
 0xb8a   : > { %v1218_v15 = vpop.xlane.xlu0 %1217 }
 0xb8b   : > { %v1227_v16 = vsub.f32 %v4699_v10, %v1223_v14  ;;  %v1224_v18 = vmul.f32 0.015625, %v1218_v15  ;;  %v1230_v19 = vmul.f32 %v1226_v13, %v1226_v13  ;;  %v4168_v14 = vld [vmem:[%s4472_s29 + $0x180] ss:$8 sps:$4 sm:$0xff]   ;;  %v4169_v15 = vld [vmem:[%s4472_s29 + $0x210] ss:$8 sps:$4 sm:$0xff]  }
 0xb8d   : > { %v1228_v20 = vsub.f32 %v4696_v46, %v1224_v18  ;;  %v1234_v21 = vsel %vm405_vm0, %v1230_v19, 0.0  ;;  %v1231_v22 = vmul.f32 %v1227_v16, %v1227_v16  ;;  %v4171_v18 = vld [vmem:[%s4472_s29 + $0x220] ss:$8 sps:$4 sm:$0xff]  }
 0xb8e   : > { %1235 = vadd.xlane.f32.xlu0 %v1234_v21  ;;  %v1221_v23 = vpop.xlane.xlu0 %1220  ;;  %v4172_v19 = vld [vmem:[%s4472_s29 + $0x1a0] ss:$8 sps:$4 sm:$0xff]   ;;  %v4174_v21 = vld [vmem:[%s4472_s29 + $0x1b0] ss:$8 sps:$4 sm:$0xff]  }
 0xb8f   : > { %v1225_v24 = vmul.f32 0.015625, %v1221_v23  ;;  %v1237_v26 = vsel %vm405_vm0, %v1231_v22, 0.0  ;;  %v1232_v27 = vmul.f32 %v1228_v20, %v1228_v20  ;;  %v4175_v22 = vld [vmem:[%s4472_s29 + $0x240] ss:$8 sps:$4 sm:$0xff]  }
 0xb90   : > { %v4176_v23 = vld [vmem:[%s4472_s29 + $0x1c0] ss:$8 sps:$4 sm:$0xff]  }
 0xb91   : > { %v1229_v25 = vsub.f32 %v4705_v30, %v1225_v24  ;;  %v1240_v17 = vsel %vm405_vm0, %v1232_v27, 0.0  ;;  %v4177_v24 = vld [vmem:[%s4472_s29 + $0x250] ss:$8 sps:$4 sm:$0xff]   ;;  %v4180_v27 = vld [vmem:[%s4472_s29 + $0x1e0] ss:$8 sps:$4 sm:$0xff]  }
 0xb92   : > { %1238 = vadd.xlane.f32.xlu0 %v1237_v26  ;;  %v4179_v26 = vld [vmem:[%s4472_s29 + $0x260] ss:$8 sps:$4 sm:$0xff]  }
 0xb93   : > { %v1233_v31 = vmul.f32 %v1229_v25, %v1229_v25 }
 0xb95   : > { %v1243_v32 = vsel %vm405_vm0, %v1233_v31, 0.0  ;;  %v4182_v31 = vld [vmem:[%s4472_s29 + $0x1f0] ss:$8 sps:$4 sm:$0xff]  }
 0xb96   : > { %1241 = vadd.xlane.f32.xlu0 %v1240_v17  ;;  %v4181_v17 = vld [vmem:[%s4472_s29 + $0x270] ss:$8 sps:$4 sm:$0xff]  }
 0xb9a   : > { %1244 = vadd.xlane.f32.xlu0 %v1243_v32  ;;  %v3633_v32 = vld [vmem:[%s4518_s23 + $0xb0] ss:$8 sm:$0x3] }
 0xb9b   : > { %v1286_v33 = vrot.slane %v3633_v32, %v4568_v54  ;;  %v1290_v36 = vrot.slane %v3633_v32, %v4571_v56 }
 0xc1b   : > { %v1236_v50 = vpop.xlane.xlu0 %1235 }
 0xc1c   : > { %v1246_v51 = vmul.f32 0.015625, %v1236_v50 }
 0xc1e   : > { %v1250_v52 = vadd.f32 1e-06, %v1246_v51 }
 0xc1f   : > { %v1239_v53 = vpop.xlane.xlu0 %1238 }
 0xc20   : > { %4295 = vrsqrt.f32 %v1250_v52  ;;  %v1247_v55 = vmul.f32 0.015625, %v1239_v53 }
 0xc22   : > { %v1251_v57 = vadd.f32 1e-06, %v1247_v55 }
 0xc23   : > { %v1242_v58 = vpop.xlane.xlu0 %1241 }
 0xc24   : > { %4297 = vrsqrt.f32 %v1251_v57  ;;  %v1248_v59 = vmul.f32 0.015625, %v1242_v58 }
 0xc26   : > { %v1252_v60 = vadd.f32 1e-06, %v1248_v59 }
 0xc27   : > { %v1245_v61 = vpop.xlane.xlu0 %1244 }
 0xc28   : > { %4299 = vrsqrt.f32 %v1252_v60  ;;  %v1249_v62 = vmul.f32 0.015625, %v1245_v61 }
 0xc2a   : > { %v4296_v29 = vpop.eup %4295  ;;  %v1253_v42 = vadd.f32 1e-06, %v1249_v62 }
 0xc2b   : > { %v1258_v34 = vmul.f32 %v4296_v29, %v1226_v13  ;;  %v4167_v13 = vld [vmem:[%s4472_s29 + $0x200] ss:$8 sps:$4 sm:$0xff]  }
 0xc2c   : > { %4301 = vrsqrt.f32 %v1253_v42  ;;  %3774 = vmatprep.subr.bf16.mxu0 %v4167_v13 }
 0xc2d   : > { %v1262_v2 = vmul.f32 %v1258_v34, %v1208_v63  ;;  %3775 = vmatpush3.bf16.msra.mxu0 %v4168_v14 }
 0xc2e   : > { %v4298_v1 = vpop.eup %4297  ;;  %3776 = vmatprep.subr.bf16.mxu0 %v4169_v15 }
 0xc2f   : > { %v1259_v47 = vmul.f32 %v4298_v1, %v1227_v16  ;;  %v1266_v8 = vadd.f32 %v1262_v2, %v1209_v3  ;;  %v4170_v16 = vld [vmem:[%s4472_s29 + $0x190] ss:$8 sps:$4 sm:$0xff]  }
 0xc31   : > { %v1263_v45 = vmul.f32 %v1259_v47, %v1208_v63  ;;  %3777 = vmatpush3.bf16.msra.mxu0 %v4170_v16 }
 0xc32   : > { %v4300_v5 = vpop.eup %4299  ;;  %3778 = vmatprep.subr.bf16.mxu0 %v4171_v18 }
 0xc33   : > { %v1260_v7 = vmul.f32 %v4300_v5, %v1228_v20  ;;  %v1267_v9 = vadd.f32 %v1263_v45, %v1209_v3  ;;  %v4173_v20 = vld [vmem:[%s4472_s29 + $0x230] ss:$8 sps:$4 sm:$0xff]  }
 0xc35   : > { %v1278_v43 = vpack.c.bf16 %v1267_v9, %v1266_v8  ;;  %v1264_v6 = vmul.f32 %v1260_v7, %v1208_v63  ;;  %3779 = vmatpush3.bf16.msra.mxu0 %v4172_v19 }
 0xc36   : > { %v4302_v11 = vpop.eup %4301  ;;  %3780 = vmatprep.subr.bf16.mxu0 %v4173_v20 }
 0xc37   : > { %v1261_v44 = vmul.f32 %v4302_v11, %v1229_v25  ;;  %3642 = vmatmul.mubr.msk.bf16.vlgmr.msra.gmra.mrb[24].mxu1 %vm405_vm0, %v1278_v43  ;;  %v1268_v48 = vadd.f32 %v1264_v6, %v1209_v3  ;;  %v4178_v25 = vld [vmem:[%s4472_s29 + $0x1d0] ss:$8 sps:$4 sm:$0xff]  }
 0xc38   : > { %1381 = vmatprep.mubr.bf16.mxu1 %v4407_v0 }
 0xc39   : > { %v1265_v35 = vmul.f32 %v1261_v44, %v1208_v63  ;;  %3781 = vmatpush3.bf16.msra.mxu0 %v4174_v21 }
 0xc3a   : > { %3782 = vmatprep.subr.bf16.mxu0 %v4175_v22 }
 0xc3b   : > { %v1269_v4 = vadd.f32 %v1265_v35, %v1209_v3 }
 0xc3d   : > { %v1279_v12 = vpack.c.bf16 %v1269_v4, %v1268_v48  ;;  %3783 = vmatpush3.bf16.msra.mxu0 %v4176_v23 }
 0xc3e   : > { %3784 = vmatprep.subr.bf16.mxu0 %v4177_v24 }
 0xc3f   : > { %3643 = vmatmul.mubr.msk.bf16.gmra.mrb[28].mxu1 %vm405_vm0, %v1279_v12 }
 0xc40   : > { %1817 = vmatprep.mubr.bf16.mxu1 %v4407_v0 }
 0xc41   : > { %3785 = vmatpush3.bf16.msra.mxu0 %v4178_v25 }
 0xc42   : > { %3786 = vmatprep.subr.bf16.mxu0 %v4179_v26 }
 0xc45   : > { %3787 = vmatpush3.bf16.msra.mxu0 %v4180_v27 }
 0xc46   : > { %3788 = vmatprep.subr.bf16.mxu0 %v4181_v17 }
 0xc49   : > { %3789 = vmatpush3.bf16.msra.mxu0 %v4182_v31 }
 0xd0a   : > { %v1373_v37 = vpop.f32.mrb[24].mxu1 }
 0xd0b   : > { %v4752_v38 = vadd.f32 %v1373_v37, %v1286_v33  ;;  %v1375_v39 = vpop.f32.mrb[25].mxu1 }
 0xd0c   : > { %v4754_v40 = vadd.f32 %v1375_v39, %v1290_v36  ;;  %v1377_v41 = vpop.f32.mrb[26].mxu1 }
 0xd0d   : > { %v1400_v49 = vmul.f32 0.044715, %v4752_v38  ;;  %v4757_v50 = vadd.f32 %v1377_v41, %v1286_v33  ;;  %v1379_v51 = vpop.f32.mrb[27].mxu1 }
 0xd0e   : > { %v1401_v52 = vmul.f32 0.044715, %v4754_v40  ;;  %v4760_v53 = vadd.f32 %v1379_v51, %v1290_v36 }
 0xd0f   : > { %v1408_v55 = vmul.f32 %v1400_v49, %v4752_v38  ;;  %v1402_v57 = vmul.f32 0.044715, %v4757_v50 }
 0xd10   : > { %v1409_v58 = vmul.f32 %v1401_v52, %v4754_v40  ;;  %v1403_v59 = vmul.f32 0.044715, %v4760_v53  ;;  %v1392_v52 = vmul.f32 0.5, %v4752_v38 }
 0xd11   : > { %v1416_v60 = vmul.f32 %v1408_v55, %v4752_v38  ;;  %v1410_v61 = vmul.f32 %v1402_v57, %v4757_v50  ;;  %v1394_v55 = vmul.f32 0.5, %v4757_v50 }
 0xd12   : > { %v1417_v62 = vmul.f32 %v1409_v58, %v4754_v40  ;;  %v1411_v29 = vmul.f32 %v1403_v59, %v4760_v53  ;;  %v1383_v42 = vpop.f32.mrb[28].mxu1  ;;  %v1393_v58 = vmul.f32 0.5, %v4754_v40  ;;  %v1395_v59 = vmul.f32 0.5, %v4760_v53 }
 0xd13   : > { %v1424_v34 = vadd.f32 %v1416_v60, %v4752_v38  ;;  %v1418_v63 = vmul.f32 %v1410_v61, %v4757_v50  ;;  %v4772_v1 = vadd.f32 %v1383_v42, %v1286_v33  ;;  %v1385_v2 = vpop.f32.mrb[29].mxu1 }
 0xd14   : > { %v1419_v47 = vmul.f32 %v1411_v29, %v4760_v53  ;;  %v4775_v3 = vadd.f32 %v1385_v2, %v1290_v36  ;;  %v1387_v45 = vpop.f32.mrb[30].mxu1  ;;  %v1425_v5 = vadd.f32 %v1417_v62, %v4754_v40 }
 0xd15   : > { %v1432_v7 = vmul.f32 0.7978846, %v1424_v34  ;;  %v1426_v8 = vadd.f32 %v1418_v63, %v4757_v50  ;;  %v1404_v9 = vmul.f32 0.044715, %v4772_v1  ;;  %v1388_v43 = vadd.f32 %v1387_v45, %v1286_v33  ;;  %v1389_v11 = vpop.f32.mrb[31].mxu1 }
 0xd16   : > { %v1405_v44 = vmul.f32 0.044715, %v4775_v3  ;;  %v1390_v6 = vadd.f32 %v1389_v11, %v1290_v36  ;;  %v1427_v35 = vadd.f32 %v1419_v47, %v4760_v53  ;;  %v1433_v48 = vmul.f32 0.7978846, %v1425_v5 }
 0xd17   : > { %4303 = vtanh.f32 %v1432_v7  ;;  %v1434_v4 = vmul.f32 0.7978846, %v1426_v8  ;;  %v1412_v12 = vmul.f32 %v1404_v9, %v4772_v1  ;;  %v1406_v13 = vmul.f32 0.044715, %v1388_v43 }
 0xd18   : > { %v1413_v14 = vmul.f32 %v1405_v44, %v4775_v3  ;;  %v1407_v15 = vmul.f32 0.044715, %v1390_v6  ;;  %v1435_v16 = vmul.f32 0.7978846, %v1427_v35  ;;  %4305 = vtanh.f32 %v1433_v48 }
 0xd19   : > { %4307 = vtanh.f32 %v1434_v4  ;;  %v1420_v18 = vmul.f32 %v1412_v12, %v4772_v1  ;;  %v1414_v19 = vmul.f32 %v1406_v13, %v1388_v43  ;;  %v1396_v50 = vmul.f32 0.5, %v4772_v1 }
 0xd1a   : > { %v1421_v20 = vmul.f32 %v1413_v14, %v4775_v3  ;;  %v1415_v21 = vmul.f32 %v1407_v15, %v1390_v6  ;;  %4309 = vtanh.f32 %v1435_v16  ;;  %v1398_v40 = vmul.f32 0.5, %v1388_v43 }
 0xd1b   : > { %v1422_v22 = vmul.f32 %v1414_v19, %v1388_v43  ;;  %v1428_v23 = vadd.f32 %v1420_v18, %v4772_v1  ;;  %v1397_v53 = vmul.f32 0.5, %v4775_v3  ;;  %v1399_v9 = vmul.f32 0.5, %v1390_v6  ;;  %v1649_v1 = vld [vmem:[%s4518_s23 + $0xc0] ss:$0 sm:$0xff] }
 0xd1c   : > { %v1423_v24 = vmul.f32 %v1415_v21, %v1390_v6  ;;  %v1429_v25 = vadd.f32 %v1421_v20, %v4775_v3 }
 0xd1d   : > { %v1430_v26 = vadd.f32 %v1422_v22, %v1388_v43  ;;  %v1436_v27 = vmul.f32 0.7978846, %v1428_v23 }
 0xd1e   : > { %v1431_v17 = vadd.f32 %v1423_v24, %v1390_v6  ;;  %v1437_v31 = vmul.f32 0.7978846, %v1429_v25 }
 0xd1f   : > { %v1438_v32 = vmul.f32 0.7978846, %v1430_v26  ;;  %4311 = vtanh.f32 %v1436_v27 }
 0xd20   : > { %v1439_v33 = vmul.f32 0.7978846, %v1431_v17  ;;  %4313 = vtanh.f32 %v1437_v31 }
 0xd21   : > { %v4304_v36 = vpop.eup %4303  ;;  %4315 = vtanh.f32 %v1438_v32 }
 0xd22   : > { %v4306_v37 = vpop.eup %4305  ;;  %v1448_v39 = vadd.f32 1.0, %v4304_v36  ;;  %4317 = vtanh.f32 %v1439_v33 }
 0xd23   : > { %v4308_v41 = vpop.eup %4307  ;;  %v1449_v49 = vadd.f32 1.0, %v4306_v37 }
 0xd24   : > { %v4310_v51 = vpop.eup %4309  ;;  %v1450_v57 = vadd.f32 1.0, %v4308_v41  ;;  %v1456_v61 = vmul.f32 %v1448_v39, %v1392_v52 }
 0xd25   : > { %v1451_v60 = vadd.f32 1.0, %v4310_v51  ;;  %v1457_v29 = vmul.f32 %v1449_v49, %v1393_v58 }
 0xd26   : > { %v1458_v62 = vmul.f32 %v1450_v57, %v1394_v55 }
 0xd27   : > { %v1459_v42 = vmul.f32 %v1451_v60, %v1395_v59 }
 0xd28   : > { %v1496_v34 = vpack.c.bf16 %v1458_v62, %v1456_v61 }
 0xd29   : > { %v4312_v63 = vpop.eup %4311  ;;  %v1497_v2 = vpack.c.bf16 %v1459_v42, %v1457_v29 }
 0xd2a   : > { %v4314_v47 = vpop.eup %4313  ;;  %v1452_v45 = vadd.f32 1.0, %v4312_v63 }
 0xd2b   : > { %v4316_v5 = vpop.eup %4315  ;;  %1628 = vmatprep.mubr.bf16.mxu0 %v1497_v2  ;;  %v1453_v38 = vadd.f32 1.0, %v4314_v47 }
 0xd2c   : > { %v4318_v7 = vpop.eup %4317  ;;  %1629 = vmatmul.mubr.bf16.vlgmr.msra.gmra.mrb[12].mxu0 %v1496_v34  ;;  %v1454_v8 = vadd.f32 1.0, %v4316_v5  ;;  %v1460_v44 = vmul.f32 %v1452_v45, %v1396_v50  ;;  %v4185_v45 = vld [vmem:[%s4472_s29 + $0x284] ss:$8 sps:$4 sm:$0xff]   ;;  %v4183_v5 = vld [vmem:[%s4472_s29 + $0x280] ss:$8 sps:$4 sm:$0xff]  }
 0xd2d   : > { %v1455_v11 = vadd.f32 1.0, %v4318_v7  ;;  %v1461_v48 = vmul.f32 %v1453_v38, %v1397_v53  ;;  %1785 = vmatprep.subr.bf16.mxu1 %v4185_v45  ;;  %v4188_v38 = vld [vmem:[%s4472_s29 + $0x294] ss:$8 sps:$4 sm:$0xff]   ;;  %v4186_v7 = vld [vmem:[%s4472_s29 + $0x290] ss:$8 sps:$4 sm:$0xff]  }
 0xd2e   : > { %v1462_v35 = vmul.f32 %v1454_v8, %v1398_v40  ;;  %1786 = vmatpush1.bf16.msra.mxu1 %v4183_v5  ;;  %v4191_v50 = vld [vmem:[%s4472_s29 + $0x2a4] ss:$8 sps:$4 sm:$0xff]   ;;  %v4189_v40 = vld [vmem:[%s4472_s29 + $0x2a0] ss:$8 sps:$4 sm:$0xff]   ;;  %v4194_v8 = vld [vmem:[%s4472_s29 + $0x2b4] ss:$8 sps:$4 sm:$0xff]  }
 0xd2f   : > { %v1463_v4 = vmul.f32 %v1455_v11, %v1399_v9  ;;  %1787 = vmatprep.subr.bf16.mxu1 %v4188_v38  ;;  %v4192_v53 = vld [vmem:[%s4472_s29 + $0x2b0] ss:$8 sps:$4 sm:$0xff]  }
 0xd30   : > { %v1498_v12 = vpack.c.bf16 %v1462_v35, %v1460_v44 }
 0xd31   : > { %v1499_v13 = vpack.c.bf16 %v1463_v4, %v1461_v48 }
 0xd32   : > { %1788 = vmatpush1.bf16.msra.mxu1 %v4186_v7 }
 0xd33   : > { %1636 = vmatprep.mubr.bf16.mxu0 %v1499_v13  ;;  %1789 = vmatprep.subr.bf16.mxu1 %v4191_v50 }
 0xd34   : > { %1637 = vmatmul.mubr.bf16.gmra.mrb[16].mxu0 %v1498_v12 }
 0xd36   : > { %1790 = vmatpush1.bf16.msra.mxu1 %v4189_v40 }
 0xd37   : > { %1791 = vmatprep.subr.bf16.mxu1 %v4194_v8 }
 0xd3a   : > { %1792 = vmatpush1.bf16.msra.mxu1 %v4192_v53 }
 0xdff   : > { %v3790_v14 = vpop.f32.mrb[12].mxu0 }
 0xe00   : > { %v3791_v15 = vpop.f32.mrb[13].mxu0 }
 0xe01   : > { %v3792_v16 = vadd.f32 %v3791_v15, %v3790_v14  ;;  %v3793_v18 = vpop.f32.mrb[14].mxu0 }
 0xe02   : > { %v3794_v43 = vpop.f32.mrb[15].mxu0 }
 0xe03   : > { %v1645_v19 = vadd.f32 %v3792_v16, %v4693_v28  ;;  %v3795_v20 = vadd.f32 %v3794_v43, %v3793_v18 }
 0xe05   : > { %v4796_v3 = vadd.f32 %v1649_v1, %v1645_v19  ;;  %v1646_v6 = vadd.f32 %v3795_v20, %v4699_v10  ;;  %v1654_v19 = vld [vmem:[%s4518_s23 + $0xd0] ss:$0 sm:$0xff] }
 0xe07   : > { %v4799_v21 = vadd.f32 %v1649_v1, %v1646_v6  ;;  %v3796_v22 = vpop.f32.mrb[16].mxu0  ;;  %v1656_v23 = vsel %vm405_vm0, %v4796_v3, 0.0 }
 0xe08   : > { %1657 = vadd.xlane.f32.xlu0 %v1656_v23  ;;  %v3797_v24 = vpop.f32.mrb[17].mxu0  ;;  %v1655_v23 = vld [vmem:[%s4518_s23 + $0xe0] ss:$0 sm:$0xff] }
 0xe09   : > { %v3798_v25 = vadd.f32 %v3797_v24, %v3796_v22  ;;  %v3799_v26 = vpop.f32.mrb[18].mxu0  ;;  %v1659_v28 = vsel %vm405_vm0, %v4799_v21, 0.0 }
 0xe0a   : > { %v3800_v27 = vpop.f32.mrb[19].mxu0 }
 0xe0b   : > { %v1647_v17 = vadd.f32 %v3798_v25, %v4696_v46  ;;  %v3801_v31 = vadd.f32 %v3800_v27, %v3799_v26 }
 0xe0c   : > { %1660 = vadd.xlane.f32.xlu0 %v1659_v28 }
 0xe0d   : > { %v4806_v32 = vadd.f32 %v1649_v1, %v1647_v17  ;;  %v1648_v10 = vadd.f32 %v3801_v31, %v4705_v30 }
 0xe0f   : > { %v4809_v33 = vadd.f32 %v1649_v1, %v1648_v10  ;;  %v1662_v36 = vsel %vm405_vm0, %v4806_v32, 0.0 }
 0xe10   : > { %1663 = vadd.xlane.f32.xlu0 %v1662_v36 }
 0xe11   : > { %v1665_v37 = vsel %vm405_vm0, %v4809_v33, 0.0 }
 0xe12   : > { %1666 = vadd.xlane.f32.xlu1 %v1665_v37 }
 0xe95   : > { %v1658_v46 = vpop.xlane.xlu0 %1657 }
 0xe96   : > { %v1668_v39 = vmul.f32 0.015625, %v1658_v46 }
 0xe98   : > { %v1672_v41 = vsub.f32 %v4796_v3, %v1668_v39 }
 0xe99   : > { %v1661_v49 = vpop.xlane.xlu0 %1660 }
 0xe9a   : > { %v1669_v51 = vmul.f32 0.015625, %v1661_v49  ;;  %v1676_v52 = vmul.f32 %v1672_v41, %v1672_v41  ;;  %v3660_v49 = vld [vmem:[%s4518_s23 + $0xf0] ss:$8 sm:$0x3] }
 0xe9c   : > { %v1673_v55 = vsub.f32 %v4799_v21, %v1669_v51  ;;  %v1680_v30 = vsel %vm405_vm0, %v1676_v52, 0.0  ;;  %v1732_v51 = vrot.slane %v3660_v49, %v4568_v54 }
 0xe9d   : > { %1681 = vadd.xlane.f32.xlu0 %v1680_v30  ;;  %v1664_v57 = vpop.xlane.xlu0 %1663 }
 0xe9e   : > { %v1670_v58 = vmul.f32 0.015625, %v1664_v57  ;;  %v1677_v59 = vmul.f32 %v1673_v55, %v1673_v55 }
 0xe9f   : > { %v1667_v60 = vpop.xlane.xlu1 %1666 }
 0xea0   : > { %v1674_v61 = vsub.f32 %v4806_v32, %v1670_v58  ;;  %v1671_v62 = vmul.f32 0.015625, %v1667_v60  ;;  %v1683_v29 = vsel %vm405_vm0, %v1677_v59, 0.0 }
 0xea1   : > { %1684 = vadd.xlane.f32.xlu1 %v1683_v29 }
 0xea2   : > { %v1675_v42 = vsub.f32 %v4809_v33, %v1671_v62  ;;  %v1678_v34 = vmul.f32 %v1674_v61, %v1674_v61 }
 0xea4   : > { %v1686_v63 = vsel %vm405_vm0, %v1678_v34, 0.0  ;;  %v1679_v2 = vmul.f32 %v1675_v42, %v1675_v42 }
 0xea5   : > { %1687 = vadd.xlane.f32.xlu0 %v1686_v63 }
 0xea6   : > { %v1689_v47 = vsel %vm405_vm0, %v1679_v2, 0.0 }
 0xea7   : > { %1690 = vadd.xlane.f32.xlu1 %v1689_v47 }
 0xf2a   : > { %v1682_v9 = vpop.xlane.xlu0 %1681 }
 0xf2b   : > { %v1692_v11 = vmul.f32 0.015625, %v1682_v9 }
 0xf2d   : > { %v1696_v44 = vadd.f32 1e-06, %v1692_v11 }
 0xf2e   : > { %v1685_v35 = vpop.xlane.xlu1 %1684 }
 0xf2f   : > { %4319 = vrsqrt.f32 %v1696_v44  ;;  %v1693_v48 = vmul.f32 0.015625, %v1685_v35 }
 0xf31   : > { %v1697_v4 = vadd.f32 1e-06, %v1693_v48 }
 0xf32   : > { %v1688_v12 = vpop.xlane.xlu0 %1687 }
 0xf33   : > { %4321 = vrsqrt.f32 %v1697_v4  ;;  %v1694_v13 = vmul.f32 0.015625, %v1688_v12 }
 0xf34   : > { %v1691_v14 = vpop.xlane.xlu1 %1690 }
 0xf35   : > { %v1698_v15 = vadd.f32 1e-06, %v1694_v13  ;;  %v1695_v16 = vmul.f32 0.015625, %v1691_v14 }
 0xf37   : > { %4323 = vrsqrt.f32 %v1698_v15  ;;  %v1699_v18 = vadd.f32 1e-06, %v1695_v16 }
 0xf39   : > { %v4320_v1 = vpop.eup %4319  ;;  %4325 = vrsqrt.f32 %v1699_v18  ;;  %v4873_v18 = vld [vmem:[%s5190_s2 + $0x10] sm:$0xff] }
 0xf3a   : > { %v1704_v43 = vmul.f32 %v4320_v1, %v1672_v41 }
 0xf3c   : > { %v1708_v6 = vmul.f32 %v1704_v43, %v1654_v19 }
 0xf3d   : > { %v4322_v20 = vpop.eup %4321 }
 0xf3e   : > { %v1705_v22 = vmul.f32 %v4322_v20, %v1673_v55  ;;  %v1712_v26 = vadd.f32 %v1708_v6, %v1655_v23  ;;  %v1736_v55 = vrot.slane %v3660_v49, %v4571_v56  ;;  %v4879_v20 = vld [vmem:[%s5190_s2] sm:$0xff] }
 0xf40   : > { %v1709_v24 = vmul.f32 %v1705_v22, %v1654_v19 }
 0xf41   : > { %v4324_v25 = vpop.eup %4323 }
 0xf42   : > { %v1713_v27 = vadd.f32 %v1709_v24, %v1655_v23  ;;  %v1706_v17 = vmul.f32 %v4324_v25, %v1674_v61  ;;  %v4886_v24 = vld [vmem:[%s5190_s2 + $0x8] sm:$0xff] }
 0xf43   : > { %v4326_v31 = vpop.eup %4325 }
 0xf44   : > { %v1707_v28 = vmul.f32 %v4326_v31, %v1675_v42  ;;  %v1724_v10 = vpack.c.bf16 %v1713_v27, %v1712_v26  ;;  %v1710_v36 = vmul.f32 %v1706_v17, %v1654_v19  ;;  %v4893_v27 = vld [vmem:[%s5190_s2 + $0x18] sm:$0xff] }
 0xf46   : > { %3669 = vmatmul.mubr.msk.bf16.vlgmr.msra.gmra.mrb[32].mxu1 %vm405_vm0, %v1724_v10  ;;  %v1711_v37 = vmul.f32 %v1707_v28, %v1654_v19  ;;  %v1714_v39 = vadd.f32 %v1710_v36, %v1655_v23 }
 0xf47   : > { %1827 = vmatprep.mubr.bf16.mxu1 %v4407_v0 }
 0xf48   : > { %v1715_v46 = vadd.f32 %v1711_v37, %v1655_v23 }
 0xf4a   : > { %v1725_v41 = vpack.c.bf16 %v1715_v46, %v1714_v39 }
 0xf4e   : > { %3670 = vmatmul.mubr.msk.bf16.gmra.mrb[36].mxu1 %vm405_vm0, %v1725_v41 }
0x1019   : > { %v1819_v52 = vpop.f32.mrb[32].mxu1 }
0x101a   : > { %v4839_v30 = vadd.f32 %v1819_v52, %v1732_v51  ;;  %v1821_v57 = vpop.f32.mrb[33].mxu1 }
0x101b   : > { %v1823_v58 = vpop.f32.mrb[34].mxu1  ;;  %v1822_v61 = vadd.f32 %v1821_v57, %v1736_v55 }
0x101c   : > { %v4841_v59 = vadd.f32 %v1823_v58, %v1732_v51  ;;  %v1825_v60 = vpop.f32.mrb[35].mxu1  ;;  %1842 = vrot.lane.b32.xlu0 %v4839_v30, %s4408_s28 }
0x101d   : > { %v1826_v62 = vadd.f32 %v1825_v60, %v1736_v55 }
0x101e   : > { %v4847_v29 = vpack.c.bf16 %v4841_v59, %v4839_v30  ;;  %1844 = vrot.lane.b32.xlu1 %v4841_v59, %s4408_s28  ;;  %v4086_v42 = vpack.i.bf16 %v4841_v59, %v4839_v30 }
0x101f   : > { %v4853_v34 = vpack.c.bf16 %v1826_v62, %v1822_v61 }
0x1020   : > { %3946 = vmatprep.mubr.msk.bf16.mxu1 %vm715_vm5, %v4847_v29 }
0x1021   : > { %v1829_v63 = vpop.f32.mrb[36].mxu1 }
0x1022   : > { %v1830_v2 = vadd.f32 %v1829_v63, %v1732_v51  ;;  %v1831_v47 = vpop.f32.mrb[37].mxu1 }
0x1023   : > { %v1833_v45 = vpop.f32.mrb[38].mxu1  ;;  %v1832_v7 = vadd.f32 %v1831_v47, %v1736_v55 }
0x1024   : > { %v1834_v5 = vadd.f32 %v1833_v45, %v1732_v51  ;;  %v1835_v38 = vpop.f32.mrb[39].mxu1  ;;  %1846 = vrot.lane.b32.xlu1 %v1830_v2, %s4408_s28 }
0x1025   : > { %v1836_v50 = vadd.f32 %v1835_v38, %v1736_v55 }
0x1026   : > { %v4858_v40 = vpack.c.bf16 %v1834_v5, %v1830_v2  ;;  %1848 = vrot.lane.b32.xlu0 %v1834_v5, %s4408_s28  ;;  %v4091_v8 = vpack.i.bf16 %v1834_v5, %v1830_v2 }
0x1027   : > { %v4861_v53 = vpack.c.bf16 %v1836_v50, %v1832_v7 }
0x108e   : > { %v1843_v9 = vpop.permute.xlu0 %1842 }
0x108f   : > { %1854 = vxpose.xlu1.b32.start [1/4] (short) (narrow) %v1843_v9, 32 }
0x1090   : > { %v1845_v11 = vpop.permute.xlu1 %1844 }
0x1093   : > { %1855 = vxpose.xlu1.b32.cont [2/4] (short) (narrow) %v1845_v11, 32 }
0x1096   : > { %v1847_v44 = vpop.permute.xlu1 %1846 }
0x1097   : > { %1856 = vxpose.xlu1.b32.cont [3/4] (short) (narrow) %v1847_v44, 32 }
0x1098   : > { %v1849_v35 = vpop.permute.xlu0 %1848 }
0x109b   : > { %1857 = vxpose.xlu1.b32.end [4/4] (short) (narrow) %v1849_v35, 32 }
0x10b9   : > { %4092 = vrot.lane.b32.xlu1 %v4091_v8, %s4409_s14 }
0x110f   : > { %v1870_v48 = vpop.trf.xlu1 }
0x1113   : > { %v1871_v4 = vpop.trf.xlu1 }
0x1114   : > { %v1888_v12 = vpack.c.bf16 %v1871_v4, %v1870_v48 }
0x1116   : > { %3942 = vmatprep.subr.bf16.mxu1 %v1888_v12 }
0x1117   : > { %3943 = vmatpush3.bf16.msra.mxu1 %v1888_v12  ;;  %v1872_v13 = vpop.trf.xlu1 }
0x111b   : > { %v1873_v14 = vpop.trf.xlu1 }
0x111c   : > { %v1889_v15 = vpack.c.bf16 %v1873_v14, %v1872_v13 }
0x111e   : > { %3944 = vmatprep.subr.bf16.mxu1 %v1889_v15 }
0x111f   : > { %3945 = vmatpush3.bf16.msra.mxu1 %v1889_v15 }
0x1120   : > { %3950 = vmatprep.subr.bf16.mxu1 %v4853_v34 }
0x1122   : > { %3947 = vmatmul.mubr.msk.bf16.vlgmr.msra.gmra.mrb[40].mxu1 %vm715_vm5, %v4858_v40 }
0x1123   : > { %3951 = vmatpush3.bf16.msra.mxu1 %v4853_v34 }
0x1124   : > { %3952 = vmatprep.subr.bf16.mxu1 %v4861_v53 }
0x1127   : > { %3953 = vmatpush3.bf16.msra.mxu1 %v4861_v53 }
0x112b   : > { %v4093_v38 = vpop.permute.xlu1 %4092 }
0x112c   : > { %v4094_v7 = vunpack.i.l.bf16 %v4093_v38  ;;  %v4095_v50 = vunpack.i.h.bf16 %v4093_v38 }
0x11f5   : > { %v3948_v16 = vpop.f32.mrb[40].mxu1 }
0x11f6   : > { %v1939_v1 = vadd.f32 %v4873_v18, %v3948_v16  ;;  %v1930_v43 = vpop.f32.mrb[41].mxu1 }
0x11f7   : > { %v3949_v19 = vpop.f32.mrb[42].mxu1  ;;  %v1931_v6 = vadd.f32 %v4879_v20, %v1930_v43 }
0x11f8   : > { %v1933_v22 = vpop.f32.mrb[43].mxu1  ;;  %v1951_v23 = vsel %vm715_vm5, %v1939_v1, -inf  ;;  %v1942_v17 = vadd.f32 %v4893_v27, %v3949_v19 }
0x11f9   : > { %1952 = vmax.xlane.f32.xlu0 %v1951_v23  ;;  %v1934_v25 = vadd.f32 %v4886_v24, %v1933_v22  ;;  %v1945_v26 = vsel %vm715_vm5, %v1931_v6, -inf }
0x11fa   : > { %v1954_v28 = vsel %vm715_vm5, %v1942_v17, -inf }
0x11fb   : > { %v1948_v31 = vsel %vm715_vm5, %v1934_v25, -inf }
0x11fd   : > { %1946 = vmax.xlane.f32.xlu0 %v1945_v26 }
0x1201   : > { %1949 = vmax.xlane.f32.xlu0 %v1948_v31 }
0x1205   : > { %1955 = vmax.xlane.f32.xlu0 %v1954_v28 }
0x121b   : > { %4087 = vrot.lane.b32.xlu0 %v4086_v42, %s4409_s14 }
0x1286   : > { %v1953_v10 = vpop.xlane.xlu0 %1952 }
0x1287   : > { %v1959_v36 = vsub.f32 %v1939_v1, %v1953_v10 }
0x1289   : > { %v1965_v39 = vmul.f32 1.442695, %v1959_v36 }
0x128a   : > { %v1947_v37 = vpop.xlane.xlu0 %1946 }
0x128b   : > { %v1957_v46 = vsub.f32 %v1931_v6, %v1947_v37 }
0x128d   : > { %v1961_v41 = vmul.f32 1.442695, %v1957_v46 }
0x128e   : > { %v1950_v49 = vpop.xlane.xlu0 %1949 }
0x128f   : > { %4327 = vpow2.f32 %v1961_v41  ;;  %v1958_v51 = vsub.f32 %v1934_v25, %v1950_v49 }
0x1290   : > { %4329 = vpow2.f32 %v1965_v39 }
0x1291   : > { %v1963_v52 = vmul.f32 1.442695, %v1958_v51 }
0x1292   : > { %v1956_v55 = vpop.xlane.xlu0 %1955 }
0x1293   : > { %4331 = vpow2.f32 %v1963_v52  ;;  %v1960_v30 = vsub.f32 %v1942_v17, %v1956_v55 }
0x1295   : > { %v1967_v57 = vmul.f32 1.442695, %v1960_v30 }
0x1296   : > { %v4088_v47 = vpop.permute.xlu0 %4087 }
0x1297   : > { %4333 = vpow2.f32 %v1967_v57  ;;  %v4089_v45 = vunpack.i.l.bf16 %v4088_v47  ;;  %v4090_v5 = vunpack.i.h.bf16 %v4088_v47 }
0x1299   : > { %v4328_v58 = vpop.eup %4327 }
0x129a   : > { %v1969_v59 = vsel %vm715_vm5, %v4328_v58, 0.0  ;;  %v4330_v60 = vpop.eup %4329 }
0x129b   : > { %1970 = vadd.xlane.f32.xlu0 %v1969_v59  ;;  %v1975_v62 = vsel %vm715_vm5, %v4330_v60, 0.0 }
0x129d   : > { %v4332_v61 = vpop.eup %4331 }
0x129e   : > { %v1972_v42 = vsel %vm715_vm5, %v4332_v61, 0.0 }
0x129f   : > { %1976 = vadd.xlane.f32.xlu0 %v1975_v62  ;;  %1973 = vadd.xlane.f32.xlu1 %v1972_v42 }
0x12a1   : > { %v4334_v63 = vpop.eup %4333 }
0x12a2   : > { %v1978_v2 = vsel %vm715_vm5, %v4334_v63, 0.0 }
0x12a3   : > { %1979 = vadd.xlane.f32.xlu0 %v1978_v2 }
0x12b0   : > { %2098 = vrot.lane.b32.xlu1 %v4858_v40, %s4410_s15 }
0x12b9   : > { %2096 = vrot.lane.b32.xlu0 %v4847_v29, %s4410_s15 }
0x12d7   : > { %2060 = vxpose.xlu0.b32.start [1/4] (short) (narrow) %v4089_v45, 32 }
0x12db   : > { %2061 = vxpose.xlu0.b32.cont [2/4] (short) (narrow) %v4090_v5, 32 }
0x12df   : > { %2062 = vxpose.xlu0.b32.cont [3/4] (short) (narrow) %v4094_v7, 32 }
0x12e3   : > { %2063 = vxpose.xlu0.b32.end [4/4] (short) (narrow) %v4095_v50, 32 }
0x1328   : > { %v1971_v8 = vpop.xlane.xlu0 %1970 }
0x1329   : > { %4335 = vrcp.f32 %v1971_v8 }
0x132c   : > { %v1977_v9 = vpop.xlane.xlu0 %1976  ;;  %v1974_v11 = vpop.xlane.xlu1 %1973 }
0x132d   : > { %4337 = vrcp.f32 %v1974_v11 }
0x132e   : > { %4339 = vrcp.f32 %v1977_v9 }
0x1330   : > { %v1980_v40 = vpop.xlane.xlu0 %1979  ;;  %v2099_v26 = vpop.permute.xlu1 %2098 }
0x1331   : > { %4341 = vrcp.f32 %v1980_v40 }
0x1333   : > { %v4336_v44 = vpop.eup %4335 }
0x1334   : > { %v1985_v48 = vmul.f32 %v4336_v44, %v4328_v58  ;;  %v2097_v1 = vpop.permute.xlu0 %2096 }
0x1337   : > { %v4338_v29 = vpop.eup %4337 }
0x1338   : > { %v4340_v35 = vpop.eup %4339  ;;  %v1986_v4 = vmul.f32 %v4338_v29, %v4332_v61 }
0x1339   : > { %v1987_v14 = vmul.f32 %v4340_v35, %v4330_v60 }
0x133a   : > { %v1989_v13 = vpack.c.bf16 %v1986_v4, %v1985_v48 }
0x133b   : > { %v4342_v12 = vpop.eup %4341 }
0x133c   : > { %v1988_v15 = vmul.f32 %v4342_v12, %v4334_v63  ;;  %3954 = vmatprep.mubr.msk.bf16.mxu1 %vm715_vm5, %v1989_v13 }
0x133e   : > { %v1990_v16 = vpack.c.bf16 %v1988_v15, %v1987_v14 }
0x1340   : > { %3955 = vmatmul.mubr.msk.bf16.vlgmr.msra.gmra.mrb[44].mxu1 %vm715_vm5, %v1990_v16 }
0x1341   : > { %3962 = vmatprep.mubr.msk.bf16.mxu1 %vm715_vm5, %v2097_v1 }
0x1357   : > { %v2076_v43 = vpop.trf.xlu0 }
0x135b   : > { %v2077_v19 = vpop.trf.xlu0 }
0x135c   : > { %v2092_v6 = vpack.c.bf16 %v2077_v19, %v2076_v43 }
0x135e   : > { %3958 = vmatprep.subr.bf16.mxu1 %v2092_v6 }
0x135f   : > { %3959 = vmatpush3.bf16.msra.mxu1 %v2092_v6  ;;  %v2078_v22 = vpop.trf.xlu0  ;;  %v4195_v6 = vld [vmem:[%s4472_s29 + $0x2c0] ss:$8 sps:$4 sm:$0xff]  }
0x1363   : > { %v2079_v23 = vpop.trf.xlu0 }
0x1364   : > { %v2093_v25 = vpack.c.bf16 %v2079_v23, %v2078_v22  ;;  %v4196_v22 = vld [vmem:[%s4472_s29 + $0x2d0] ss:$8 sps:$4 sm:$0xff]   ;;  %v4197_v23 = vld [vmem:[%s4472_s29 + $0x2e0] ss:$8 sps:$4 sm:$0xff]  }
0x1366   : > { %3960 = vmatprep.subr.bf16.mxu1 %v2093_v25 }
0x1367   : > { %3961 = vmatpush3.bf16.msra.mxu1 %v2093_v25  ;;  %v4198_v25 = vld [vmem:[%s4472_s29 + $0x2f0] ss:$8 sps:$4 sm:$0xff]  }
0x1368   : > { %3974 = vmatprep.subr.bf16.mxu1 %v4195_v6 }
0x136a   : > { %3963 = vmatmul.mubr.msk.bf16.vlgmr.msra.gmra.mrb[48].mxu1 %vm715_vm5, %v2099_v26 }
0x136b   : > { %3975 = vmatpush3.bf16.msra.mxu1 %v4195_v6  ;;  %v4204_v6 = vld [vmem:[%s4472_s29 + $0x314] ss:$8 sps:$4 sm:$0xff]  }
0x136c   : > { %3976 = vmatprep.subr.bf16.mxu1 %v4196_v22 }
0x136f   : > { %3977 = vmatpush3.bf16.msra.mxu1 %v4196_v22  ;;  %v4202_v22 = vld [vmem:[%s4472_s29 + $0x310] ss:$8 sps:$4 sm:$0xff]  }
0x1370   : > { %3978 = vmatprep.subr.bf16.mxu1 %v4197_v23 }
0x1373   : > { %3979 = vmatpush3.bf16.msra.mxu1 %v4197_v23  ;;  %v4207_v23 = vld [vmem:[%s4472_s29 + $0x324] ss:$8 sps:$4 sm:$0xff]  }
0x1374   : > { %3980 = vmatprep.subr.bf16.mxu1 %v4198_v25 }
0x1377   : > { %3981 = vmatpush3.bf16.msra.mxu1 %v4198_v25  ;;  %v4205_v25 = vld [vmem:[%s4472_s29 + $0x320] ss:$8 sps:$4 sm:$0xff]  }
0x1413   : > { %v4911_v17 = vpop.f32.mrb[44].mxu1 }
0x1414   : > { %v4913_v31 = vpop.f32.mrb[45].mxu1 }
0x1415   : > { %v4915_v28 = vpop.f32.mrb[46].mxu1 }
0x1416   : > { %v4917_v10 = vpop.f32.mrb[47].mxu1 }
0x143d   : > { %v3964_v36 = vpop.f32.mrb[48].mxu1 }
0x143e   : > { %v2140_v37 = vpop.f32.mrb[49].mxu1  ;;  %v2149_v49 = vadd.f32 %v4873_v18, %v3964_v36 }
0x143f   : > { %v2141_v46 = vadd.f32 %v4879_v20, %v2140_v37  ;;  %v3965_v39 = vpop.f32.mrb[50].mxu1 }
0x1440   : > { %v2143_v41 = vpop.f32.mrb[51].mxu1  ;;  %v2152_v30 = vadd.f32 %v4893_v27, %v3965_v39  ;;  %v2161_v57 = vsel %vm715_vm5, %v2149_v49, -inf }
0x1441   : > { %v2144_v51 = vadd.f32 %v4886_v24, %v2143_v41  ;;  %v2155_v52 = vsel %vm715_vm5, %v2141_v46, -inf }
0x1442   : > { %2156 = vmax.xlane.f32.xlu1 %v2155_v52  ;;  %v2164_v58 = vsel %vm715_vm5, %v2152_v30, -inf }
0x1443   : > { %v2158_v55 = vsel %vm715_vm5, %v2144_v51, -inf }
0x1444   : > { %2159 = vmax.xlane.f32.xlu0 %v2158_v55 }
0x1446   : > { %2162 = vmax.xlane.f32.xlu1 %v2161_v57 }
0x144a   : > { %2165 = vmax.xlane.f32.xlu1 %v2164_v58 }
0x145b   : > { %2203 = vrot.lane.b32.xlu1 %v4853_v34, %s4410_s15 }
0x14cf   : > { %v2157_v18 = vpop.xlane.xlu1 %2156 }
0x14d0   : > { %v2167_v20 = vsub.f32 %v2141_v46, %v2157_v18 }
0x14d1   : > { %v2160_v62 = vpop.xlane.xlu0 %2159 }
0x14d2   : > { %v2171_v60 = vmul.f32 1.442695, %v2167_v20  ;;  %v2168_v27 = vsub.f32 %v2144_v51, %v2160_v62  ;;  %v2377_v62 = vld [vmem:[%s4518_s23 + $0x100] ss:$0 sm:$0xff] }
0x14d3   : > { %v2163_v24 = vpop.xlane.xlu1 %2162 }
0x14d4   : > { %v2169_v59 = vsub.f32 %v2149_v49, %v2163_v24  ;;  %v2173_v45 = vmul.f32 1.442695, %v2168_v27 }
0x14d6   : > { %v2175_v61 = vmul.f32 1.442695, %v2169_v59 }
0x14d7   : > { %v2166_v42 = vpop.xlane.xlu1 %2165 }
0x14d8   : > { %4343 = vpow2.f32 %v2175_v61  ;;  %v2170_v63 = vsub.f32 %v2152_v30, %v2166_v42 }
0x14d9   : > { %4345 = vpow2.f32 %v2171_v60 }
0x14da   : > { %v2177_v2 = vmul.f32 1.442695, %v2170_v63 }
0x14db   : > { %v2204_v47 = vpop.permute.xlu1 %2203 }
0x14dc   : > { %3966 = vmatprep.subr.bf16.mxu0 %v2204_v47  ;;  %4347 = vpow2.f32 %v2177_v2 }
0x14dd   : > { %3967 = vmatpush3.bf16.msra.mxu0 %v2204_v47  ;;  %4349 = vpow2.f32 %v2173_v45 }
0x14e2   : > { %v4344_v5 = vpop.eup %4343 }
0x14e3   : > { %v2185_v34 = vsel %vm715_vm5, %v4344_v5, 0.0  ;;  %v4346_v38 = vpop.eup %4345 }
0x14e4   : > { %2186 = vadd.xlane.f32.xlu1 %v2185_v34  ;;  %v2179_v7 = vsel %vm715_vm5, %v4346_v38, 0.0 }
0x14e6   : > { %v4348_v50 = vpop.eup %4347 }
0x14e7   : > { %v2188_v8 = vsel %vm715_vm5, %v4348_v50, 0.0  ;;  %v4350_v9 = vpop.eup %4349 }
0x14e8   : > { %2180 = vadd.xlane.f32.xlu1 %v2179_v7  ;;  %v2182_v11 = vsel %vm715_vm5, %v4350_v9, 0.0 }
0x14ec   : > { %2189 = vadd.xlane.f32.xlu1 %v2188_v8 }
0x14f0   : > { %2183 = vadd.xlane.f32.xlu1 %v2182_v11 }
0x1501   : > { %2205 = vrot.lane.b32.xlu1 %v4861_v53, %s4410_s15 }
0x1571   : > { %v2187_v40 = vpop.xlane.xlu1 %2186 }
0x1575   : > { %v2181_v44 = vpop.xlane.xlu1 %2180 }
0x1579   : > { %v2190_v29 = vpop.xlane.xlu1 %2189 }
0x157a   : > { %4351 = vrcp.f32 %v2190_v29 }
0x157b   : > { %4353 = vrcp.f32 %v2181_v44 }
0x157c   : > { %4355 = vrcp.f32 %v2187_v40 }
0x157d   : > { %v2184_v35 = vpop.xlane.xlu1 %2183 }
0x157e   : > { %4357 = vrcp.f32 %v2184_v35 }
0x1581   : > { %v2206_v48 = vpop.permute.xlu1 %2205 }
0x1582   : > { %3968 = vmatprep.subr.bf16.mxu0 %v2206_v48 }
0x1583   : > { %3969 = vmatpush3.bf16.msra.mxu0 %v2206_v48 }
0x1584   : > { %v4352_v4 = vpop.eup %4351 }
0x1585   : > { %v4354_v12 = vpop.eup %4353  ;;  %v2198_v15 = vmul.f32 %v4352_v4, %v4348_v50 }
0x1586   : > { %v4356_v13 = vpop.eup %4355  ;;  %v2195_v53 = vmul.f32 %v4354_v12, %v4346_v38 }
0x1587   : > { %v2197_v1 = vmul.f32 %v4356_v13, %v4344_v5 }
0x1588   : > { %v4358_v14 = vpop.eup %4357 }
0x1589   : > { %v2196_v16 = vmul.f32 %v4358_v14, %v4350_v9  ;;  %v2200_v19 = vpack.c.bf16 %v2198_v15, %v2197_v1 }
0x158b   : > { %v2199_v43 = vpack.c.bf16 %v2196_v16, %v2195_v53 }
0x158d   : > { %3970 = vmatprep.mubr.msk.bf16.mxu0 %vm715_vm5, %v2199_v43  ;;  %v4201_v43 = vld [vmem:[%s4472_s29 + $0x304] ss:$8 sps:$4 sm:$0xff]  }
0x158e   : > { %3971 = vmatmul.mubr.msk.bf16.vlgmr.msra.gmra.mrb[20].mxu0 %vm715_vm5, %v2200_v19  ;;  %v4199_v19 = vld [vmem:[%s4472_s29 + $0x300] ss:$8 sps:$4 sm:$0xff]   ;;  %2513 = vmatprep.subr.bf16.mxu0 %v4201_v43 }
0x158f   : > { %2545 = vmatprep.mubr.bf16.mxu0 %v4407_v0  ;;  %2514 = vmatpush1.bf16.msra.mxu0 %v4199_v19 }
0x1590   : > { %2515 = vmatprep.subr.bf16.mxu0 %v4204_v6 }
0x1593   : > { %2516 = vmatpush1.bf16.msra.mxu0 %v4202_v22 }
0x1594   : > { %2517 = vmatprep.subr.bf16.mxu0 %v4207_v23 }
0x1597   : > { %2518 = vmatpush1.bf16.msra.mxu0 %v4205_v25 }
0x1661   : > { %v3972_v26 = vpop.f32.mrb[20].mxu0 }
0x1662   : > { %v2249_v36 = vpop.f32.mrb[21].mxu0 }
0x1663   : > { %v3973_v37 = vpop.f32.mrb[22].mxu0 }
0x1664   : > { %v4101_v46 = vpack.i.bf16 %v3973_v37, %v3972_v26  ;;  %v2252_v39 = vpop.f32.mrb[23].mxu0  ;;  %v4210_v26 = vld [vmem:[%s4472_s29 + $0x334] ss:$8 sps:$4 sm:$0xff]  }
0x1665   : > { %v4096_v41 = vpack.i.bf16 %v2252_v39, %v2249_v36  ;;  %v4208_v36 = vld [vmem:[%s4472_s29 + $0x330] ss:$8 sps:$4 sm:$0xff]   ;;  %2519 = vmatprep.subr.bf16.mxu0 %v4210_v26 }
0x1666   : > { %4102 = vrot.lane.b32.xlu1 %v4101_v46, %s4409_s14  ;;  %2520 = vmatpush1.bf16.msra.mxu0 %v4208_v36 }
0x1667   : > { %4097 = vrot.lane.b32.xlu0 %v4096_v41, %s4409_s14 }
0x16d8   : > { %v4103_v49 = vpop.permute.xlu1 %4102 }
0x16d9   : > { %v4105_v51 = vunpack.i.h.bf16 %v4103_v49  ;;  %v4104_v52 = vunpack.i.l.bf16 %v4103_v49  ;;  %v4098_v55 = vpop.permute.xlu0 %4097 }
0x16da   : > { %v4100_v30 = vunpack.i.h.bf16 %v4098_v55  ;;  %v4099_v57 = vunpack.i.l.bf16 %v4098_v55 }
0x16db   : > { %v2283_v58 = vsel %vm715_vm5, %v4915_v28, %v4105_v51  ;;  %v2282_v18 = vsel %vm715_vm5, %v4911_v17, %v4104_v52 }
0x16dc   : > { %v2293_v20 = vpack.c.bf16 %v2283_v58, %v2282_v18  ;;  %v2281_v24 = vsel %vm715_vm5, %v4917_v10, %v4100_v30  ;;  %v2280_v59 = vsel %vm715_vm5, %v4913_v31, %v4099_v57 }
0x16dd   : > { %v2292_v60 = vpack.c.bf16 %v2281_v24, %v2280_v59  ;;  %v2382_v24 = vld [vmem:[%s4518_s23 + $0x110] ss:$0 sm:$0xff] }
0x16df   : > { %3982 = vmatprep.mubr.msk.bf16.mxu1 %vm405_vm0, %v2292_v60 }
0x16e0   : > { %3983 = vmatmul.mubr.msk.bf16.vlgmr.msra.gmra.mrb[52].mxu1 %vm405_vm0, %v2293_v20 }
0x17b3   : > { %v3984_v61 = vpop.f32.mrb[52].mxu1 }
0x17b4   : > { %v2358_v42 = vpop.f32.mrb[53].mxu1  ;;  %v2375_v28 = vadd.f32 %v3984_v61, %v4806_v32 }
0x17b5   : > { %v2373_v63 = vadd.f32 %v2358_v42, %v4796_v3  ;;  %v3985_v17 = vpop.f32.mrb[54].mxu1 }
0x17b6   : > { %v2361_v27 = vpop.f32.mrb[55].mxu1  ;;  %v4960_v47 = vadd.f32 %v2377_v62, %v2375_v28  ;;  %v2376_v31 = vadd.f32 %v3985_v17, %v4809_v33  ;;  %v2383_v28 = vld [vmem:[%s4518_s23 + $0x120] ss:$0 sm:$0xff] }
0x17b7   : > { %v4957_v2 = vadd.f32 %v2377_v62, %v2373_v63  ;;  %v2374_v10 = vadd.f32 %v2361_v27, %v4799_v21 }
0x17b8   : > { %v4969_v3 = vadd.f32 %v2377_v62, %v2376_v31  ;;  %v2390_v34 = vsel %vm405_vm0, %v4960_v47, 0.0 }
0x17b9   : > { %v4963_v45 = vadd.f32 %v2377_v62, %v2374_v10  ;;  %v2384_v5 = vsel %vm405_vm0, %v4957_v2, 0.0 }
0x17ba   : > { %2385 = vadd.xlane.f32.xlu1 %v2384_v5  ;;  %v2393_v21 = vsel %vm405_vm0, %v4969_v3, 0.0 }
0x17bb   : > { %v2387_v32 = vsel %vm405_vm0, %v4963_v45, 0.0 }
0x17bc   : > { %2388 = vadd.xlane.f32.xlu0 %v2387_v32 }
0x17be   : > { %2391 = vadd.xlane.f32.xlu1 %v2390_v34 }
0x17c2   : > { %2394 = vadd.xlane.f32.xlu1 %v2393_v21 }
0x1847   : > { %v2386_v33 = vpop.xlane.xlu1 %2385 }
0x1848   : > { %v2396_v38 = vmul.f32 0.015625, %v2386_v33 }
0x1849   : > { %v2389_v7 = vpop.xlane.xlu0 %2388 }
0x184a   : > { %v2400_v50 = vsub.f32 %v4957_v2, %v2396_v38  ;;  %v2397_v8 = vmul.f32 0.015625, %v2389_v7 }
0x184b   : > { %v2392_v9 = vpop.xlane.xlu1 %2391 }
0x184c   : > { %v2401_v11 = vsub.f32 %v4963_v45, %v2397_v8  ;;  %v2398_v40 = vmul.f32 0.015625, %v2392_v9  ;;  %v2404_v44 = vmul.f32 %v2400_v50, %v2400_v50  ;;  %v4212_v8 = vld [vmem:[%s4472_s29 + $0x340] ss:$8 sps:$4 sm:$0xff]   ;;  %v4213_v9 = vld [vmem:[%s4472_s29 + $0x3d0] ss:$8 sps:$4 sm:$0xff]  }
0x184e   : > { %v2402_v29 = vsub.f32 %v4960_v47, %v2398_v40  ;;  %v2408_v35 = vsel %vm405_vm0, %v2404_v44, 0.0  ;;  %v2405_v48 = vmul.f32 %v2401_v11, %v2401_v11  ;;  %v4216_v40 = vld [vmem:[%s4472_s29 + $0x360] ss:$8 sps:$4 sm:$0xff]   ;;  %v4217_v44 = vld [vmem:[%s4472_s29 + $0x3f0] ss:$8 sps:$4 sm:$0xff]  }
0x184f   : > { %2409 = vadd.xlane.f32.xlu1 %v2408_v35  ;;  %v2395_v4 = vpop.xlane.xlu1 %2394  ;;  %v4219_v35 = vld [vmem:[%s4472_s29 + $0x400] ss:$8 sps:$4 sm:$0xff]  }
0x1850   : > { %v2399_v12 = vmul.f32 0.015625, %v2395_v4  ;;  %v2411_v13 = vsel %vm405_vm0, %v2405_v48, 0.0  ;;  %v2406_v14 = vmul.f32 %v2402_v29, %v2402_v29  ;;  %v4220_v48 = vld [vmem:[%s4472_s29 + $0x380] ss:$8 sps:$4 sm:$0xff]   ;;  %v4221_v4 = vld [vmem:[%s4472_s29 + $0x410] ss:$8 sps:$4 sm:$0xff]  }
0x1851   : > { %2412 = vadd.xlane.f32.xlu0 %v2411_v13  ;;  %v4223_v13 = vld [vmem:[%s4472_s29 + $0x420] ss:$8 sps:$4 sm:$0xff]  }
0x1852   : > { %v2403_v15 = vsub.f32 %v4969_v3, %v2399_v12  ;;  %v2414_v53 = vsel %vm405_vm0, %v2406_v14, 0.0  ;;  %v4222_v12 = vld [vmem:[%s4472_s29 + $0x390] ss:$8 sps:$4 sm:$0xff]   ;;  %v4224_v14 = vld [vmem:[%s4472_s29 + $0x3a0] ss:$8 sps:$4 sm:$0xff]  }
0x1853   : > { %2415 = vadd.xlane.f32.xlu1 %v2414_v53  ;;  %v4226_v53 = vld [vmem:[%s4472_s29 + $0x3b0] ss:$8 sps:$4 sm:$0xff]  }
0x1854   : > { %v2407_v16 = vmul.f32 %v2403_v15, %v2403_v15 }
0x1856   : > { %v2417_v1 = vsel %vm405_vm0, %v2407_v16, 0.0  ;;  %v3685_v16 = vld [vmem:[%s4518_s23 + $0x130] ss:$8 sm:$0x3] }
0x1857   : > { %2418 = vadd.xlane.f32.xlu0 %v2417_v1  ;;  %v2460_v1 = vrot.slane %v3685_v16, %v4568_v54  ;;  %v2464_v43 = vrot.slane %v3685_v16, %v4571_v56 }
0x18dc   : > { %v2410_v37 = vpop.xlane.xlu1 %2409 }
0x18dd   : > { %v2420_v46 = vmul.f32 0.015625, %v2410_v37 }
0x18de   : > { %v2413_v39 = vpop.xlane.xlu0 %2412 }
0x18df   : > { %v2424_v41 = vadd.f32 1e-06, %v2420_v46  ;;  %v2421_v49 = vmul.f32 0.015625, %v2413_v39 }
0x18e0   : > { %v2416_v51 = vpop.xlane.xlu1 %2415 }
0x18e1   : > { %4359 = vrsqrt.f32 %v2424_v41  ;;  %v2425_v52 = vadd.f32 1e-06, %v2421_v49  ;;  %v2422_v55 = vmul.f32 0.015625, %v2416_v51 }
0x18e3   : > { %4361 = vrsqrt.f32 %v2425_v52  ;;  %v2426_v30 = vadd.f32 1e-06, %v2422_v55 }
0x18e4   : > { %v2419_v57 = vpop.xlane.xlu0 %2418 }
0x18e5   : > { %4363 = vrsqrt.f32 %v2426_v30  ;;  %v2423_v58 = vmul.f32 0.015625, %v2419_v57 }
0x18e7   : > { %v2427_v18 = vadd.f32 1e-06, %v2423_v58 }
0x18e9   : > { %4365 = vrsqrt.f32 %v2427_v18 }
0x18eb   : > { %v4360_v20 = vpop.eup %4359 }
0x18ec   : > { %v2432_v59 = vmul.f32 %v4360_v20, %v2400_v50  ;;  %v4211_v50 = vld [vmem:[%s4472_s29 + $0x3c0] ss:$8 sps:$4 sm:$0xff]  }
0x18ed   : > { %v4362_v60 = vpop.eup %4361  ;;  %3824 = vmatprep.subr.bf16.mxu1 %v4211_v50 }
0x18ee   : > { %v2436_v61 = vmul.f32 %v2432_v59, %v2382_v24  ;;  %v2433_v62 = vmul.f32 %v4362_v60, %v2401_v11  ;;  %3825 = vmatpush3.bf16.msra.mxu1 %v4212_v8  ;;  %v4214_v11 = vld [vmem:[%s4472_s29 + $0x350] ss:$8 sps:$4 sm:$0xff]  }
0x18ef   : > { %v4364_v42 = vpop.eup %4363  ;;  %3826 = vmatprep.subr.bf16.mxu1 %v4213_v9 }
0x18f0   : > { %v2437_v63 = vmul.f32 %v2433_v62, %v2382_v24  ;;  %v2434_v17 = vmul.f32 %v4364_v42, %v2402_v29  ;;  %v2440_v27 = vadd.f32 %v2436_v61, %v2383_v28  ;;  %v4218_v29 = vld [vmem:[%s4472_s29 + $0x370] ss:$8 sps:$4 sm:$0xff]  }
0x18f2   : > { %v2441_v10 = vadd.f32 %v2437_v63, %v2383_v28  ;;  %v2438_v34 = vmul.f32 %v2434_v17, %v2382_v24  ;;  %3827 = vmatpush3.bf16.msra.mxu1 %v4214_v11 }
0x18f3   : > { %v4366_v31 = vpop.eup %4365 }
0x18f4   : > { %v2435_v5 = vmul.f32 %v4366_v31, %v2403_v15  ;;  %v2452_v32 = vpack.c.bf16 %v2441_v10, %v2440_v27  ;;  %v2442_v38 = vadd.f32 %v2438_v34, %v2383_v28  ;;  %v4225_v15 = vld [vmem:[%s4472_s29 + $0x430] ss:$8 sps:$4 sm:$0xff]  }
0x18f6   : > { %3694 = vmatmul.mubr.msk.bf16.vlgmr.msra.gmra.mrb[24].mxu0 %vm405_vm0, %v2452_v32  ;;  %v2439_v21 = vmul.f32 %v2435_v5, %v2382_v24 }
0x18f7   : > { %2555 = vmatprep.mubr.bf16.mxu0 %v4407_v0  ;;  %v4215_v0 = vld [vmem:[%s4472_s29 + $0x3e0] ss:$8 sps:$4 sm:$0xff]  }
0x18f8   : > { %v2443_v33 = vadd.f32 %v2439_v21, %v2383_v28  ;;  %3828 = vmatprep.subr.bf16.mxu1 %v4215_v0 }
0x18f9   : > { %3829 = vmatpush3.bf16.msra.mxu1 %v4216_v40 }
0x18fa   : > { %v2453_v7 = vpack.c.bf16 %v2443_v33, %v2442_v38  ;;  %3830 = vmatprep.subr.bf16.mxu1 %v4217_v44 }
0x18fd   : > { %3831 = vmatpush3.bf16.msra.mxu1 %v4218_v29 }
0x18fe   : > { %3695 = vmatmul.mubr.msk.bf16.gmra.mrb[28].mxu0 %vm405_vm0, %v2453_v7  ;;  %3832 = vmatprep.subr.bf16.mxu1 %v4219_v35 }
0x1901   : > { %3833 = vmatpush3.bf16.msra.mxu1 %v4220_v48 }
0x1902   : > { %3834 = vmatprep.subr.bf16.mxu1 %v4221_v4 }
0x1905   : > { %3835 = vmatpush3.bf16.msra.mxu1 %v4222_v12 }
0x1906   : > { %3836 = vmatprep.subr.bf16.mxu1 %v4223_v13 }
0x1909   : > { %3837 = vmatpush3.bf16.msra.mxu1 %v4224_v14 }
0x190a   : > { %3838 = vmatprep.subr.bf16.mxu1 %v4225_v15 }
0x190d   : > { %3839 = vmatpush3.bf16.msra.mxu1 %v4226_v53 }
0x19c9   : > { %v2547_v19 = vpop.f32.mrb[24].mxu0 }
0x19ca   : > { %v5015_v6 = vadd.f32 %v2547_v19, %v2460_v1  ;;  %v2549_v22 = vpop.f32.mrb[25].mxu0 }
0x19cb   : > { %v5017_v23 = vadd.f32 %v2549_v22, %v2464_v43  ;;  %v2551_v25 = vpop.f32.mrb[26].mxu0 }
0x19cc   : > { %v2574_v26 = vmul.f32 0.044715, %v5015_v6  ;;  %v5020_v36 = vadd.f32 %v2551_v25, %v2460_v1  ;;  %v2553_v37 = vpop.f32.mrb[27].mxu0  ;;  %v2566_v25 = vmul.f32 0.5, %v5015_v6 }
0x19cd   : > { %v2575_v46 = vmul.f32 0.044715, %v5017_v23  ;;  %v5023_v39 = vadd.f32 %v2553_v37, %v2464_v43 }
0x19ce   : > { %v2582_v54 = vmul.f32 %v2574_v26, %v5015_v6  ;;  %v2576_v56 = vmul.f32 0.044715, %v5020_v36  ;;  %v2568_v26 = vmul.f32 0.5, %v5020_v36 }
0x19cf   : > { %v2583_v41 = vmul.f32 %v2575_v46, %v5017_v23  ;;  %v2577_v49 = vmul.f32 0.044715, %v5023_v39  ;;  %v2567_v46 = vmul.f32 0.5, %v5017_v23 }
0x19d0   : > { %v2590_v51 = vmul.f32 %v2582_v54, %v5015_v6  ;;  %v2584_v52 = vmul.f32 %v2576_v56, %v5020_v36  ;;  %v2569_v54 = vmul.f32 0.5, %v5023_v39 }
0x19d1   : > { %v2591_v55 = vmul.f32 %v2583_v41, %v5017_v23  ;;  %v2585_v30 = vmul.f32 %v2577_v49, %v5023_v39  ;;  %v2557_v57 = vpop.f32.mrb[28].mxu0 }
0x19d2   : > { %v2598_v58 = vadd.f32 %v2590_v51, %v5015_v6  ;;  %v2592_v18 = vmul.f32 %v2584_v52, %v5020_v36  ;;  %v5035_v20 = vadd.f32 %v2557_v57, %v2460_v1  ;;  %v2559_v24 = vpop.f32.mrb[29].mxu0 }
0x19d3   : > { %v2593_v59 = vmul.f32 %v2585_v30, %v5023_v39  ;;  %v5038_v60 = vadd.f32 %v2559_v24, %v2464_v43  ;;  %v2561_v61 = vpop.f32.mrb[30].mxu0  ;;  %v2599_v62 = vadd.f32 %v2591_v55, %v5017_v23 }
0x19d4   : > { %v2606_v42 = vmul.f32 0.7978846, %v2598_v58  ;;  %v2600_v28 = vadd.f32 %v2592_v18, %v5020_v36  ;;  %v2578_v63 = vmul.f32 0.044715, %v5035_v20  ;;  %v2562_v17 = vadd.f32 %v2561_v61, %v2460_v1  ;;  %v2563_v27 = vpop.f32.mrb[31].mxu0 }
0x19d5   : > { %v2579_v10 = vmul.f32 0.044715, %v5038_v60  ;;  %v2564_v31 = vadd.f32 %v2563_v27, %v2464_v43  ;;  %v2601_v5 = vadd.f32 %v2593_v59, %v5023_v39  ;;  %v2607_v32 = vmul.f32 0.7978846, %v2599_v62 }
0x19d6   : > { %4367 = vtanh.f32 %v2606_v42  ;;  %v2608_v34 = vmul.f32 0.7978846, %v2600_v28  ;;  %v2586_v21 = vmul.f32 %v2578_v63, %v5035_v20  ;;  %v2580_v33 = vmul.f32 0.044715, %v2562_v17 }
0x19d7   : > { %v2587_v38 = vmul.f32 %v2579_v10, %v5038_v60  ;;  %v2581_v7 = vmul.f32 0.044715, %v2564_v31  ;;  %v2609_v50 = vmul.f32 0.7978846, %v2601_v5  ;;  %4369 = vtanh.f32 %v2607_v32 }
0x19d8   : > { %4371 = vtanh.f32 %v2608_v34  ;;  %v2594_v8 = vmul.f32 %v2586_v21, %v5035_v20  ;;  %v2588_v9 = vmul.f32 %v2580_v33, %v2562_v17  ;;  %v2570_v23 = vmul.f32 0.5, %v5035_v20  ;;  %v4227_v34 = vld [vmem:[%s4472_s29 + $0x440] ss:$8 sps:$4 sm:$0xff]  }
0x19d9   : > { %v2595_v11 = vmul.f32 %v2587_v38, %v5038_v60  ;;  %v2589_v0 = vmul.f32 %v2581_v7, %v2564_v31  ;;  %4373 = vtanh.f32 %v2609_v50  ;;  %v2572_v36 = vmul.f32 0.5, %v2562_v17  ;;  %3986 = vmatprep.subr.bf16.mxu0 %v4227_v34 }
0x19da   : > { %v2596_v40 = vmul.f32 %v2588_v9, %v2562_v17  ;;  %v2602_v44 = vadd.f32 %v2594_v8, %v5035_v20  ;;  %v2571_v61 = vmul.f32 0.5, %v5038_v60  ;;  %v2573_v62 = vmul.f32 0.5, %v2564_v31  ;;  %v4228_v20 = vld [vmem:[%s4472_s29 + $0x450] ss:$8 sps:$4 sm:$0xff]   ;;  %3987 = vmatpush3.bf16.msra.mxu0 %v4227_v34  ;;  %v2823_v9 = vld [vmem:[%s4518_s23 + $0x140] ss:$0 sm:$0xff] }
0x19db   : > { %v2597_v29 = vmul.f32 %v2589_v0, %v2564_v31  ;;  %v2603_v35 = vadd.f32 %v2595_v11, %v5038_v60  ;;  %3988 = vmatprep.subr.bf16.mxu0 %v4228_v20  ;;  %v4229_v60 = vld [vmem:[%s4472_s29 + $0x460] ss:$8 sps:$4 sm:$0xff]  }
0x19dc   : > { %v2604_v48 = vadd.f32 %v2596_v40, %v2562_v17  ;;  %v2610_v4 = vmul.f32 0.7978846, %v2602_v44  ;;  %v4230_v17 = vld [vmem:[%s4472_s29 + $0x470] ss:$8 sps:$4 sm:$0xff]  }
0x19dd   : > { %v2605_v12 = vadd.f32 %v2597_v29, %v2564_v31  ;;  %v2611_v13 = vmul.f32 0.7978846, %v2603_v35 }
0x19de   : > { %v2612_v14 = vmul.f32 0.7978846, %v2604_v48  ;;  %4375 = vtanh.f32 %v2610_v4  ;;  %3989 = vmatpush3.bf16.msra.mxu0 %v4228_v20 }
0x19df   : > { %v2613_v15 = vmul.f32 0.7978846, %v2605_v12  ;;  %4377 = vtanh.f32 %v2611_v13  ;;  %3990 = vmatprep.subr.bf16.mxu0 %v4229_v60 }
0x19e0   : > { %v4368_v53 = vpop.eup %4367  ;;  %4379 = vtanh.f32 %v2612_v14 }
0x19e1   : > { %v4370_v16 = vpop.eup %4369  ;;  %v2622_v1 = vadd.f32 1.0, %v4368_v53  ;;  %4381 = vtanh.f32 %v2613_v15 }
0x19e2   : > { %v4372_v43 = vpop.eup %4371  ;;  %v2623_v19 = vadd.f32 1.0, %v4370_v16  ;;  %3991 = vmatpush3.bf16.msra.mxu0 %v4229_v60 }
0x19e3   : > { %v4374_v22 = vpop.eup %4373  ;;  %v2624_v37 = vadd.f32 1.0, %v4372_v43  ;;  %v2630_v41 = vmul.f32 %v2622_v1, %v2566_v25  ;;  %3992 = vmatprep.subr.bf16.mxu0 %v4230_v17 }
0x19e4   : > { %v2625_v56 = vadd.f32 1.0, %v4374_v22  ;;  %v2631_v51 = vmul.f32 %v2623_v19, %v2567_v46 }
0x19e5   : > { %v2632_v49 = vmul.f32 %v2624_v37, %v2568_v26 }
0x19e6   : > { %v2633_v52 = vmul.f32 %v2625_v56, %v2569_v54  ;;  %3993 = vmatpush3.bf16.msra.mxu0 %v4230_v17 }
0x19e7   : > { %v2670_v55 = vpack.c.bf16 %v2632_v49, %v2630_v41 }
0x19e8   : > { %v4376_v30 = vpop.eup %4375  ;;  %v2671_v57 = vpack.c.bf16 %v2633_v52, %v2631_v51 }
0x19e9   : > { %v4378_v58 = vpop.eup %4377  ;;  %v2626_v18 = vadd.f32 1.0, %v4376_v30 }
0x19ea   : > { %v4380_v24 = vpop.eup %4379  ;;  %2802 = vmatprep.mubr.bf16.mxu1 %v2671_v57  ;;  %v2627_v6 = vadd.f32 1.0, %v4378_v58 }
0x19eb   : > { %v4382_v59 = vpop.eup %4381  ;;  %2803 = vmatmul.mubr.bf16.vlgmr.msra.gmra.mrb[56].mxu1 %v2670_v55  ;;  %v2628_v39 = vadd.f32 1.0, %v4380_v24  ;;  %v2634_v28 = vmul.f32 %v2626_v18, %v2570_v23 }
0x19ec   : > { %v2629_v42 = vadd.f32 1.0, %v4382_v59  ;;  %v2635_v27 = vmul.f32 %v2627_v6, %v2571_v61  ;;  %v4411_v61 = vmov 0.0  }
0x19ed   : > { %v2636_v63 = vmul.f32 %v2628_v39, %v2572_v36  ;;  %3998 = vmatprep.subr.bf16.mxu0 %v4411_v61 }
0x19ee   : > { %v2637_v10 = vmul.f32 %v2629_v42, %v2573_v62 }
0x19ef   : > { %v2672_v5 = vpack.c.bf16 %v2636_v63, %v2634_v28 }
0x19f0   : > { %v2673_v32 = vpack.c.bf16 %v2637_v10, %v2635_v27 }
0x19f2   : > { %2810 = vmatprep.mubr.bf16.mxu1 %v2673_v32 }
0x19f3   : > { %2811 = vmatmul.mubr.bf16.gmra.mrb[60].mxu1 %v2672_v5 }
0x1abe   : > { %v3840_v31 = vpop.f32.mrb[56].mxu1 }
0x1abf   : > { %v3841_v21 = vpop.f32.mrb[57].mxu1 }
0x1ac0   : > { %v3842_v33 = vadd.f32 %v3841_v21, %v3840_v31  ;;  %v3843_v38 = vpop.f32.mrb[58].mxu1  ;;  %v2917_v21 = vld [vmem:[%s4518_s23 + $0x150] ss:$0 sm:$0xff] }
0x1ac1   : > { %v3844_v7 = vpop.f32.mrb[59].mxu1 }
0x1ac2   : > { %v2819_v50 = vadd.f32 %v3842_v33, %v4957_v2  ;;  %v3845_v8 = vadd.f32 %v3844_v7, %v3843_v38 }
0x1ac4   : > { %v2820_v11 = vadd.f32 %v3845_v8, %v4963_v45  ;;  %v2824_v0 = vadd.f32 %v2823_v9, %v2819_v50 }
0x1ac6   : > { %v2825_v40 = vadd.f32 %v2823_v9, %v2820_v11  ;;  %v3846_v44 = vpop.f32.mrb[60].mxu1 }
0x1ac7   : > { %v3847_v29 = vpop.f32.mrb[61].mxu1 }
0x1ac8   : > { %v2836_v35 = vpack.c.bf16 %v2825_v40, %v2824_v0  ;;  %v3848_v48 = vadd.f32 %v3847_v29, %v3846_v44  ;;  %v3849_v4 = vpop.f32.mrb[62].mxu1 }
0x1ac9   : > { %v3850_v12 = vpop.f32.mrb[63].mxu1 }
0x1aca   : > { %v2821_v13 = vadd.f32 %v3848_v48, %v4960_v47  ;;  %v3851_v14 = vadd.f32 %v3850_v12, %v3849_v4  ;;  %3994 = vmatprep.mubr.msk.bf16.mxu0 %vm405_vm0, %v2836_v35 }
0x1acc   : > { %v2822_v15 = vadd.f32 %v3851_v14, %v4969_v3  ;;  %v2826_v2 = vadd.f32 %v2823_v9, %v2821_v13 }
0x1ace   : > { %v2827_v53 = vadd.f32 %v2823_v9, %v2822_v15  ;;  %v2918_v9 = vld [vmem:[%s4518_s23 + $0x160] ss:$0 sm:$0xff] }
0x1acf   : > { %v2980_v15 = vld [vmem:[%s5191_s3] sm:$0xff] }
0x1ad0   : > { %v2837_v16 = vpack.c.bf16 %v2827_v53, %v2826_v2  ;;  %v2981_v2 = vld [vmem:[%s5191_s3 + $0x8] sm:$0xff] }
0x1ad2   : > { %3995 = vmatmul.mubr.msk.bf16.vlgmr.msra.gmra.mrb[32].mxu0 %vm405_vm0, %v2837_v16  ;;  %v2989_v16 = vpack.c.bf16 %v2981_v2, %v2980_v15 }
0x1ad3   : > { %4002 = vmatprep.mubr.msk.bf16.mxu0 %vm4412_vm6, %v4411_v61 }
0x1ba5   : > { %v3996_v45 = vpop.f32.mrb[32].mxu0 }
0x1ba6   : > { %v2902_v1 = vpop.f32.mrb[33].mxu0  ;;  %v2925_v47 = vsel %vm715_vm5, %v3996_v45, 0.0 }
0x1ba7   : > { %v3997_v43 = vpop.f32.mrb[34].mxu0  ;;  %v2919_v19 = vsel %vm715_vm5, %v2902_v1, 0.0 }
0x1ba8   : > { %2920 = vadd.xlane.f32.xlu1 %v2919_v19  ;;  %v2905_v22 = vpop.f32.mrb[35].mxu0  ;;  %v2928_v3 = vsel %vm715_vm5, %v3997_v43, 0.0  ;;  %v2984_v19 = vld [vmem:[%s5191_s3 + $0x20] sm:$0xff] }
0x1ba9   : > { %v2922_v25 = vsel %vm715_vm5, %v2905_v22, 0.0 }
0x1baa   : > { %2923 = vadd.xlane.f32.xlu0 %v2922_v25 }
0x1bac   : > { %2926 = vadd.xlane.f32.xlu1 %v2925_v47  ;;  %v2986_v47 = vld [vmem:[%s5191_s3 + $0x30] sm:$0xff] }
0x1bae   : > { %2929 = vadd.xlane.f32.xlu0 %v2928_v3  ;;  %v2987_v3 = vld [vmem:[%s5191_s3 + $0x38] sm:$0xff] }
0x1c35   : > { %v2921_v26 = vpop.xlane.xlu1 %2920 }
0x1c36   : > { %v2932_v37 = vmul.f32 0.03125, %v2921_v26  ;;  %v2992_v26 = vpack.c.bf16 %v2987_v3, %v2986_v47 }
0x1c37   : > { %v2924_v46 = vpop.xlane.xlu0 %2923 }
0x1c38   : > { %v2936_v54 = vsub.f32 %v2902_v1, %v2932_v37  ;;  %v2933_v56 = vmul.f32 0.03125, %v2924_v46  ;;  %v2983_v1 = vld [vmem:[%s5191_s3 + $0x18] sm:$0xff]  ;;  %v2988_v37 = vld [vmem:[%s5191_s3 + $0x40] sm:$0xff] }
0x1c39   : > { %v2927_v41 = vpop.xlane.xlu1 %2926  ;;  %v2993_v46 = vpack.c.bf16 %v2988_v37, %v2988_v37 }
0x1c3a   : > { %v2937_v49 = vsub.f32 %v2905_v22, %v2933_v56  ;;  %v2934_v51 = vmul.f32 0.03125, %v2927_v41  ;;  %v2940_v52 = vmul.f32 %v2936_v54, %v2936_v54  ;;  %v2985_v22 = vld [vmem:[%s5191_s3 + $0x28] sm:$0xff] }
0x1c3b   : > { %v2930_v55 = vpop.xlane.xlu0 %2929  ;;  %v2991_v25 = vpack.c.bf16 %v2985_v22, %v2984_v19  ;;  %v4232_v56 = vld [vmem:[%s4472_s29 + $0x580] ss:$8 sps:$4 sm:$0xff]  }
0x1c3c   : > { %v2938_v30 = vsub.f32 %v3996_v45, %v2934_v51  ;;  %v2935_v57 = vmul.f32 0.03125, %v2930_v55  ;;  %v2944_v58 = vsel %vm715_vm5, %v2940_v52, 0.0  ;;  %v2941_v18 = vmul.f32 %v2937_v49, %v2937_v49  ;;  %v2982_v45 = vld [vmem:[%s5191_s3 + $0x10] sm:$0xff]  ;;  %v4233_v41 = vld [vmem:[%s4472_s29 + $0x480] ss:$8 sps:$4 sm:$0xff]  }
0x1c3d   : > { %2945 = vadd.xlane.f32.xlu1 %v2944_v58  ;;  %v4235_v51 = vld [vmem:[%s4472_s29 + $0x490] ss:$8 sps:$4 sm:$0xff]   ;;  %v4236_v52 = vld [vmem:[%s4472_s29 + $0x520] ss:$8 sps:$4 sm:$0xff]  }
0x1c3e   : > { %v2939_v24 = vsub.f32 %v3997_v43, %v2935_v57  ;;  %v2947_v6 = vsel %vm715_vm5, %v2941_v18, 0.0  ;;  %v2942_v59 = vmul.f32 %v2938_v30, %v2938_v30  ;;  %v2990_v43 = vpack.c.bf16 %v2983_v1, %v2982_v45  ;;  %v4237_v55 = vld [vmem:[%s4472_s29 + $0x4a0] ss:$8 sps:$4 sm:$0xff]   ;;  %v4239_v57 = vld [vmem:[%s4472_s29 + $0x4b0] ss:$8 sps:$4 sm:$0xff]  }
0x1c3f   : > { %2948 = vadd.xlane.f32.xlu0 %v2947_v6  ;;  %v4240_v58 = vld [vmem:[%s4472_s29 + $0x540] ss:$8 sps:$4 sm:$0xff]  }
0x1c40   : > { %v2950_v23 = vsel %vm715_vm5, %v2942_v59, 0.0  ;;  %v2943_v36 = vmul.f32 %v2939_v24, %v2939_v24  ;;  %v4241_v18 = vld [vmem:[%s4472_s29 + $0x4c0] ss:$8 sps:$4 sm:$0xff]  }
0x1c41   : > { %2951 = vadd.xlane.f32.xlu1 %v2950_v23 }
0x1c42   : > { %v2953_v39 = vsel %vm715_vm5, %v2943_v36, 0.0 }
0x1c43   : > { %2954 = vadd.xlane.f32.xlu0 %v2953_v39 }
0x1cca   : > { %v2946_v62 = vpop.xlane.xlu1 %2945 }
0x1ccb   : > { %v2956_v42 = vmul.f32 0.03125, %v2946_v62 }
0x1ccc   : > { %v2949_v28 = vpop.xlane.xlu0 %2948 }
0x1ccd   : > { %v2960_v63 = vadd.f32 1e-06, %v2956_v42  ;;  %v2957_v27 = vmul.f32 0.03125, %v2949_v28  ;;  %v4242_v42 = vld [vmem:[%s4472_s29 + $0x550] ss:$8 sps:$4 sm:$0xff]  }
0x1cce   : > { %v2952_v10 = vpop.xlane.xlu1 %2951  ;;  %v4243_v28 = vld [vmem:[%s4472_s29 + $0x590] ss:$8 sps:$4 sm:$0xff]  }
0x1ccf   : > { %4383 = vrsqrt.f32 %v2960_v63  ;;  %v2961_v5 = vadd.f32 1e-06, %v2957_v27  ;;  %v2958_v32 = vmul.f32 0.03125, %v2952_v10  ;;  %v4244_v27 = vld [vmem:[%s4472_s29 + $0x4d0] ss:$8 sps:$4 sm:$0xff]  }
0x1cd0   : > { %v2955_v34 = vpop.xlane.xlu0 %2954 }
0x1cd1   : > { %4385 = vrsqrt.f32 %v2961_v5  ;;  %v2962_v20 = vadd.f32 1e-06, %v2958_v32  ;;  %v2959_v60 = vmul.f32 0.03125, %v2955_v34  ;;  %v4245_v5 = vld [vmem:[%s4472_s29 + $0x560] ss:$8 sps:$4 sm:$0xff]  }
0x1cd2   : > { %v4246_v32 = vld [vmem:[%s4472_s29 + $0x4e0] ss:$8 sps:$4 sm:$0xff]  }
0x1cd3   : > { %4387 = vrsqrt.f32 %v2962_v20  ;;  %v2963_v17 = vadd.f32 1e-06, %v2959_v60 }
0x1cd5   : > { %4389 = vrsqrt.f32 %v2963_v17 }
0x1cd9   : > { %v4384_v31 = vpop.eup %4383 }
0x1cda   : > { %v2968_v33 = vmul.f32 %v4384_v31, %v2936_v54  ;;  %v4231_v54 = vld [vmem:[%s4472_s29 + $0x500] ss:$8 sps:$4 sm:$0xff]   ;;  %v4247_v31 = vld [vmem:[%s4472_s29 + $0x570] ss:$8 sps:$4 sm:$0xff]  }
0x1cdb   : > { %v4386_v38 = vpop.eup %4385  ;;  %3865 = vmatprep.subr.bf16.mxu1 %v4231_v54 }
0x1cdc   : > { %v2969_v7 = vmul.f32 %v4386_v38, %v2937_v49  ;;  %v2972_v50 = vmul.f32 %v2968_v33, %v2917_v21  ;;  %v4234_v49 = vld [vmem:[%s4472_s29 + $0x510] ss:$8 sps:$4 sm:$0xff]   ;;  %3866 = vmatpush3.bf16.msra.mxu1 %v4233_v41 }
0x1cdd   : > { %v4388_v8 = vpop.eup %4387  ;;  %3867 = vmatprep.subr.bf16.mxu1 %v4234_v49 }
0x1cde   : > { %v2970_v11 = vmul.f32 %v4388_v8, %v2938_v30  ;;  %v2973_v0 = vmul.f32 %v2969_v7, %v2917_v21  ;;  %v2976_v29 = vadd.f32 %v2972_v50, %v2918_v9  ;;  %v4238_v30 = vld [vmem:[%s4472_s29 + $0x530] ss:$8 sps:$4 sm:$0xff]  }
0x1cdf   : > { %v4390_v40 = vpop.eup %4389 }
0x1ce0   : > { %v2971_v44 = vmul.f32 %v4390_v40, %v2939_v24  ;;  %v2977_v35 = vadd.f32 %v2973_v0, %v2918_v9  ;;  %v2974_v48 = vmul.f32 %v2970_v11, %v2917_v21  ;;  %3868 = vmatpush3.bf16.msra.mxu1 %v4235_v51 }
0x1ce1   : > { %3869 = vmatprep.subr.bf16.mxu1 %v4236_v52 }
0x1ce2   : > { %v2994_v4 = vpack.c.bf16 %v2977_v35, %v2976_v29  ;;  %v2975_v12 = vmul.f32 %v2971_v44, %v2917_v21  ;;  %v2978_v13 = vadd.f32 %v2974_v48, %v2918_v9  ;;  %v4248_v21 = vld [vmem:[%s4472_s29 + $0x4f0] ss:$8 sps:$4 sm:$0xff]  }
0x1ce4   : > { %3999 = vmatpush3.bf16.msra.mxu0 %v2994_v4  ;;  %v2979_v14 = vadd.f32 %v2975_v12, %v2918_v9  ;;  %3870 = vmatpush3.bf16.msra.mxu1 %v4237_v55 }
0x1ce5   : > { %4000 = vmatprep.subr.bf16.mxu0 %v4411_v61  ;;  %3871 = vmatprep.subr.bf16.mxu1 %v4238_v30 }
0x1ce6   : > { %v2995_v53 = vpack.c.bf16 %v2979_v14, %v2978_v13 }
0x1ce8   : > { %4001 = vmatpush3.bf16.msra.mxu0 %v2995_v53  ;;  %3872 = vmatpush3.bf16.msra.mxu1 %v4239_v57 }
0x1ce9   : > { %4022 = vmatprep.subr.bf16.mxu0 %v4411_v61  ;;  %3873 = vmatprep.subr.bf16.mxu1 %v4240_v58 }
0x1ceb   : > { %4003 = vmatmul.mubr.msk.bf16.vlgmr.msra.gmra.mrb[36].mxu0 %vm715_vm5, %v2989_v16 }
0x1cec   : > { %4006 = vmatprep.mubr.msk.bf16.mxu0 %vm4412_vm6, %v4411_v61  ;;  %4023 = vmatpush3.bf16.msra.mxu0 %v4232_v56 }
0x1ced   : > { %4024 = vmatprep.subr.bf16.mxu0 %v4411_v61  ;;  %3874 = vmatpush3.bf16.msra.mxu1 %v4241_v18 }
0x1cee   : > { %3875 = vmatprep.subr.bf16.mxu1 %v4242_v42  ;;  %v3344_v42 = vld [vmem:[%s4518_s23 + $0x170] ss:$0 sm:$0xff] }
0x1cf0   : > { %4025 = vmatpush3.bf16.msra.mxu0 %v4243_v28 }
0x1cf1   : > { %3876 = vmatpush3.bf16.msra.mxu1 %v4244_v27  ;;  %4038 = vmatprep.subr.bf16.mxu0 %v4411_v61 }
0x1cf2   : > { %3877 = vmatprep.subr.bf16.mxu1 %v4245_v5 }
0x1cf3   : > { %4007 = vmatmul.mubr.msk.bf16.gmra.mrb[40].mxu0 %vm715_vm5, %v2990_v43 }
0x1cf4   : > { %4010 = vmatprep.mubr.msk.bf16.mxu0 %vm4412_vm6, %v4411_v61 }
0x1cf5   : > { %3878 = vmatpush3.bf16.msra.mxu1 %v4246_v32  ;;  %v3366_v32 = vld [vmem:[%s4518_s23 + $0x190] ss:$0 sm:$0xff] }
0x1cf6   : > { %3879 = vmatprep.subr.bf16.mxu1 %v4247_v31 }
0x1cf9   : > { %3880 = vmatpush3.bf16.msra.mxu1 %v4248_v21 }
0x1cfa   : > { %4030 = vmatprep.subr.bf16.mxu1 %v4411_v61 }
0x1cfb   : > { %4011 = vmatmul.mubr.msk.bf16.gmra.mrb[44].mxu0 %vm715_vm5, %v2991_v25 }
0x1cfc   : > { %4014 = vmatprep.mubr.msk.bf16.mxu0 %vm4412_vm6, %v4411_v61 }
0x1d03   : > { %4015 = vmatmul.mubr.msk.bf16.gmra.mrb[48].mxu0 %vm715_vm5, %v2992_v26 }
0x1d04   : > { %4018 = vmatprep.mubr.msk.bf16.mxu0 %vm4412_vm6, %v4411_v61 }
0x1d0b   : > { %4019 = vmatmul.mubr.msk.bf16.gmra.mrb[52].mxu0 %vm715_vm5, %v2993_v46 }
0x1d0c   : > { %4026 = vmatprep.mubr.msk.bf16.mxu0 %vm4412_vm6, %v4411_v61 }
0x1dbe   : > { %v3045_v24 = vpop.f32.mrb[36].mxu0 }
0x1dbf   : > { %v4004_v6 = vpop.f32.mrb[37].mxu0 }
0x1dc0   : > { %v3048_v59 = vpop.f32.mrb[38].mxu0  ;;  %v4249_v6 = vld [vmem:[%s4472_s29 + $0x5a0] ss:$8 sps:$4 sm:$0xff]  }
0x1dc1   : > { %v4005_v23 = vpop.f32.mrb[39].mxu0 }
0x1dc6   : > { %v3053_v36 = vpop.f32.mrb[40].mxu0 }
0x1dc7   : > { %v4008_v39 = vpop.f32.mrb[41].mxu0 }
0x1dc8   : > { %v3056_v62 = vpop.f32.mrb[42].mxu0 }
0x1dc9   : > { %v4009_v63 = vpop.f32.mrb[43].mxu0 }
0x1dca   : > { %v3345_v63 = vld [vmem:[%s4518_s23 + $0x180] ss:$0 sm:$0xff] }
0x1dce   : > { %v3061_v10 = vpop.f32.mrb[44].mxu0 }
0x1dcf   : > { %v4012_v34 = vpop.f32.mrb[45].mxu0 }
0x1dd0   : > { %v3064_v20 = vpop.f32.mrb[46].mxu0 }
0x1dd1   : > { %v4106_v60 = vpack.i.bf16 %v3048_v59, %v3064_v20  ;;  %v4013_v17 = vpop.f32.mrb[47].mxu0  ;;  %v4250_v59 = vld [vmem:[%s4472_s29 + $0x5b0] ss:$8 sps:$4 sm:$0xff]  }
0x1dd3   : > { %4107 = vrot.lane.b32.xlu1 %v4106_v60, %s4409_s14 }
0x1dd6   : > { %v3069_v33 = vpop.f32.mrb[48].mxu0 }
0x1dd7   : > { %v4111_v38 = vpack.i.bf16 %v3053_v36, %v3069_v33  ;;  %v4016_v7 = vpop.f32.mrb[49].mxu0 }
0x1dd8   : > { %v3072_v50 = vpop.f32.mrb[50].mxu0 }
0x1dd9   : > { %v4116_v8 = vpack.i.bf16 %v3056_v62, %v3072_v50  ;;  %4112 = vrot.lane.b32.xlu0 %v4111_v38, %s4408_s28  ;;  %v4017_v9 = vpop.f32.mrb[51].mxu0  ;;  %s3589_s28 = sshll.u32 %s4465_s25, 3 }
0x1dda   : > { %v4251_v9 = vld [vmem:[%s4472_s29 + $0x5c0] ss:$8 sps:$4 sm:$0xff]  }
0x1ddb   : > { %4117 = vrot.lane.b32.xlu1 %v4116_v8, %s4410_s15  ;;  %s269_s15 = scalar_lea.vmem %s5194_s6, %s3589_s28 }
0x1dde   : > { %v3077_v11 = vpop.f32.mrb[52].mxu0 }
0x1ddf   : > { %v3152_v0 = vpack.c.bf16 %v3077_v11, %v3077_v11  ;;  %v4020_v40 = vpop.f32.mrb[53].mxu0  ;;  %v4252_v11 = vld [vmem:[%s4472_s29 + $0x5d0] ss:$8 sps:$4 sm:$0xff]  }
0x1de0   : > { %v3080_v44 = vpop.f32.mrb[54].mxu0  ;;  %v4254_v40 = vld [vmem:[%s4472_s29 + $0x5f0] ss:$8 sps:$4 sm:$0xff]  }
0x1de1   : > { %4027 = vmatmul.mubr.msk.bf16.vlgmr.msra.gmra.mrb[56].mxu0 %vm715_vm5, %v3152_v0  ;;  %v4021_v29 = vpop.f32.mrb[55].mxu0  ;;  %v4253_v0 = vld [vmem:[%s4472_s29 + $0x5e0] ss:$8 sps:$4 sm:$0xff]  }
0x1de2   : > { %4046 = vmatprep.mubr.msk.bf16.mxu0 %vm4412_vm6, %v4411_v61  ;;  %4039 = vmatpush3.bf16.msra.mxu0 %v4251_v9 }
0x1de3   : > { %4040 = vmatprep.subr.bf16.mxu0 %v4411_v61 }
0x1de6   : > { %4041 = vmatpush3.bf16.msra.mxu0 %v4252_v11 }
0x1de7   : > { %4042 = vmatprep.subr.bf16.mxu0 %v4411_v61 }
0x1dea   : > { %4043 = vmatpush3.bf16.msra.mxu0 %v4253_v0 }
0x1deb   : > { %4044 = vmatprep.subr.bf16.mxu0 %v4411_v61 }
0x1dee   : > { %4045 = vmatpush3.bf16.msra.mxu0 %v4254_v40 }
0x1e45   : > { %v4108_v35 = vpop.permute.xlu1 %4107 }
0x1e46   : > { %v4110_v48 = vunpack.i.h.bf16 %v4108_v35  ;;  %v4109_v4 = vunpack.i.l.bf16 %v4108_v35 }
0x1e48   : > { %v3107_v15 = vsel %vm715_vm5, %v3045_v24, %v4110_v48  ;;  %v3111_v2 = vsel %vm715_vm5, %v3061_v10, %v4109_v4  ;;  %v3422_v4 = vld [vmem:[%s4518_s23 + $0x1a0] ss:$0 sm:$0xff] }
0x1e4b   : > { %v4113_v12 = vpop.permute.xlu0 %4112 }
0x1e4c   : > { %v4115_v13 = vunpack.i.h.bf16 %v4113_v12  ;;  %v4114_v14 = vunpack.i.l.bf16 %v4113_v12 }
0x1e4d   : > { %v4118_v53 = vpop.permute.xlu1 %4117 }
0x1e4e   : > { %v3108_v16 = vsel %vm405_vm0, %v3107_v15, %v4115_v13  ;;  %v3112_v45 = vsel %vm405_vm0, %v3111_v2, %v4114_v14  ;;  %v4120_v1 = vunpack.i.h.bf16 %v4118_v53  ;;  %v4119_v43 = vunpack.i.l.bf16 %v4118_v53  ;;  %v3423_v13 = vld [vmem:[%s4518_s23 + $0x1b0] ss:$0 sm:$0xff]  ;;  %v3448_v53 = vld [vmem:[%s4518_s23 + $0x1c0] ss:$0 sm:$0xff] }
0x1e50   : > { %v3110_v19 = vsel %vm3109_vm7, %v3108_v16, %v4120_v1  ;;  %v3113_v22 = vsel %vm3109_vm7, %v3112_v45, %v4119_v43 }
0x1e51   : > { %v3150_v25 = vpack.c.bf16 %v3110_v19, %v3110_v19  ;;  %v3151_v47 = vpack.c.bf16 %v3113_v22, %v3113_v22 }
0x1e53   : > { %3296 = vmatprep.mubr.bf16.mxu1 %v3151_v47 }
0x1e54   : > { %3297 = vmatmul.mubr.bf16.vlgmr.msra.gmra.mrb[64].mxu1 %v3150_v25 }
0x1e55   : > { %4034 = vmatprep.mubr.msk.bf16.mxu1 %vm4412_vm6, %v4411_v61  ;;  %4031 = vmatpush3.bf16.msra.mxu1 %v4249_v6 }
0x1e56   : > { %4032 = vmatprep.subr.bf16.mxu1 %v4411_v61 }
0x1e59   : > { %4033 = vmatpush3.bf16.msra.mxu1 %v4250_v59 }
0x1eb4   : > { %v3338_v3 = vpop.f32.mrb[56].mxu0 }
0x1eb5   : > { %v4028_v26 = vpop.f32.mrb[57].mxu0 }
0x1eb6   : > { %v3341_v37 = vpop.f32.mrb[58].mxu0 }
0x1eb7   : > { %v4029_v46 = vpop.f32.mrb[59].mxu0 }
0x1f27   : > { %v3881_v54 = vpop.f32.mrb[64].mxu1 }
0x1f28   : > { %v3882_v56 = vpop.f32.mrb[65].mxu1 }
0x1f29   : > { %v3883_v41 = vadd.f32 %v3882_v56, %v3881_v54  ;;  %v3884_v49 = vpop.f32.mrb[66].mxu1 }
0x1f2a   : > { %v3885_v51 = vpop.f32.mrb[67].mxu1 }
0x1f2b   : > { %v3339_v52 = vadd.f32 %v3883_v41, %v3338_v3 }
0x1f2d   : > { %v3346_v55 = vsel %vm715_vm5, %v3339_v52, 0.0 }
0x1f2e   : > { %3347 = vadd.xlane.f32.xlu1 %v3346_v55 }
0x1fbb   : > { %v3348_v30 = vpop.xlane.xlu1 %3347 }
0x1fbc   : > { %v3349_v57 = vmul.f32 0.03125, %v3348_v30 }
0x1fbe   : > { %v3350_v58 = vsub.f32 %v3339_v52, %v3349_v57 }
0x1fc0   : > { %v3351_v18 = vmul.f32 %v3350_v58, %v3350_v58 }
0x1fc2   : > { %v3352_v24 = vsel %vm715_vm5, %v3351_v18, 0.0 }
0x1fc3   : > { %3353 = vadd.xlane.f32.xlu0 %v3352_v24 }
0x2050   : > { %v3354_v23 = vpop.xlane.xlu0 %3353 }
0x2051   : > { %v3355_v36 = vmul.f32 0.03125, %v3354_v23 }
0x2053   : > { %v3356_v39 = vadd.f32 1e-06, %v3355_v36 }
0x2055   : > { %4391 = vrsqrt.f32 %v3356_v39 }
0x205f   : > { %v4392_v62 = vpop.eup %4391 }
0x2060   : > { %v3358_v28 = vmul.f32 %v4392_v62, %v3350_v58 }
0x2062   : > { %v3359_v27 = vmul.f32 %v3358_v28, %v3344_v42 }
0x2064   : > { %v3360_v10 = vadd.f32 %v3359_v27, %v3345_v63 }
0x2066   : > { %v3365_v5 = vpack.c.bf16 %v3360_v10, %v3360_v10 }
0x2068   : > { %4035 = vmatmul.mubr.msk.bf16.vlgmr.msra.gmra.mrb[68].mxu1 %vm715_vm5, %v3365_v5 }
0x213b   : > { %v3416_v34 = vpop.f32.mrb[68].mxu1 }
0x213c   : > { %v3417_v20 = vadd.f32 %v3416_v34, %v3366_v32  ;;  %v4036_v60 = vpop.f32.mrb[69].mxu1 }
0x213d   : > { %v3419_v17 = vpop.f32.mrb[70].mxu1 }
0x213e   : > { %v4037_v31 = vpop.f32.mrb[71].mxu1  ;;  %v3424_v21 = vsel %vm405_vm0, %v3417_v20, 0.0 }
0x213f   : > { %3425 = vadd.xlane.f32.xlu0 %v3424_v21 }
0x21cc   : > { %v3426_v33 = vpop.xlane.xlu0 %3425 }
0x21cd   : > { %v3427_v38 = vmul.f32 0.015625, %v3426_v33 }
0x21cf   : > { %v3428_v7 = vsub.f32 %v3417_v20, %v3427_v38 }
0x21d1   : > { %v3429_v50 = vmul.f32 %v3428_v7, %v3428_v7 }
0x21d3   : > { %v3430_v8 = vsel %vm405_vm0, %v3429_v50, 0.0 }
0x21d4   : > { %3431 = vadd.xlane.f32.xlu1 %v3430_v8 }
0x2261   : > { %v3432_v44 = vpop.xlane.xlu1 %3431 }
0x2262   : > { %v3433_v29 = vmul.f32 0.015625, %v3432_v44 }
0x2264   : > { %v3434_v35 = vadd.f32 1e-06, %v3433_v29 }
0x2266   : > { %4393 = vrsqrt.f32 %v3434_v35 }
0x2270   : > { %v4394_v48 = vpop.eup %4393 }
0x2271   : > { %v3436_v12 = vmul.f32 %v4394_v48, %v3428_v7 }
0x2273   : > { %v3437_v14 = vmul.f32 %v3436_v12, %v3422_v4 }
0x2275   : > { %v3438_v15 = vadd.f32 %v3437_v14, %v3423_v13 }
0x2277   : > { %v3447_v2 = vpack.c.bf16 %v3438_v15, %v3438_v15 }
0x2279   : > { %4047 = vmatmul.mubr.msk.bf16.vlgmr.msra.gmra.mrb[60].mxu0 %vm405_vm0, %v3447_v2 }
0x234c   : > { %v3510_v61 = vpop.f32.mrb[60].mxu0 }
0x234d   : > { %v3511_v16 = vadd.f32 %v3510_v61, %v3448_v53  ;;  %v4048_v45 = vpop.f32.mrb[61].mxu0 }
0x234e   : > { %v3513_v1 = vpop.f32.mrb[62].mxu0 }
0x234f   : > { %3516 = vst.msk [vmem:[%s269_s15] sm:$0xff] %vm405_vm0, %v3511_v16  ;;  %v4049_v43 = vpop.f32.mrb[63].mxu0 }
0x2350 PF: > { %s16_s21 = sadd.s32 1, %s4405_s21  }
0x2351   : > { %p13_p5 = scmp.ge.s32.totalorder %s16_s21, 4  }
0x2353   :  { %15 = sbr.rel (!%p13_p5) target bundleno = 1 (0x1), region = 81 }

</bundles_post_ra>
